<compile_context>
chip_gen: v7x
topology: tpu7x:2x2x1
jax: 0.10.0
libtpu: 0.0.40
codegen_flags: <defaults>
</compile_context>

<pallas_src>
import jax
import jax.numpy as jnp
from jax import lax
from jax.experimental import pallas as pl
from jax.experimental.pallas import tpu as pltpu


LANE = 128     # lane width (last-dim tile)
SUBLANE = 8    # f32 sublane width (second-to-last-dim tile)
VMEM_CAP = 48 * 1024 * 1024   # fits v7x (64 MiB) and raises v5e/v6e defaults


def _round_up(x, m):
    return (x + m - 1) // m * m


def _pick_tb(b_pad, tb_max=64):
    """Largest batch tile that is a multiple of 8 and divides B_pad.
    (On v7x, prefer configurations with >= 2 batch tiles so both TensorCores
    get work on the 'parallel' grid axis; at B_pad == 8 a single tile is
    unavoidable.)"""
    tb = min(b_pad, tb_max)
    while tb > SUBLANE and (b_pad % tb or tb % SUBLANE):
        tb -= SUBLANE
    return max(tb, SUBLANE)


def _sigmoid_via_tanh(x):
    # Exactly sigmoid(x); guarantees a single EUP transcendental per gate.
    return 0.5 * (jnp.tanh(0.5 * x) + 1.0)


# -----------------------------------------------------------------------------
# Pallas kernels
# -----------------------------------------------------------------------------
def make_lstm_kernel(emit_outputs, tc, tb, H, unroll):
    """One grid step == one chunk of `tc` LSTM timesteps for one batch block.

    Inputs : x (tc, tb, H) bf16, lengths (tb, 1) i32, W_ih (H, 4H) bf16,
             W_hh (H, 4H) bf16, bias (1, 4H) f32, h0/c0 (tb, H) f32.
    Outputs: [out (tc, tb, H) f32 if emit_outputs], hT (tb, H), cT (tb, H).
    Scratch: gx (tc, tb, 4H) f32, h (tb, H) f32, c (tb, H) f32.
    """
    G = 4 * H

    def kernel(x_ref, len_ref, wih_ref, whh_ref, b_ref, h0_ref, c0_ref, *rest):
        if emit_outputs:
            out_ref, hT_ref, cT_ref, gx_sc, h_sc, c_sc = rest
        else:
            hT_ref, cT_ref, gx_sc, h_sc, c_sc = rest

        t = pl.program_id(1)

        @pl.when(t == 0)
        def _():
            h_sc[...] = h0_ref[...]
            c_sc[...] = c0_ref[...]

        # Fused input projection for the whole chunk: one MXU matmul with an
        # M dimension of tc*tb rows (instead of tb rows per timestep), kept
        # entirely in VMEM (no HBM round trip for the 4H-wide gates).
        x2d = x_ref[...].reshape(tc * tb, H)                        # bf16
        gx = jnp.dot(x2d, wih_ref[...],
                     preferred_element_type=jnp.float32) + b_ref[...]
        gx_sc[...] = gx.reshape(tc, tb, G)

        t0 = t * tc
        lens = len_ref[...]                                         # (tb, 1) i32

        def step(l, carry):
            h, c = carry                                            # (tb, H) f32
            gates = gx_sc[l] + jnp.dot(h.astype(whh_ref.dtype), whh_ref[...],
                                       preferred_element_type=jnp.float32)
            i_g = _sigmoid_via_tanh(gates[:, 0 * H:1 * H])
            f_g = _sigmoid_via_tanh(gates[:, 1 * H:2 * H])
            g_g = jnp.tanh(gates[:, 2 * H:3 * H])
            o_g = _sigmoid_via_tanh(gates[:, 3 * H:4 * H])
            c_new = f_g * c + i_g * g_g
            h_new = o_g * jnp.tanh(c_new)

            # pack_padded_sequence semantics: freeze state past each row's
            # length, zero the per-step output (pad_packed default).
            valid = lens > (t0 + l)                                 # (tb, 1)
            if emit_outputs:
                out_ref[l] = jnp.where(valid, h_new, 0.0)
            return jnp.where(valid, h_new, h), jnp.where(valid, c_new, c)

        h_fin, c_fin = lax.fori_loop(0, tc, step, (h_sc[...], c_sc[...]),
                                     unroll=unroll)
        h_sc[...] = h_fin
        c_sc[...] = c_fin

        @pl.when(t == pl.num_programs(1) - 1)
        def _():
            hT_ref[...] = h_sc[...]
            cT_ref[...] = c_sc[...]

    return kernel


def linear_kernel(x_ref, w_ref, b_ref, o_ref):
    """o = x @ w + b, w laid out (K, N). bf16 operands, f32 accumulate."""
    o_ref[...] = (jnp.dot(x_ref[...], w_ref[...],
                          preferred_element_type=jnp.float32) + b_ref[...])


# -----------------------------------------------------------------------------
# Wrappers
# -----------------------------------------------------------------------------
def lstm_layer(x_tbh, lengths_col, h0, c0, w_ih_bf16, w_hh_bf16, bias_row,
               *, tc, tb, emit_outputs):
    """Masked single-layer LSTM over padded time-major bf16 inputs.

    x_tbh:       [T_pad, B_pad, H_pad] bf16 (time-major, zero H-padding)
    lengths_col: [B_pad, 1] int32
    Returns (out or None, hT, cT) with out time-major [T_pad, B_pad, H_pad].
    """
    T_pad, B_pad, H_pad = x_tbh.shape
    G = 4 * H_pad
    unroll = True if tc <= 8 else 8   # partial unroll keeps imem/vregs bounded

    kernel = make_lstm_kernel(emit_outputs, tc, tb, H_pad, unroll)

    out_shape, out_specs = [], []
    if emit_outputs:
        out_shape.append(jax.ShapeDtypeStruct((T_pad, B_pad, H_pad), jnp.float32))
        out_specs.append(pl.BlockSpec((tc, tb, H_pad), lambda b, t: (t, b, 0)))
    out_shape += [jax.ShapeDtypeStruct((B_pad, H_pad), jnp.float32)] * 2
    out_specs += [pl.BlockSpec((tb, H_pad), lambda b, t: (b, 0)),
                  pl.BlockSpec((tb, H_pad), lambda b, t: (b, 0))]

    res = pl.pallas_call(
        kernel,
        out_shape=tuple(out_shape),
        grid_spec=pltpu.PrefetchScalarGridSpec(
            num_scalar_prefetch=0,
            grid=(B_pad // tb, T_pad // tc),          # batch outer, time inner
            in_specs=[
                pl.BlockSpec((tc, tb, H_pad), lambda b, t: (t, b, 0)),  # x chunk
                pl.BlockSpec((tb, 1), lambda b, t: (b, 0)),             # lengths
                pl.BlockSpec((H_pad, G), lambda b, t: (0, 0)),          # W_ih
                pl.BlockSpec((H_pad, G), lambda b, t: (0, 0)),          # W_hh
                pl.BlockSpec((1, G), lambda b, t: (0, 0)),              # bias
                pl.BlockSpec((tb, H_pad), lambda b, t: (b, 0)),         # h0
                pl.BlockSpec((tb, H_pad), lambda b, t: (b, 0)),         # c0
            ],
            out_specs=out_specs,
            scratch_shapes=[pltpu.VMEM((tc, tb, G), jnp.float32),   # gx chunk
                            pltpu.VMEM((tb, H_pad), jnp.float32),   # h state
                            pltpu.VMEM((tb, H_pad), jnp.float32)]), # c state
        compiler_params=pltpu.CompilerParams(
            dimension_semantics=("parallel", "arbitrary"),
            vmem_limit_bytes=VMEM_CAP),
    )(x_tbh, lengths_col, w_ih_bf16, w_hh_bf16, bias_row, h0, c0)

    if emit_outputs:
        out, hT, cT = res
    else:
        out, (hT, cT) = None, res
    return out, hT, cT


def tiled_linear(x2d, w_kn, b, *, tm_max=256, tn_max=512):
    """Tiled Pallas matmul: x2d (M, K) @ w_kn (K, N) + b -> (M, N) f32."""
    M, K = x2d.shape
    _, N = w_kn.shape

    tm = tm_max if M >= tm_max else _round_up(M, SUBLANE)
    tn = tn_max if N >= tn_max else _round_up(N, LANE)
    M_pad = _round_up(M, tm)
    N_pad = _round_up(N, tn)

    x_p = jnp.pad(x2d, ((0, M_pad - M), (0, 0))).astype(jnp.bfloat16)
    w_p = jnp.pad(w_kn, ((0, 0), (0, N_pad - N))).astype(jnp.bfloat16)
    b_p = jnp.pad(b.astype(jnp.float32), (0, N_pad - N)).reshape(1, N_pad)

    cost = pl.CostEstimate(
        flops=2 * M_pad * N_pad * K, transcendentals=0,
        bytes_accessed=M_pad * K * 2 + K * N_pad * 2 + M_pad * N_pad * 4)

    out = pl.pallas_call(
        linear_kernel,
        out_shape=jax.ShapeDtypeStruct((M_pad, N_pad), jnp.float32),
        grid_spec=pltpu.PrefetchScalarGridSpec(
            num_scalar_prefetch=0,
            grid=(M_pad // tm, N_pad // tn),
            in_specs=[
                pl.BlockSpec((tm, K), lambda i, j: (i, 0)),
                pl.BlockSpec((K, tn), lambda i, j: (0, j)),
                pl.BlockSpec((1, tn), lambda i, j: (0, j)),
            ],
            out_specs=pl.BlockSpec((tm, tn), lambda i, j: (i, j)),
        ),
        compiler_params=pltpu.CompilerParams(
            dimension_semantics=("parallel", "parallel"),
            vmem_limit_bytes=VMEM_CAP),
        cost_estimate=cost,
    )(x_p, w_p, b_p)
    return out[:M, :N]


# -----------------------------------------------------------------------------
# Parameter helpers (gate-aligned zero padding is numerically exact)
# -----------------------------------------------------------------------------
def _pad_gate_w_kn(w, H, H_pad):
    """(H, 4H) -> (H_pad, 4*H_pad); each i/f/g/o block lands on its own
    lane-aligned [k*H_pad, (k+1)*H_pad) column range."""
    w4 = w.reshape(H, 4, H)
    w4 = jnp.pad(w4, ((0, H_pad - H), (0, 0), (0, H_pad - H)))
    return w4.reshape(H_pad, 4 * H_pad)


def _pad_gate_b(b, H, H_pad):
    b4 = b.reshape(4, H)
    b4 = jnp.pad(b4, ((0, 0), (0, H_pad - H)))
    return b4.reshape(1, 4 * H_pad)


def init_params(key, src_vocab, tgt_vocab, hidden):
    def u(k, shape):
        return jax.random.uniform(k, shape, jnp.float32, -0.1, 0.1)
    ks = jax.random.split(key, 10)
    H = hidden
    return {
        "src_emb": u(ks[0], (src_vocab, H)),
        "tgt_emb": u(ks[1], (tgt_vocab, H)),      # tied with generator weight
        "enc_w_ih": u(ks[2], (H, 4 * H)),
        "enc_w_hh": u(ks[3], (H, 4 * H)),
        "enc_b":    u(ks[4], (4 * H,)),
        "dec_w_ih": u(ks[5], (H, 4 * H)),
        "dec_w_hh": u(ks[6], (H, 4 * H)),
        "dec_b":    u(ks[7], (4 * H,)),
        "gen_b":    u(ks[8], (tgt_vocab,)),
    }


# -----------------------------------------------------------------------------
# Seq2Seq forward
# -----------------------------------------------------------------------------
def seq2seq_forward(params, src, src_lengths, tgt, dec_hidden=None, *, tc_max=32):
    B, T_src = src.shape
    _, T_tgt = tgt.shape
    H = params["src_emb"].shape[1]
    V_tgt = params["tgt_emb"].shape[0]

    H_pad = _round_up(H, LANE)
    B_pad = _round_up(B, SUBLANE)
    tb = _pick_tb(B_pad)
    tc_src = min(tc_max, T_src)
    tc_tgt = min(tc_max, T_tgt)
    T_src_pad = _round_up(T_src, tc_src)
    T_tgt_pad = _round_up(T_tgt, tc_tgt)

    # ---- parameters: lane/sublane-friendly, gate-aligned, bf16 MXU operands --
    src_emb = jnp.pad(params["src_emb"], ((0, 0), (0, H_pad - H))).astype(jnp.bfloat16)
    tgt_emb = jnp.pad(params["tgt_emb"], ((0, 0), (0, H_pad - H))).astype(jnp.bfloat16)
    enc_w_ih = _pad_gate_w_kn(params["enc_w_ih"], H, H_pad).astype(jnp.bfloat16)
    enc_w_hh = _pad_gate_w_kn(params["enc_w_hh"], H, H_pad).astype(jnp.bfloat16)
    enc_b = _pad_gate_b(params["enc_b"], H, H_pad)
    dec_w_ih = _pad_gate_w_kn(params["dec_w_ih"], H, H_pad).astype(jnp.bfloat16)
    dec_w_hh = _pad_gate_w_kn(params["dec_w_hh"], H, H_pad).astype(jnp.bfloat16)
    dec_b = _pad_gate_b(params["dec_b"], H, H_pad)

    # ---- encoder: transpose the cheap token-id matrix (not the embedded
    # tensor) so the LSTM input lands time-major with no extra HBM pass ------
    src_ids = jnp.pad(src, ((0, B_pad - B), (0, T_src_pad - T_src)))
    src_x = src_emb[src_ids.T]                              # [T_src_pad, B_pad, H_pad] bf16
    src_len = jnp.pad(src_lengths.astype(jnp.int32),
                      (0, B_pad - B)).reshape(B_pad, 1)
    zeros = jnp.zeros((B_pad, H_pad), jnp.float32)
    # encoder_outputs are unused (no attention): the encoder kernel skips all
    # per-step output stores and only produces the final (h, c).
    _, h_enc, c_enc = lstm_layer(src_x, src_len, zeros, zeros,
                                 enc_w_ih, enc_w_hh, enc_b,
                                 tc=tc_src, tb=tb, emit_outputs=False)

    if dec_hidden is None:
        h0_dec, c0_dec = h_enc, c_enc
    else:
        h0_dec = jnp.zeros((B_pad, H_pad), jnp.float32).at[:B, :H].set(dec_hidden[0])
        c0_dec = jnp.zeros((B_pad, H_pad), jnp.float32).at[:B, :H].set(dec_hidden[1])

    # ---- decoder: embedding + LSTM (full length, no packing) ----------------
    tgt_ids = jnp.pad(tgt, ((0, B_pad - B), (0, T_tgt_pad - T_tgt)))
    tgt_x = tgt_emb[tgt_ids.T]                              # [T_tgt_pad, B_pad, H_pad]
    tgt_len = jnp.full((B_pad, 1), T_tgt, jnp.int32)
    dec_out, h_dec, c_dec = lstm_layer(tgt_x, tgt_len, h0_dec, c0_dec,
                                       dec_w_ih, dec_w_hh, dec_b,
                                       tc=tc_tgt, tb=tb, emit_outputs=True)

    # ---- generator: Linear tied to decoder embedding -------------------------
    # One small XLA reorder of the H-wide decoder output (cheapest tensor to
    # transpose; logits are V-wide) + a one-time (V,H)->(H,V) weight transpose
    # so the RHS is stationary (K, N) inside the matmul kernel.
    dec_bth = jnp.transpose(dec_out[:T_tgt, :B, :], (1, 0, 2))   # [B, T_tgt, H_pad]
    gen_w = jnp.transpose(tgt_emb)                               # (H_pad, V_tgt)
    logits2d = tiled_linear(dec_bth.reshape(B * T_tgt, H_pad), gen_w,
                            params["gen_b"])
    logits = logits2d.reshape(B, T_tgt, V_tgt)

    return logits, (h_dec[:B, :H], c_dec[:B, :H])


# -----------------------------------------------------------------------------
# Driver
# -----------------------------------------------------------------------------
if __name__ == "__main__":
    B, T_SRC, T_TGT, H = 2, 8, 7, 32
    SRC_VOCAB, TGT_VOCAB = 50, 64

    key = jax.random.PRNGKey(0)
    k_par, k_src, k_tgt = jax.random.split(key, 3)

    params = init_params(k_par, SRC_VOCAB, TGT_VOCAB, H)
    src = jax.random.randint(k_src, (B, T_SRC), 0, SRC_VOCAB, jnp.int32)
    tgt = jax.random.randint(k_tgt, (B, T_TGT), 0, TGT_VOCAB, jnp.int32)
    src_lengths = jnp.array([T_SRC, 5], jnp.int32)

    logits, (h_dec, c_dec) = jax.jit(seq2seq_forward)(params, src, src_lengths, tgt)
    jax.block_until_ready((logits, h_dec, c_dec))

    assert logits.shape == (B, T_TGT, TGT_VOCAB), logits.shape
    assert h_dec.shape == (B, H) and c_dec.shape == (B, H)
    assert bool(jnp.all(jnp.isfinite(logits)))

    print("KERNEL_OK")
</pallas_src>

<mosaic_0001>
module attributes {stable_mosaic.version = 11 : i64} {
  func.func @kernel(%arg0: i32, %arg1: i32, %arg2: memref<8x8x128xbf16, #tpu.memory_space<vmem>>, %arg3: memref<8x1xi32, #tpu.memory_space<vmem>>, %arg4: memref<128x512xbf16, #tpu.memory_space<vmem>>, %arg5: memref<128x512xbf16, #tpu.memory_space<vmem>>, %arg6: memref<1x512xf32, #tpu.memory_space<vmem>>, %arg7: memref<8x128xf32, #tpu.memory_space<vmem>>, %arg8: memref<8x128xf32, #tpu.memory_space<vmem>>, %arg9: memref<8x128xf32, #tpu.memory_space<vmem>>, %arg10: memref<8x128xf32, #tpu.memory_space<vmem>>, %arg11: memref<8x8x512xf32, #tpu.memory_space<vmem>>, %arg12: memref<8x128xf32, #tpu.memory_space<vmem>>, %arg13: memref<8x128xf32, #tpu.memory_space<vmem>>) attributes {dimension_semantics = [#tpu.dimension_semantics<parallel>, #tpu.dimension_semantics<arbitrary>], iteration_bounds = array<i64: 1, 1>, scalar_prefetch = 0 : i64, scratch_operands = 3 : i64, tpu.core_type = #tpu.core_type<tc>, window_params = [{transform_indices = @transform_0, window_bounds = array<i64: 8, 8, 128>}, {transform_indices = @transform_1, window_bounds = array<i64: 8, 1>}, {pipeline_mode = #tpu.pipeline_mode<synchronous>, transform_indices = @transform_2, window_bounds = array<i64: 128, 512>}, {pipeline_mode = #tpu.pipeline_mode<synchronous>, transform_indices = @transform_3, window_bounds = array<i64: 128, 512>}, {pipeline_mode = #tpu.pipeline_mode<synchronous>, transform_indices = @transform_4, window_bounds = array<i64: 1, 512>}, {transform_indices = @transform_5, window_bounds = array<i64: 8, 128>}, {transform_indices = @transform_6, window_bounds = array<i64: 8, 128>}, {transform_indices = @transform_7, window_bounds = array<i64: 8, 128>}, {transform_indices = @transform_8, window_bounds = array<i64: 8, 128>}]} {
    %c0_i32 = arith.constant 0 : i32
    %0 = arith.cmpi eq, %arg1, %c0_i32 : i32
    %1 = arith.extui %0 : i1 to i32
    %c0_i32_0 = arith.constant 0 : i32
    %2 = arith.cmpi ne, %1, %c0_i32_0 : i32
    scf.if %2 {
      %c0_136 = arith.constant 0 : index
      %c0_137 = arith.constant 0 : index
      %397 = vector.load %arg7[%c0_136, %c0_137] : memref<8x128xf32, #tpu.memory_space<vmem>>, vector<8x128xf32>
      %c0_138 = arith.constant 0 : index
      %c0_139 = arith.constant 0 : index
      %398 = vector.load %arg12[%c0_138, %c0_139] : memref<8x128xf32, #tpu.memory_space<vmem>>, vector<8x128xf32>
      tpu.vector_store %arg12[%c0_138, %c0_139], %397 {strides = array<i32>} : memref<8x128xf32, #tpu.memory_space<vmem>>, vector<8x128xf32>,
      %c0_140 = arith.constant 0 : index
      %c0_141 = arith.constant 0 : index
      %399 = vector.load %arg8[%c0_140, %c0_141] : memref<8x128xf32, #tpu.memory_space<vmem>>, vector<8x128xf32>
      %c0_142 = arith.constant 0 : index
      %c0_143 = arith.constant 0 : index
      %400 = vector.load %arg13[%c0_142, %c0_143] : memref<8x128xf32, #tpu.memory_space<vmem>>, vector<8x128xf32>
      tpu.vector_store %arg13[%c0_142, %c0_143], %399 {strides = array<i32>} : memref<8x128xf32, #tpu.memory_space<vmem>>, vector<8x128xf32>,
    } else {
    }
    %c0 = arith.constant 0 : index
    %c0_1 = arith.constant 0 : index
    %c0_2 = arith.constant 0 : index
    %3 = vector.load %arg2[%c0, %c0_1, %c0_2] : memref<8x8x128xbf16, #tpu.memory_space<vmem>>, vector<8x8x128xbf16>
    %4 = vector.shape_cast %3 : vector<8x8x128xbf16> to vector<64x128xbf16>
    %c0_3 = arith.constant 0 : index
    %c0_4 = arith.constant 0 : index
    %5 = vector.load %arg4[%c0_3, %c0_4] : memref<128x512xbf16, #tpu.memory_space<vmem>>, vector<128x512xbf16>
    %cst = arith.constant dense<0.000000e+00> : vector<64x512xf32>
    %6 = tpu.matmul %4, %5, %cst {dimension_numbers = #tpu.dot_dimension_numbers<[1], [0], [0], [1], [0, 0, 1, 1], [], []>} : vector<64x128xbf16>, vector<128x512xbf16>, vector<64x512xf32> -> vector<64x512xf32>
    %c0_5 = arith.constant 0 : index
    %c0_6 = arith.constant 0 : index
    %7 = vector.load %arg6[%c0_5, %c0_6] : memref<1x512xf32, #tpu.memory_space<vmem>>, vector<1x512xf32>
    %8 = vector.broadcast %7 : vector<1x512xf32> to vector<64x512xf32>
    %9 = arith.addf %6, %8 : vector<64x512xf32>
    %10 = vector.shape_cast %9 : vector<64x512xf32> to vector<8x8x512xf32>
    %c0_7 = arith.constant 0 : index
    %c0_8 = arith.constant 0 : index
    %c0_9 = arith.constant 0 : index
    %11 = vector.load %arg11[%c0_7, %c0_8, %c0_9] : memref<8x8x512xf32, #tpu.memory_space<vmem>>, vector<8x8x512xf32>
    tpu.vector_store %arg11[%c0_7, %c0_8, %c0_9], %10 {strides = array<i32>} : memref<8x8x512xf32, #tpu.memory_space<vmem>>, vector<8x8x512xf32>,
    %c8_i32 = arith.constant 8 : i32
    %12 = arith.muli %arg1, %c8_i32 : i32
    %c0_10 = arith.constant 0 : index
    %c0_11 = arith.constant 0 : index
    %13 = vector.load %arg3[%c0_10, %c0_11] : memref<8x1xi32, #tpu.memory_space<vmem>>, vector<8x1xi32>
    %c0_12 = arith.constant 0 : index
    %c0_13 = arith.constant 0 : index
    %14 = vector.load %arg12[%c0_12, %c0_13] : memref<8x128xf32, #tpu.memory_space<vmem>>, vector<8x128xf32>
    %c0_14 = arith.constant 0 : index
    %c0_15 = arith.constant 0 : index
    %15 = vector.load %arg13[%c0_14, %c0_15] : memref<8x128xf32, #tpu.memory_space<vmem>>, vector<8x128xf32>
    %c0_i32_16 = arith.constant 0 : i32
    %16 = arith.index_cast %c0_i32_16 : i32 to index
    %c0_17 = arith.constant 0 : index
    %c0_18 = arith.constant 0 : index
    %17 = vector.load %arg11[%16, %c0_17, %c0_18] : memref<8x8x512xf32, #tpu.memory_space<vmem>>, vector<1x8x512xf32>
    %18 = vector.shape_cast %17 : vector<1x8x512xf32> to vector<8x512xf32>
    %19 = arith.truncf %14 : vector<8x128xf32> to vector<8x128xbf16>
    %c0_19 = arith.constant 0 : index
    %c0_20 = arith.constant 0 : index
    %20 = vector.load %arg5[%c0_19, %c0_20] : memref<128x512xbf16, #tpu.memory_space<vmem>>, vector<128x512xbf16>
    %cst_21 = arith.constant dense<0.000000e+00> : vector<8x512xf32>
    %21 = tpu.matmul %19, %20, %cst_21 {dimension_numbers = #tpu.dot_dimension_numbers<[1], [0], [0], [1], [0, 0, 1, 1], [], []>} : vector<8x128xbf16>, vector<128x512xbf16>, vector<8x512xf32> -> vector<8x512xf32>
    %22 = arith.addf %18, %21 : vector<8x512xf32>
    %23 = vector.extract_strided_slice %22 {offsets = [0, 0], sizes = [8, 128], strides = [1, 1]} : vector<8x512xf32> to vector<8x128xf32>
    %cst_22 = arith.constant 5.000000e-01 : f32
    %24 = vector.broadcast %cst_22 : f32 to vector<8x128xf32>
    %25 = arith.mulf %24, %23 : vector<8x128xf32>
    %26 = math.tanh %25 : vector<8x128xf32>
    %cst_23 = arith.constant 1.000000e+00 : f32
    %27 = vector.broadcast %cst_23 : f32 to vector<8x128xf32>
    %28 = arith.addf %26, %27 : vector<8x128xf32>
    %cst_24 = arith.constant 5.000000e-01 : f32
    %29 = vector.broadcast %cst_24 : f32 to vector<8x128xf32>
    %30 = arith.mulf %29, %28 : vector<8x128xf32>
    %31 = vector.extract_strided_slice %22 {offsets = [0, 128], sizes = [8, 128], strides = [1, 1]} : vector<8x512xf32> to vector<8x128xf32>
    %cst_25 = arith.constant 5.000000e-01 : f32
    %32 = vector.broadcast %cst_25 : f32 to vector<8x128xf32>
    %33 = arith.mulf %32, %31 : vector<8x128xf32>
    %34 = math.tanh %33 : vector<8x128xf32>
    %cst_26 = arith.constant 1.000000e+00 : f32
    %35 = vector.broadcast %cst_26 : f32 to vector<8x128xf32>
    %36 = arith.addf %34, %35 : vector<8x128xf32>
    %cst_27 = arith.constant 5.000000e-01 : f32
    %37 = vector.broadcast %cst_27 : f32 to vector<8x128xf32>
    %38 = arith.mulf %37, %36 : vector<8x128xf32>
    %39 = vector.extract_strided_slice %22 {offsets = [0, 256], sizes = [8, 128], strides = [1, 1]} : vector<8x512xf32> to vector<8x128xf32>
    %40 = math.tanh %39 : vector<8x128xf32>
    %41 = vector.extract_strided_slice %22 {offsets = [0, 384], sizes = [8, 128], strides = [1, 1]} : vector<8x512xf32> to vector<8x128xf32>
    %cst_28 = arith.constant 5.000000e-01 : f32
    %42 = vector.broadcast %cst_28 : f32 to vector<8x128xf32>
    %43 = arith.mulf %42, %41 : vector<8x128xf32>
    %44 = math.tanh %43 : vector<8x128xf32>
    %cst_29 = arith.constant 1.000000e+00 : f32
    %45 = vector.broadcast %cst_29 : f32 to vector<8x128xf32>
    %46 = arith.addf %44, %45 : vector<8x128xf32>
    %cst_30 = arith.constant 5.000000e-01 : f32
    %47 = vector.broadcast %cst_30 : f32 to vector<8x128xf32>
    %48 = arith.mulf %47, %46 : vector<8x128xf32>
    %49 = arith.mulf %38, %15 : vector<8x128xf32>
    %50 = arith.mulf %30, %40 : vector<8x128xf32>
    %51 = arith.addf %49, %50 : vector<8x128xf32>
    %52 = math.tanh %51 : vector<8x128xf32>
    %53 = arith.mulf %48, %52 : vector<8x128xf32>
    %54 = arith.addi %12, %c0_i32_16 : i32
    %55 = vector.broadcast %54 : i32 to vector<8x1xi32>
    %56 = arith.cmpi sgt, %13, %55 : vector<8x1xi32>
    %57 = vector.shape_cast %56 : vector<8x1xi1> to vector<8x1xi1>
    %58 = vector.broadcast %57 : vector<8x1xi1> to vector<8x128xi1>
    %59 = arith.select %58, %53, %14 : vector<8x128xi1>, vector<8x128xf32>
    %60 = vector.shape_cast %56 : vector<8x1xi1> to vector<8x1xi1>
    %61 = vector.broadcast %60 : vector<8x1xi1> to vector<8x128xi1>
    %62 = arith.select %61, %51, %15 : vector<8x128xi1>, vector<8x128xf32>
    %c1_i32 = arith.constant 1 : i32
    %63 = arith.index_cast %c1_i32 : i32 to index
    %c0_31 = arith.constant 0 : index
    %c0_32 = arith.constant 0 : index
    %64 = vector.load %arg11[%63, %c0_31, %c0_32] : memref<8x8x512xf32, #tpu.memory_space<vmem>>, vector<1x8x512xf32>
    %65 = vector.shape_cast %64 : vector<1x8x512xf32> to vector<8x512xf32>
    %66 = arith.truncf %59 : vector<8x128xf32> to vector<8x128xbf16>
    %c0_33 = arith.constant 0 : index
    %c0_34 = arith.constant 0 : index
    %67 = vector.load %arg5[%c0_33, %c0_34] : memref<128x512xbf16, #tpu.memory_space<vmem>>, vector<128x512xbf16>
    %cst_35 = arith.constant dense<0.000000e+00> : vector<8x512xf32>
    %68 = tpu.matmul %66, %67, %cst_35 {dimension_numbers = #tpu.dot_dimension_numbers<[1], [0], [0], [1], [0, 0, 1, 1], [], []>} : vector<8x128xbf16>, vector<128x512xbf16>, vector<8x512xf32> -> vector<8x512xf32>
    %69 = arith.addf %65, %68 : vector<8x512xf32>
    %70 = vector.extract_strided_slice %69 {offsets = [0, 0], sizes = [8, 128], strides = [1, 1]} : vector<8x512xf32> to vector<8x128xf32>
    %cst_36 = arith.constant 5.000000e-01 : f32
    %71 = vector.broadcast %cst_36 : f32 to vector<8x128xf32>
    %72 = arith.mulf %71, %70 : vector<8x128xf32>
    %73 = math.tanh %72 : vector<8x128xf32>
    %cst_37 = arith.constant 1.000000e+00 : f32
    %74 = vector.broadcast %cst_37 : f32 to vector<8x128xf32>
    %75 = arith.addf %73, %74 : vector<8x128xf32>
    %cst_38 = arith.constant 5.000000e-01 : f32
    %76 = vector.broadcast %cst_38 : f32 to vector<8x128xf32>
    %77 = arith.mulf %76, %75 : vector<8x128xf32>
    %78 = vector.extract_strided_slice %69 {offsets = [0, 128], sizes = [8, 128], strides = [1, 1]} : vector<8x512xf32> to vector<8x128xf32>
    %cst_39 = arith.constant 5.000000e-01 : f32
    %79 = vector.broadcast %cst_39 : f32 to vector<8x128xf32>
    %80 = arith.mulf %79, %78 : vector<8x128xf32>
    %81 = math.tanh %80 : vector<8x128xf32>
    %cst_40 = arith.constant 1.000000e+00 : f32
    %82 = vector.broadcast %cst_40 : f32 to vector<8x128xf32>
    %83 = arith.addf %81, %82 : vector<8x128xf32>
    %cst_41 = arith.constant 5.000000e-01 : f32
    %84 = vector.broadcast %cst_41 : f32 to vector<8x128xf32>
    %85 = arith.mulf %84, %83 : vector<8x128xf32>
    %86 = vector.extract_strided_slice %69 {offsets = [0, 256], sizes = [8, 128], strides = [1, 1]} : vector<8x512xf32> to vector<8x128xf32>
    %87 = math.tanh %86 : vector<8x128xf32>
    %88 = vector.extract_strided_slice %69 {offsets = [0, 384], sizes = [8, 128], strides = [1, 1]} : vector<8x512xf32> to vector<8x128xf32>
    %cst_42 = arith.constant 5.000000e-01 : f32
    %89 = vector.broadcast %cst_42 : f32 to vector<8x128xf32>
    %90 = arith.mulf %89, %88 : vector<8x128xf32>
    %91 = math.tanh %90 : vector<8x128xf32>
    %cst_43 = arith.constant 1.000000e+00 : f32
    %92 = vector.broadcast %cst_43 : f32 to vector<8x128xf32>
    %93 = arith.addf %91, %92 : vector<8x128xf32>
    %cst_44 = arith.constant 5.000000e-01 : f32
    %94 = vector.broadcast %cst_44 : f32 to vector<8x128xf32>
    %95 = arith.mulf %94, %93 : vector<8x128xf32>
    %96 = arith.mulf %85, %62 : vector<8x128xf32>
    %97 = arith.mulf %77, %87 : vector<8x128xf32>
    %98 = arith.addf %96, %97 : vector<8x128xf32>
    %99 = math.tanh %98 : vector<8x128xf32>
    %100 = arith.mulf %95, %99 : vector<8x128xf32>
    %101 = arith.addi %12, %c1_i32 : i32
    %102 = vector.broadcast %101 : i32 to vector<8x1xi32>
    %103 = arith.cmpi sgt, %13, %102 : vector<8x1xi32>
    %104 = vector.shape_cast %103 : vector<8x1xi1> to vector<8x1xi1>
    %105 = vector.broadcast %104 : vector<8x1xi1> to vector<8x128xi1>
    %106 = arith.select %105, %100, %59 : vector<8x128xi1>, vector<8x128xf32>
    %107 = vector.shape_cast %103 : vector<8x1xi1> to vector<8x1xi1>
    %108 = vector.broadcast %107 : vector<8x1xi1> to vector<8x128xi1>
    %109 = arith.select %108, %98, %62 : vector<8x128xi1>, vector<8x128xf32>
    %c2_i32 = arith.constant 2 : i32
    %110 = arith.index_cast %c2_i32 : i32 to index
    %c0_45 = arith.constant 0 : index
    %c0_46 = arith.constant 0 : index
    %111 = vector.load %arg11[%110, %c0_45, %c0_46] : memref<8x8x512xf32, #tpu.memory_space<vmem>>, vector<1x8x512xf32>
    %112 = vector.shape_cast %111 : vector<1x8x512xf32> to vector<8x512xf32>
    %113 = arith.truncf %106 : vector<8x128xf32> to vector<8x128xbf16>
    %c0_47 = arith.constant 0 : index
    %c0_48 = arith.constant 0 : index
    %114 = vector.load %arg5[%c0_47, %c0_48] : memref<128x512xbf16, #tpu.memory_space<vmem>>, vector<128x512xbf16>
    %cst_49 = arith.constant dense<0.000000e+00> : vector<8x512xf32>
    %115 = tpu.matmul %113, %114, %cst_49 {dimension_numbers = #tpu.dot_dimension_numbers<[1], [0], [0], [1], [0, 0, 1, 1], [], []>} : vector<8x128xbf16>, vector<128x512xbf16>, vector<8x512xf32> -> vector<8x512xf32>
    %116 = arith.addf %112, %115 : vector<8x512xf32>
    %117 = vector.extract_strided_slice %116 {offsets = [0, 0], sizes = [8, 128], strides = [1, 1]} : vector<8x512xf32> to vector<8x128xf32>
    %cst_50 = arith.constant 5.000000e-01 : f32
    %118 = vector.broadcast %cst_50 : f32 to vector<8x128xf32>
    %119 = arith.mulf %118, %117 : vector<8x128xf32>
    %120 = math.tanh %119 : vector<8x128xf32>
    %cst_51 = arith.constant 1.000000e+00 : f32
    %121 = vector.broadcast %cst_51 : f32 to vector<8x128xf32>
    %122 = arith.addf %120, %121 : vector<8x128xf32>
    %cst_52 = arith.constant 5.000000e-01 : f32
    %123 = vector.broadcast %cst_52 : f32 to vector<8x128xf32>
    %124 = arith.mulf %123, %122 : vector<8x128xf32>
    %125 = vector.extract_strided_slice %116 {offsets = [0, 128], sizes = [8, 128], strides = [1, 1]} : vector<8x512xf32> to vector<8x128xf32>
    %cst_53 = arith.constant 5.000000e-01 : f32
    %126 = vector.broadcast %cst_53 : f32 to vector<8x128xf32>
    %127 = arith.mulf %126, %125 : vector<8x128xf32>
    %128 = math.tanh %127 : vector<8x128xf32>
    %cst_54 = arith.constant 1.000000e+00 : f32
    %129 = vector.broadcast %cst_54 : f32 to vector<8x128xf32>
    %130 = arith.addf %128, %129 : vector<8x128xf32>
    %cst_55 = arith.constant 5.000000e-01 : f32
    %131 = vector.broadcast %cst_55 : f32 to vector<8x128xf32>
    %132 = arith.mulf %131, %130 : vector<8x128xf32>
    %133 = vector.extract_strided_slice %116 {offsets = [0, 256], sizes = [8, 128], strides = [1, 1]} : vector<8x512xf32> to vector<8x128xf32>
    %134 = math.tanh %133 : vector<8x128xf32>
    %135 = vector.extract_strided_slice %116 {offsets = [0, 384], sizes = [8, 128], strides = [1, 1]} : vector<8x512xf32> to vector<8x128xf32>
    %cst_56 = arith.constant 5.000000e-01 : f32
    %136 = vector.broadcast %cst_56 : f32 to vector<8x128xf32>
    %137 = arith.mulf %136, %135 : vector<8x128xf32>
    %138 = math.tanh %137 : vector<8x128xf32>
    %cst_57 = arith.constant 1.000000e+00 : f32
    %139 = vector.broadcast %cst_57 : f32 to vector<8x128xf32>
    %140 = arith.addf %138, %139 : vector<8x128xf32>
    %cst_58 = arith.constant 5.000000e-01 : f32
    %141 = vector.broadcast %cst_58 : f32 to vector<8x128xf32>
    %142 = arith.mulf %141, %140 : vector<8x128xf32>
    %143 = arith.mulf %132, %109 : vector<8x128xf32>
    %144 = arith.mulf %124, %134 : vector<8x128xf32>
    %145 = arith.addf %143, %144 : vector<8x128xf32>
    %146 = math.tanh %145 : vector<8x128xf32>
    %147 = arith.mulf %142, %146 : vector<8x128xf32>
    %148 = arith.addi %12, %c2_i32 : i32
    %149 = vector.broadcast %148 : i32 to vector<8x1xi32>
    %150 = arith.cmpi sgt, %13, %149 : vector<8x1xi32>
    %151 = vector.shape_cast %150 : vector<8x1xi1> to vector<8x1xi1>
    %152 = vector.broadcast %151 : vector<8x1xi1> to vector<8x128xi1>
    %153 = arith.select %152, %147, %106 : vector<8x128xi1>, vector<8x128xf32>
    %154 = vector.shape_cast %150 : vector<8x1xi1> to vector<8x1xi1>
    %155 = vector.broadcast %154 : vector<8x1xi1> to vector<8x128xi1>
    %156 = arith.select %155, %145, %109 : vector<8x128xi1>, vector<8x128xf32>
    %c3_i32 = arith.constant 3 : i32
    %157 = arith.index_cast %c3_i32 : i32 to index
    %c0_59 = arith.constant 0 : index
    %c0_60 = arith.constant 0 : index
    %158 = vector.load %arg11[%157, %c0_59, %c0_60] : memref<8x8x512xf32, #tpu.memory_space<vmem>>, vector<1x8x512xf32>
    %159 = vector.shape_cast %158 : vector<1x8x512xf32> to vector<8x512xf32>
    %160 = arith.truncf %153 : vector<8x128xf32> to vector<8x128xbf16>
    %c0_61 = arith.constant 0 : index
    %c0_62 = arith.constant 0 : index
    %161 = vector.load %arg5[%c0_61, %c0_62] : memref<128x512xbf16, #tpu.memory_space<vmem>>, vector<128x512xbf16>
    %cst_63 = arith.constant dense<0.000000e+00> : vector<8x512xf32>
    %162 = tpu.matmul %160, %161, %cst_63 {dimension_numbers = #tpu.dot_dimension_numbers<[1], [0], [0], [1], [0, 0, 1, 1], [], []>} : vector<8x128xbf16>, vector<128x512xbf16>, vector<8x512xf32> -> vector<8x512xf32>
    %163 = arith.addf %159, %162 : vector<8x512xf32>
    %164 = vector.extract_strided_slice %163 {offsets = [0, 0], sizes = [8, 128], strides = [1, 1]} : vector<8x512xf32> to vector<8x128xf32>
    %cst_64 = arith.constant 5.000000e-01 : f32
    %165 = vector.broadcast %cst_64 : f32 to vector<8x128xf32>
    %166 = arith.mulf %165, %164 : vector<8x128xf32>
    %167 = math.tanh %166 : vector<8x128xf32>
    %cst_65 = arith.constant 1.000000e+00 : f32
    %168 = vector.broadcast %cst_65 : f32 to vector<8x128xf32>
    %169 = arith.addf %167, %168 : vector<8x128xf32>
    %cst_66 = arith.constant 5.000000e-01 : f32
    %170 = vector.broadcast %cst_66 : f32 to vector<8x128xf32>
    %171 = arith.mulf %170, %169 : vector<8x128xf32>
    %172 = vector.extract_strided_slice %163 {offsets = [0, 128], sizes = [8, 128], strides = [1, 1]} : vector<8x512xf32> to vector<8x128xf32>
    %cst_67 = arith.constant 5.000000e-01 : f32
    %173 = vector.broadcast %cst_67 : f32 to vector<8x128xf32>
    %174 = arith.mulf %173, %172 : vector<8x128xf32>
    %175 = math.tanh %174 : vector<8x128xf32>
    %cst_68 = arith.constant 1.000000e+00 : f32
    %176 = vector.broadcast %cst_68 : f32 to vector<8x128xf32>
    %177 = arith.addf %175, %176 : vector<8x128xf32>
    %cst_69 = arith.constant 5.000000e-01 : f32
    %178 = vector.broadcast %cst_69 : f32 to vector<8x128xf32>
    %179 = arith.mulf %178, %177 : vector<8x128xf32>
    %180 = vector.extract_strided_slice %163 {offsets = [0, 256], sizes = [8, 128], strides = [1, 1]} : vector<8x512xf32> to vector<8x128xf32>
    %181 = math.tanh %180 : vector<8x128xf32>
    %182 = vector.extract_strided_slice %163 {offsets = [0, 384], sizes = [8, 128], strides = [1, 1]} : vector<8x512xf32> to vector<8x128xf32>
    %cst_70 = arith.constant 5.000000e-01 : f32
    %183 = vector.broadcast %cst_70 : f32 to vector<8x128xf32>
    %184 = arith.mulf %183, %182 : vector<8x128xf32>
    %185 = math.tanh %184 : vector<8x128xf32>
    %cst_71 = arith.constant 1.000000e+00 : f32
    %186 = vector.broadcast %cst_71 : f32 to vector<8x128xf32>
    %187 = arith.addf %185, %186 : vector<8x128xf32>
    %cst_72 = arith.constant 5.000000e-01 : f32
    %188 = vector.broadcast %cst_72 : f32 to vector<8x128xf32>
    %189 = arith.mulf %188, %187 : vector<8x128xf32>
    %190 = arith.mulf %179, %156 : vector<8x128xf32>
    %191 = arith.mulf %171, %181 : vector<8x128xf32>
    %192 = arith.addf %190, %191 : vector<8x128xf32>
    %193 = math.tanh %192 : vector<8x128xf32>
    %194 = arith.mulf %189, %193 : vector<8x128xf32>
    %195 = arith.addi %12, %c3_i32 : i32
    %196 = vector.broadcast %195 : i32 to vector<8x1xi32>
    %197 = arith.cmpi sgt, %13, %196 : vector<8x1xi32>
    %198 = vector.shape_cast %197 : vector<8x1xi1> to vector<8x1xi1>
    %199 = vector.broadcast %198 : vector<8x1xi1> to vector<8x128xi1>
    %200 = arith.select %199, %194, %153 : vector<8x128xi1>, vector<8x128xf32>
    %201 = vector.shape_cast %197 : vector<8x1xi1> to vector<8x1xi1>
    %202 = vector.broadcast %201 : vector<8x1xi1> to vector<8x128xi1>
    %203 = arith.select %202, %192, %156 : vector<8x128xi1>, vector<8x128xf32>
    %c4_i32 = arith.constant 4 : i32
    %204 = arith.index_cast %c4_i32 : i32 to index
    %c0_73 = arith.constant 0 : index
    %c0_74 = arith.constant 0 : index
    %205 = vector.load %arg11[%204, %c0_73, %c0_74] : memref<8x8x512xf32, #tpu.memory_space<vmem>>, vector<1x8x512xf32>
    %206 = vector.shape_cast %205 : vector<1x8x512xf32> to vector<8x512xf32>
    %207 = arith.truncf %200 : vector<8x128xf32> to vector<8x128xbf16>
    %c0_75 = arith.constant 0 : index
    %c0_76 = arith.constant 0 : index
    %208 = vector.load %arg5[%c0_75, %c0_76] : memref<128x512xbf16, #tpu.memory_space<vmem>>, vector<128x512xbf16>
    %cst_77 = arith.constant dense<0.000000e+00> : vector<8x512xf32>
    %209 = tpu.matmul %207, %208, %cst_77 {dimension_numbers = #tpu.dot_dimension_numbers<[1], [0], [0], [1], [0, 0, 1, 1], [], []>} : vector<8x128xbf16>, vector<128x512xbf16>, vector<8x512xf32> -> vector<8x512xf32>
    %210 = arith.addf %206, %209 : vector<8x512xf32>
    %211 = vector.extract_strided_slice %210 {offsets = [0, 0], sizes = [8, 128], strides = [1, 1]} : vector<8x512xf32> to vector<8x128xf32>
    %cst_78 = arith.constant 5.000000e-01 : f32
    %212 = vector.broadcast %cst_78 : f32 to vector<8x128xf32>
    %213 = arith.mulf %212, %211 : vector<8x128xf32>
    %214 = math.tanh %213 : vector<8x128xf32>
    %cst_79 = arith.constant 1.000000e+00 : f32
    %215 = vector.broadcast %cst_79 : f32 to vector<8x128xf32>
    %216 = arith.addf %214, %215 : vector<8x128xf32>
    %cst_80 = arith.constant 5.000000e-01 : f32
    %217 = vector.broadcast %cst_80 : f32 to vector<8x128xf32>
    %218 = arith.mulf %217, %216 : vector<8x128xf32>
    %219 = vector.extract_strided_slice %210 {offsets = [0, 128], sizes = [8, 128], strides = [1, 1]} : vector<8x512xf32> to vector<8x128xf32>
    %cst_81 = arith.constant 5.000000e-01 : f32
    %220 = vector.broadcast %cst_81 : f32 to vector<8x128xf32>
    %221 = arith.mulf %220, %219 : vector<8x128xf32>
    %222 = math.tanh %221 : vector<8x128xf32>
    %cst_82 = arith.constant 1.000000e+00 : f32
    %223 = vector.broadcast %cst_82 : f32 to vector<8x128xf32>
    %224 = arith.addf %222, %223 : vector<8x128xf32>
    %cst_83 = arith.constant 5.000000e-01 : f32
    %225 = vector.broadcast %cst_83 : f32 to vector<8x128xf32>
    %226 = arith.mulf %225, %224 : vector<8x128xf32>
    %227 = vector.extract_strided_slice %210 {offsets = [0, 256], sizes = [8, 128], strides = [1, 1]} : vector<8x512xf32> to vector<8x128xf32>
    %228 = math.tanh %227 : vector<8x128xf32>
    %229 = vector.extract_strided_slice %210 {offsets = [0, 384], sizes = [8, 128], strides = [1, 1]} : vector<8x512xf32> to vector<8x128xf32>
    %cst_84 = arith.constant 5.000000e-01 : f32
    %230 = vector.broadcast %cst_84 : f32 to vector<8x128xf32>
    %231 = arith.mulf %230, %229 : vector<8x128xf32>
    %232 = math.tanh %231 : vector<8x128xf32>
    %cst_85 = arith.constant 1.000000e+00 : f32
    %233 = vector.broadcast %cst_85 : f32 to vector<8x128xf32>
    %234 = arith.addf %232, %233 : vector<8x128xf32>
    %cst_86 = arith.constant 5.000000e-01 : f32
    %235 = vector.broadcast %cst_86 : f32 to vector<8x128xf32>
    %236 = arith.mulf %235, %234 : vector<8x128xf32>
    %237 = arith.mulf %226, %203 : vector<8x128xf32>
    %238 = arith.mulf %218, %228 : vector<8x128xf32>
    %239 = arith.addf %237, %238 : vector<8x128xf32>
    %240 = math.tanh %239 : vector<8x128xf32>
    %241 = arith.mulf %236, %240 : vector<8x128xf32>
    %242 = arith.addi %12, %c4_i32 : i32
    %243 = vector.broadcast %242 : i32 to vector<8x1xi32>
    %244 = arith.cmpi sgt, %13, %243 : vector<8x1xi32>
    %245 = vector.shape_cast %244 : vector<8x1xi1> to vector<8x1xi1>
    %246 = vector.broadcast %245 : vector<8x1xi1> to vector<8x128xi1>
    %247 = arith.select %246, %241, %200 : vector<8x128xi1>, vector<8x128xf32>
    %248 = vector.shape_cast %244 : vector<8x1xi1> to vector<8x1xi1>
    %249 = vector.broadcast %248 : vector<8x1xi1> to vector<8x128xi1>
    %250 = arith.select %249, %239, %203 : vector<8x128xi1>, vector<8x128xf32>
    %c5_i32 = arith.constant 5 : i32
    %251 = arith.index_cast %c5_i32 : i32 to index
    %c0_87 = arith.constant 0 : index
    %c0_88 = arith.constant 0 : index
    %252 = vector.load %arg11[%251, %c0_87, %c0_88] : memref<8x8x512xf32, #tpu.memory_space<vmem>>, vector<1x8x512xf32>
    %253 = vector.shape_cast %252 : vector<1x8x512xf32> to vector<8x512xf32>
    %254 = arith.truncf %247 : vector<8x128xf32> to vector<8x128xbf16>
    %c0_89 = arith.constant 0 : index
    %c0_90 = arith.constant 0 : index
    %255 = vector.load %arg5[%c0_89, %c0_90] : memref<128x512xbf16, #tpu.memory_space<vmem>>, vector<128x512xbf16>
    %cst_91 = arith.constant dense<0.000000e+00> : vector<8x512xf32>
    %256 = tpu.matmul %254, %255, %cst_91 {dimension_numbers = #tpu.dot_dimension_numbers<[1], [0], [0], [1], [0, 0, 1, 1], [], []>} : vector<8x128xbf16>, vector<128x512xbf16>, vector<8x512xf32> -> vector<8x512xf32>
    %257 = arith.addf %253, %256 : vector<8x512xf32>
    %258 = vector.extract_strided_slice %257 {offsets = [0, 0], sizes = [8, 128], strides = [1, 1]} : vector<8x512xf32> to vector<8x128xf32>
    %cst_92 = arith.constant 5.000000e-01 : f32
    %259 = vector.broadcast %cst_92 : f32 to vector<8x128xf32>
    %260 = arith.mulf %259, %258 : vector<8x128xf32>
    %261 = math.tanh %260 : vector<8x128xf32>
    %cst_93 = arith.constant 1.000000e+00 : f32
    %262 = vector.broadcast %cst_93 : f32 to vector<8x128xf32>
    %263 = arith.addf %261, %262 : vector<8x128xf32>
    %cst_94 = arith.constant 5.000000e-01 : f32
    %264 = vector.broadcast %cst_94 : f32 to vector<8x128xf32>
    %265 = arith.mulf %264, %263 : vector<8x128xf32>
    %266 = vector.extract_strided_slice %257 {offsets = [0, 128], sizes = [8, 128], strides = [1, 1]} : vector<8x512xf32> to vector<8x128xf32>
    %cst_95 = arith.constant 5.000000e-01 : f32
    %267 = vector.broadcast %cst_95 : f32 to vector<8x128xf32>
    %268 = arith.mulf %267, %266 : vector<8x128xf32>
    %269 = math.tanh %268 : vector<8x128xf32>
    %cst_96 = arith.constant 1.000000e+00 : f32
    %270 = vector.broadcast %cst_96 : f32 to vector<8x128xf32>
    %271 = arith.addf %269, %270 : vector<8x128xf32>
    %cst_97 = arith.constant 5.000000e-01 : f32
    %272 = vector.broadcast %cst_97 : f32 to vector<8x128xf32>
    %273 = arith.mulf %272, %271 : vector<8x128xf32>
    %274 = vector.extract_strided_slice %257 {offsets = [0, 256], sizes = [8, 128], strides = [1, 1]} : vector<8x512xf32> to vector<8x128xf32>
    %275 = math.tanh %274 : vector<8x128xf32>
    %276 = vector.extract_strided_slice %257 {offsets = [0, 384], sizes = [8, 128], strides = [1, 1]} : vector<8x512xf32> to vector<8x128xf32>
    %cst_98 = arith.constant 5.000000e-01 : f32
    %277 = vector.broadcast %cst_98 : f32 to vector<8x128xf32>
    %278 = arith.mulf %277, %276 : vector<8x128xf32>
    %279 = math.tanh %278 : vector<8x128xf32>
    %cst_99 = arith.constant 1.000000e+00 : f32
    %280 = vector.broadcast %cst_99 : f32 to vector<8x128xf32>
    %281 = arith.addf %279, %280 : vector<8x128xf32>
    %cst_100 = arith.constant 5.000000e-01 : f32
    %282 = vector.broadcast %cst_100 : f32 to vector<8x128xf32>
    %283 = arith.mulf %282, %281 : vector<8x128xf32>
    %284 = arith.mulf %273, %250 : vector<8x128xf32>
    %285 = arith.mulf %265, %275 : vector<8x128xf32>
    %286 = arith.addf %284, %285 : vector<8x128xf32>
    %287 = math.tanh %286 : vector<8x128xf32>
    %288 = arith.mulf %283, %287 : vector<8x128xf32>
    %289 = arith.addi %12, %c5_i32 : i32
    %290 = vector.broadcast %289 : i32 to vector<8x1xi32>
    %291 = arith.cmpi sgt, %13, %290 : vector<8x1xi32>
    %292 = vector.shape_cast %291 : vector<8x1xi1> to vector<8x1xi1>
    %293 = vector.broadcast %292 : vector<8x1xi1> to vector<8x128xi1>
    %294 = arith.select %293, %288, %247 : vector<8x128xi1>, vector<8x128xf32>
    %295 = vector.shape_cast %291 : vector<8x1xi1> to vector<8x1xi1>
    %296 = vector.broadcast %295 : vector<8x1xi1> to vector<8x128xi1>
    %297 = arith.select %296, %286, %250 : vector<8x128xi1>, vector<8x128xf32>
    %c6_i32 = arith.constant 6 : i32
    %298 = arith.index_cast %c6_i32 : i32 to index
    %c0_101 = arith.constant 0 : index
    %c0_102 = arith.constant 0 : index
    %299 = vector.load %arg11[%298, %c0_101, %c0_102] : memref<8x8x512xf32, #tpu.memory_space<vmem>>, vector<1x8x512xf32>
    %300 = vector.shape_cast %299 : vector<1x8x512xf32> to vector<8x512xf32>
    %301 = arith.truncf %294 : vector<8x128xf32> to vector<8x128xbf16>
    %c0_103 = arith.constant 0 : index
    %c0_104 = arith.constant 0 : index
    %302 = vector.load %arg5[%c0_103, %c0_104] : memref<128x512xbf16, #tpu.memory_space<vmem>>, vector<128x512xbf16>
    %cst_105 = arith.constant dense<0.000000e+00> : vector<8x512xf32>
    %303 = tpu.matmul %301, %302, %cst_105 {dimension_numbers = #tpu.dot_dimension_numbers<[1], [0], [0], [1], [0, 0, 1, 1], [], []>} : vector<8x128xbf16>, vector<128x512xbf16>, vector<8x512xf32> -> vector<8x512xf32>
    %304 = arith.addf %300, %303 : vector<8x512xf32>
    %305 = vector.extract_strided_slice %304 {offsets = [0, 0], sizes = [8, 128], strides = [1, 1]} : vector<8x512xf32> to vector<8x128xf32>
    %cst_106 = arith.constant 5.000000e-01 : f32
    %306 = vector.broadcast %cst_106 : f32 to vector<8x128xf32>
    %307 = arith.mulf %306, %305 : vector<8x128xf32>
    %308 = math.tanh %307 : vector<8x128xf32>
    %cst_107 = arith.constant 1.000000e+00 : f32
    %309 = vector.broadcast %cst_107 : f32 to vector<8x128xf32>
    %310 = arith.addf %308, %309 : vector<8x128xf32>
    %cst_108 = arith.constant 5.000000e-01 : f32
    %311 = vector.broadcast %cst_108 : f32 to vector<8x128xf32>
    %312 = arith.mulf %311, %310 : vector<8x128xf32>
    %313 = vector.extract_strided_slice %304 {offsets = [0, 128], sizes = [8, 128], strides = [1, 1]} : vector<8x512xf32> to vector<8x128xf32>
    %cst_109 = arith.constant 5.000000e-01 : f32
    %314 = vector.broadcast %cst_109 : f32 to vector<8x128xf32>
    %315 = arith.mulf %314, %313 : vector<8x128xf32>
    %316 = math.tanh %315 : vector<8x128xf32>
    %cst_110 = arith.constant 1.000000e+00 : f32
    %317 = vector.broadcast %cst_110 : f32 to vector<8x128xf32>
    %318 = arith.addf %316, %317 : vector<8x128xf32>
    %cst_111 = arith.constant 5.000000e-01 : f32
    %319 = vector.broadcast %cst_111 : f32 to vector<8x128xf32>
    %320 = arith.mulf %319, %318 : vector<8x128xf32>
    %321 = vector.extract_strided_slice %304 {offsets = [0, 256], sizes = [8, 128], strides = [1, 1]} : vector<8x512xf32> to vector<8x128xf32>
    %322 = math.tanh %321 : vector<8x128xf32>
    %323 = vector.extract_strided_slice %304 {offsets = [0, 384], sizes = [8, 128], strides = [1, 1]} : vector<8x512xf32> to vector<8x128xf32>
    %cst_112 = arith.constant 5.000000e-01 : f32
    %324 = vector.broadcast %cst_112 : f32 to vector<8x128xf32>
    %325 = arith.mulf %324, %323 : vector<8x128xf32>
    %326 = math.tanh %325 : vector<8x128xf32>
    %cst_113 = arith.constant 1.000000e+00 : f32
    %327 = vector.broadcast %cst_113 : f32 to vector<8x128xf32>
    %328 = arith.addf %326, %327 : vector<8x128xf32>
    %cst_114 = arith.constant 5.000000e-01 : f32
    %329 = vector.broadcast %cst_114 : f32 to vector<8x128xf32>
    %330 = arith.mulf %329, %328 : vector<8x128xf32>
    %331 = arith.mulf %320, %297 : vector<8x128xf32>
    %332 = arith.mulf %312, %322 : vector<8x128xf32>
    %333 = arith.addf %331, %332 : vector<8x128xf32>
    %334 = math.tanh %333 : vector<8x128xf32>
    %335 = arith.mulf %330, %334 : vector<8x128xf32>
    %336 = arith.addi %12, %c6_i32 : i32
    %337 = vector.broadcast %336 : i32 to vector<8x1xi32>
    %338 = arith.cmpi sgt, %13, %337 : vector<8x1xi32>
    %339 = vector.shape_cast %338 : vector<8x1xi1> to vector<8x1xi1>
    %340 = vector.broadcast %339 : vector<8x1xi1> to vector<8x128xi1>
    %341 = arith.select %340, %335, %294 : vector<8x128xi1>, vector<8x128xf32>
    %342 = vector.shape_cast %338 : vector<8x1xi1> to vector<8x1xi1>
    %343 = vector.broadcast %342 : vector<8x1xi1> to vector<8x128xi1>
    %344 = arith.select %343, %333, %297 : vector<8x128xi1>, vector<8x128xf32>
    %c7_i32 = arith.constant 7 : i32
    %345 = arith.index_cast %c7_i32 : i32 to index
    %c0_115 = arith.constant 0 : index
    %c0_116 = arith.constant 0 : index
    %346 = vector.load %arg11[%345, %c0_115, %c0_116] : memref<8x8x512xf32, #tpu.memory_space<vmem>>, vector<1x8x512xf32>
    %347 = vector.shape_cast %346 : vector<1x8x512xf32> to vector<8x512xf32>
    %348 = arith.truncf %341 : vector<8x128xf32> to vector<8x128xbf16>
    %c0_117 = arith.constant 0 : index
    %c0_118 = arith.constant 0 : index
    %349 = vector.load %arg5[%c0_117, %c0_118] : memref<128x512xbf16, #tpu.memory_space<vmem>>, vector<128x512xbf16>
    %cst_119 = arith.constant dense<0.000000e+00> : vector<8x512xf32>
    %350 = tpu.matmul %348, %349, %cst_119 {dimension_numbers = #tpu.dot_dimension_numbers<[1], [0], [0], [1], [0, 0, 1, 1], [], []>} : vector<8x128xbf16>, vector<128x512xbf16>, vector<8x512xf32> -> vector<8x512xf32>
    %351 = arith.addf %347, %350 : vector<8x512xf32>
    %352 = vector.extract_strided_slice %351 {offsets = [0, 0], sizes = [8, 128], strides = [1, 1]} : vector<8x512xf32> to vector<8x128xf32>
    %cst_120 = arith.constant 5.000000e-01 : f32
    %353 = vector.broadcast %cst_120 : f32 to vector<8x128xf32>
    %354 = arith.mulf %353, %352 : vector<8x128xf32>
    %355 = math.tanh %354 : vector<8x128xf32>
    %cst_121 = arith.constant 1.000000e+00 : f32
    %356 = vector.broadcast %cst_121 : f32 to vector<8x128xf32>
    %357 = arith.addf %355, %356 : vector<8x128xf32>
    %cst_122 = arith.constant 5.000000e-01 : f32
    %358 = vector.broadcast %cst_122 : f32 to vector<8x128xf32>
    %359 = arith.mulf %358, %357 : vector<8x128xf32>
    %360 = vector.extract_strided_slice %351 {offsets = [0, 128], sizes = [8, 128], strides = [1, 1]} : vector<8x512xf32> to vector<8x128xf32>
    %cst_123 = arith.constant 5.000000e-01 : f32
    %361 = vector.broadcast %cst_123 : f32 to vector<8x128xf32>
    %362 = arith.mulf %361, %360 : vector<8x128xf32>
    %363 = math.tanh %362 : vector<8x128xf32>
    %cst_124 = arith.constant 1.000000e+00 : f32
    %364 = vector.broadcast %cst_124 : f32 to vector<8x128xf32>
    %365 = arith.addf %363, %364 : vector<8x128xf32>
    %cst_125 = arith.constant 5.000000e-01 : f32
    %366 = vector.broadcast %cst_125 : f32 to vector<8x128xf32>
    %367 = arith.mulf %366, %365 : vector<8x128xf32>
    %368 = vector.extract_strided_slice %351 {offsets = [0, 256], sizes = [8, 128], strides = [1, 1]} : vector<8x512xf32> to vector<8x128xf32>
    %369 = math.tanh %368 : vector<8x128xf32>
    %370 = vector.extract_strided_slice %351 {offsets = [0, 384], sizes = [8, 128], strides = [1, 1]} : vector<8x512xf32> to vector<8x128xf32>
    %cst_126 = arith.constant 5.000000e-01 : f32
    %371 = vector.broadcast %cst_126 : f32 to vector<8x128xf32>
    %372 = arith.mulf %371, %370 : vector<8x128xf32>
    %373 = math.tanh %372 : vector<8x128xf32>
    %cst_127 = arith.constant 1.000000e+00 : f32
    %374 = vector.broadcast %cst_127 : f32 to vector<8x128xf32>
    %375 = arith.addf %373, %374 : vector<8x128xf32>
    %cst_128 = arith.constant 5.000000e-01 : f32
    %376 = vector.broadcast %cst_128 : f32 to vector<8x128xf32>
    %377 = arith.mulf %376, %375 : vector<8x128xf32>
    %378 = arith.mulf %367, %344 : vector<8x128xf32>
    %379 = arith.mulf %359, %369 : vector<8x128xf32>
    %380 = arith.addf %378, %379 : vector<8x128xf32>
    %381 = math.tanh %380 : vector<8x128xf32>
    %382 = arith.mulf %377, %381 : vector<8x128xf32>
    %383 = arith.addi %12, %c7_i32 : i32
    %384 = vector.broadcast %383 : i32 to vector<8x1xi32>
    %385 = arith.cmpi sgt, %13, %384 : vector<8x1xi32>
    %386 = vector.shape_cast %385 : vector<8x1xi1> to vector<8x1xi1>
    %387 = vector.broadcast %386 : vector<8x1xi1> to vector<8x128xi1>
    %388 = arith.select %387, %382, %341 : vector<8x128xi1>, vector<8x128xf32>
    %389 = vector.shape_cast %385 : vector<8x1xi1> to vector<8x1xi1>
    %390 = vector.broadcast %389 : vector<8x1xi1> to vector<8x128xi1>
    %391 = arith.select %390, %380, %344 : vector<8x128xi1>, vector<8x128xf32>
    %c8_i32_129 = arith.constant 8 : i32
    %c0_130 = arith.constant 0 : index
    %c0_131 = arith.constant 0 : index
    %392 = vector.load %arg12[%c0_130, %c0_131] : memref<8x128xf32, #tpu.memory_space<vmem>>, vector<8x128xf32>
    tpu.vector_store %arg12[%c0_130, %c0_131], %388 {strides = array<i32>} : memref<8x128xf32, #tpu.memory_space<vmem>>, vector<8x128xf32>,
    %c0_132 = arith.constant 0 : index
    %c0_133 = arith.constant 0 : index
    %393 = vector.load %arg13[%c0_132, %c0_133] : memref<8x128xf32, #tpu.memory_space<vmem>>, vector<8x128xf32>
    tpu.vector_store %arg13[%c0_132, %c0_133], %391 {strides = array<i32>} : memref<8x128xf32, #tpu.memory_space<vmem>>, vector<8x128xf32>,
    %c0_i32_134 = arith.constant 0 : i32
    %394 = arith.cmpi eq, %arg1, %c0_i32_134 : i32
    %395 = arith.extui %394 : i1 to i32
    %c0_i32_135 = arith.constant 0 : i32
    %396 = arith.cmpi ne, %395, %c0_i32_135 : i32
    scf.if %396 {
      %c0_136 = arith.constant 0 : index
      %c0_137 = arith.constant 0 : index
      %397 = vector.load %arg12[%c0_136, %c0_137] : memref<8x128xf32, #tpu.memory_space<vmem>>, vector<8x128xf32>
      %c0_138 = arith.constant 0 : index
      %c0_139 = arith.constant 0 : index
      %398 = vector.load %arg9[%c0_138, %c0_139] : memref<8x128xf32, #tpu.memory_space<vmem>>, vector<8x128xf32>
      tpu.vector_store %arg9[%c0_138, %c0_139], %397 {strides = array<i32>} : memref<8x128xf32, #tpu.memory_space<vmem>>, vector<8x128xf32>,
      %c0_140 = arith.constant 0 : index
      %c0_141 = arith.constant 0 : index
      %399 = vector.load %arg13[%c0_140, %c0_141] : memref<8x128xf32, #tpu.memory_space<vmem>>, vector<8x128xf32>
      %c0_142 = arith.constant 0 : index
      %c0_143 = arith.constant 0 : index
      %400 = vector.load %arg10[%c0_142, %c0_143] : memref<8x128xf32, #tpu.memory_space<vmem>>, vector<8x128xf32>
      tpu.vector_store %arg10[%c0_142, %c0_143], %399 {strides = array<i32>} : memref<8x128xf32, #tpu.memory_space<vmem>>, vector<8x128xf32>,
    } else {
    }
    return
  }
  func.func @transform_0(%arg0: i32, %arg1: i32) -> (i32, i32, i32) {
    %c0_i32 = arith.constant 0 : i32
    %c0_i32_0 = arith.constant 0 : i32
    return %arg1, %arg0, %c0_i32 : i32, i32, i32
  }
  func.func @transform_1(%arg0: i32, %arg1: i32) -> (i32, i32) {
    %c0_i32 = arith.constant 0 : i32
    %c0_i32_0 = arith.constant 0 : i32
    return %arg0, %c0_i32 : i32, i32
  }
  func.func @transform_2(%arg0: i32, %arg1: i32) -> (i32, i32) {
    %c0_i32 = arith.constant 0 : i32
    %c0_i32_0 = arith.constant 0 : i32
    %c0_i32_1 = arith.constant 0 : i32
    return %c0_i32, %c0_i32_0 : i32, i32
  }
  func.func @transform_3(%arg0: i32, %arg1: i32) -> (i32, i32) {
    %c0_i32 = arith.constant 0 : i32
    %c0_i32_0 = arith.constant 0 : i32
    %c0_i32_1 = arith.constant 0 : i32
    return %c0_i32, %c0_i32_0 : i32, i32
  }
  func.func @transform_4(%arg0: i32, %arg1: i32) -> (i32, i32) {
    %c0_i32 = arith.constant 0 : i32
    %c0_i32_0 = arith.constant 0 : i32
    %c0_i32_1 = arith.constant 0 : i32
    return %c0_i32, %c0_i32_0 : i32, i32
  }
  func.func @transform_5(%arg0: i32, %arg1: i32) -> (i32, i32) {
    %c0_i32 = arith.constant 0 : i32
    %c0_i32_0 = arith.constant 0 : i32
    return %arg0, %c0_i32 : i32, i32
  }
  func.func @transform_6(%arg0: i32, %arg1: i32) -> (i32, i32) {
    %c0_i32 = arith.constant 0 : i32
    %c0_i32_0 = arith.constant 0 : i32
    return %arg0, %c0_i32 : i32, i32
  }
  func.func @transform_7(%arg0: i32, %arg1: i32) -> (i32, i32) {
    %c0_i32 = arith.constant 0 : i32
    %c0_i32_0 = arith.constant 0 : i32
    return %arg0, %c0_i32 : i32, i32
  }
  func.func @transform_8(%arg0: i32, %arg1: i32) -> (i32, i32) {
    %c0_i32 = arith.constant 0 : i32
    %c0_i32_0 = arith.constant 0 : i32
    return %arg0, %c0_i32 : i32, i32
  }
}

module attributes {stable_mosaic.version = 11 : i64} {
  func.func @kernel(%arg0: i32, %arg1: i32, %arg2: memref<7x8x128xbf16, #tpu.memory_space<vmem>>, %arg3: memref<8x1xi32, #tpu.memory_space<vmem>>, %arg4: memref<128x512xbf16, #tpu.memory_space<vmem>>, %arg5: memref<128x512xbf16, #tpu.memory_space<vmem>>, %arg6: memref<1x512xf32, #tpu.memory_space<vmem>>, %arg7: memref<8x128xf32, #tpu.memory_space<vmem>>, %arg8: memref<8x128xf32, #tpu.memory_space<vmem>>, %arg9: memref<7x8x128xf32, #tpu.memory_space<vmem>>, %arg10: memref<8x128xf32, #tpu.memory_space<vmem>>, %arg11: memref<8x128xf32, #tpu.memory_space<vmem>>, %arg12: memref<7x8x512xf32, #tpu.memory_space<vmem>>, %arg13: memref<8x128xf32, #tpu.memory_space<vmem>>, %arg14: memref<8x128xf32, #tpu.memory_space<vmem>>) attributes {dimension_semantics = [#tpu.dimension_semantics<parallel>, #tpu.dimension_semantics<arbitrary>], iteration_bounds = array<i64: 1, 1>, scalar_prefetch = 0 : i64, scratch_operands = 3 : i64, tpu.core_type = #tpu.core_type<tc>, window_params = [{transform_indices = @transform_0, window_bounds = array<i64: 7, 8, 128>}, {transform_indices = @transform_1, window_bounds = array<i64: 8, 1>}, {pipeline_mode = #tpu.pipeline_mode<synchronous>, transform_indices = @transform_2, window_bounds = array<i64: 128, 512>}, {pipeline_mode = #tpu.pipeline_mode<synchronous>, transform_indices = @transform_3, window_bounds = array<i64: 128, 512>}, {pipeline_mode = #tpu.pipeline_mode<synchronous>, transform_indices = @transform_4, window_bounds = array<i64: 1, 512>}, {transform_indices = @transform_5, window_bounds = array<i64: 8, 128>}, {transform_indices = @transform_6, window_bounds = array<i64: 8, 128>}, {transform_indices = @transform_7, window_bounds = array<i64: 7, 8, 128>}, {transform_indices = @transform_8, window_bounds = array<i64: 8, 128>}, {transform_indices = @transform_9, window_bounds = array<i64: 8, 128>}]} {
    %c0_i32 = arith.constant 0 : i32
    %0 = arith.cmpi eq, %arg1, %c0_i32 : i32
    %1 = arith.extui %0 : i1 to i32
    %c0_i32_0 = arith.constant 0 : i32
    %2 = arith.cmpi ne, %1, %c0_i32_0 : i32
    scf.if %2 {
      %c0_143 = arith.constant 0 : index
      %c0_144 = arith.constant 0 : index
      %406 = vector.load %arg7[%c0_143, %c0_144] : memref<8x128xf32, #tpu.memory_space<vmem>>, vector<8x128xf32>
      %c0_145 = arith.constant 0 : index
      %c0_146 = arith.constant 0 : index
      %407 = vector.load %arg13[%c0_145, %c0_146] : memref<8x128xf32, #tpu.memory_space<vmem>>, vector<8x128xf32>
      tpu.vector_store %arg13[%c0_145, %c0_146], %406 {strides = array<i32>} : memref<8x128xf32, #tpu.memory_space<vmem>>, vector<8x128xf32>,
      %c0_147 = arith.constant 0 : index
      %c0_148 = arith.constant 0 : index
      %408 = vector.load %arg8[%c0_147, %c0_148] : memref<8x128xf32, #tpu.memory_space<vmem>>, vector<8x128xf32>
      %c0_149 = arith.constant 0 : index
      %c0_150 = arith.constant 0 : index
      %409 = vector.load %arg14[%c0_149, %c0_150] : memref<8x128xf32, #tpu.memory_space<vmem>>, vector<8x128xf32>
      tpu.vector_store %arg14[%c0_149, %c0_150], %408 {strides = array<i32>} : memref<8x128xf32, #tpu.memory_space<vmem>>, vector<8x128xf32>,
    } else {
    }
    %c0 = arith.constant 0 : index
    %c0_1 = arith.constant 0 : index
    %c0_2 = arith.constant 0 : index
    %3 = vector.load %arg2[%c0, %c0_1, %c0_2] : memref<7x8x128xbf16, #tpu.memory_space<vmem>>, vector<7x8x128xbf16>
    %4 = vector.shape_cast %3 : vector<7x8x128xbf16> to vector<56x128xbf16>
    %c0_3 = arith.constant 0 : index
    %c0_4 = arith.constant 0 : index
    %5 = vector.load %arg4[%c0_3, %c0_4] : memref<128x512xbf16, #tpu.memory_space<vmem>>, vector<128x512xbf16>
    %cst = arith.constant dense<0.000000e+00> : vector<56x512xf32>
    %6 = tpu.matmul %4, %5, %cst {dimension_numbers = #tpu.dot_dimension_numbers<[1], [0], [0], [1], [0, 0, 1, 1], [], []>} : vector<56x128xbf16>, vector<128x512xbf16>, vector<56x512xf32> -> vector<56x512xf32>
    %c0_5 = arith.constant 0 : index
    %c0_6 = arith.constant 0 : index
    %7 = vector.load %arg6[%c0_5, %c0_6] : memref<1x512xf32, #tpu.memory_space<vmem>>, vector<1x512xf32>
    %8 = vector.broadcast %7 : vector<1x512xf32> to vector<56x512xf32>
    %9 = arith.addf %6, %8 : vector<56x512xf32>
    %10 = vector.shape_cast %9 : vector<56x512xf32> to vector<7x8x512xf32>
    %c0_7 = arith.constant 0 : index
    %c0_8 = arith.constant 0 : index
    %c0_9 = arith.constant 0 : index
    %11 = vector.load %arg12[%c0_7, %c0_8, %c0_9] : memref<7x8x512xf32, #tpu.memory_space<vmem>>, vector<7x8x512xf32>
    tpu.vector_store %arg12[%c0_7, %c0_8, %c0_9], %10 {strides = array<i32>} : memref<7x8x512xf32, #tpu.memory_space<vmem>>, vector<7x8x512xf32>,
    %c7_i32 = arith.constant 7 : i32
    %12 = arith.muli %arg1, %c7_i32 : i32
    %c0_10 = arith.constant 0 : index
    %c0_11 = arith.constant 0 : index
    %13 = vector.load %arg3[%c0_10, %c0_11] : memref<8x1xi32, #tpu.memory_space<vmem>>, vector<8x1xi32>
    %c0_12 = arith.constant 0 : index
    %c0_13 = arith.constant 0 : index
    %14 = vector.load %arg13[%c0_12, %c0_13] : memref<8x128xf32, #tpu.memory_space<vmem>>, vector<8x128xf32>
    %c0_14 = arith.constant 0 : index
    %c0_15 = arith.constant 0 : index
    %15 = vector.load %arg14[%c0_14, %c0_15] : memref<8x128xf32, #tpu.memory_space<vmem>>, vector<8x128xf32>
    %c0_i32_16 = arith.constant 0 : i32
    %16 = arith.index_cast %c0_i32_16 : i32 to index
    %c0_17 = arith.constant 0 : index
    %c0_18 = arith.constant 0 : index
    %17 = vector.load %arg12[%16, %c0_17, %c0_18] : memref<7x8x512xf32, #tpu.memory_space<vmem>>, vector<1x8x512xf32>
    %18 = vector.shape_cast %17 : vector<1x8x512xf32> to vector<8x512xf32>
    %19 = arith.truncf %14 : vector<8x128xf32> to vector<8x128xbf16>
    %c0_19 = arith.constant 0 : index
    %c0_20 = arith.constant 0 : index
    %20 = vector.load %arg5[%c0_19, %c0_20] : memref<128x512xbf16, #tpu.memory_space<vmem>>, vector<128x512xbf16>
    %cst_21 = arith.constant dense<0.000000e+00> : vector<8x512xf32>
    %21 = tpu.matmul %19, %20, %cst_21 {dimension_numbers = #tpu.dot_dimension_numbers<[1], [0], [0], [1], [0, 0, 1, 1], [], []>} : vector<8x128xbf16>, vector<128x512xbf16>, vector<8x512xf32> -> vector<8x512xf32>
    %22 = arith.addf %18, %21 : vector<8x512xf32>
    %23 = vector.extract_strided_slice %22 {offsets = [0, 0], sizes = [8, 128], strides = [1, 1]} : vector<8x512xf32> to vector<8x128xf32>
    %cst_22 = arith.constant 5.000000e-01 : f32
    %24 = vector.broadcast %cst_22 : f32 to vector<8x128xf32>
    %25 = arith.mulf %24, %23 : vector<8x128xf32>
    %26 = math.tanh %25 : vector<8x128xf32>
    %cst_23 = arith.constant 1.000000e+00 : f32
    %27 = vector.broadcast %cst_23 : f32 to vector<8x128xf32>
    %28 = arith.addf %26, %27 : vector<8x128xf32>
    %cst_24 = arith.constant 5.000000e-01 : f32
    %29 = vector.broadcast %cst_24 : f32 to vector<8x128xf32>
    %30 = arith.mulf %29, %28 : vector<8x128xf32>
    %31 = vector.extract_strided_slice %22 {offsets = [0, 128], sizes = [8, 128], strides = [1, 1]} : vector<8x512xf32> to vector<8x128xf32>
    %cst_25 = arith.constant 5.000000e-01 : f32
    %32 = vector.broadcast %cst_25 : f32 to vector<8x128xf32>
    %33 = arith.mulf %32, %31 : vector<8x128xf32>
    %34 = math.tanh %33 : vector<8x128xf32>
    %cst_26 = arith.constant 1.000000e+00 : f32
    %35 = vector.broadcast %cst_26 : f32 to vector<8x128xf32>
    %36 = arith.addf %34, %35 : vector<8x128xf32>
    %cst_27 = arith.constant 5.000000e-01 : f32
    %37 = vector.broadcast %cst_27 : f32 to vector<8x128xf32>
    %38 = arith.mulf %37, %36 : vector<8x128xf32>
    %39 = vector.extract_strided_slice %22 {offsets = [0, 256], sizes = [8, 128], strides = [1, 1]} : vector<8x512xf32> to vector<8x128xf32>
    %40 = math.tanh %39 : vector<8x128xf32>
    %41 = vector.extract_strided_slice %22 {offsets = [0, 384], sizes = [8, 128], strides = [1, 1]} : vector<8x512xf32> to vector<8x128xf32>
    %cst_28 = arith.constant 5.000000e-01 : f32
    %42 = vector.broadcast %cst_28 : f32 to vector<8x128xf32>
    %43 = arith.mulf %42, %41 : vector<8x128xf32>
    %44 = math.tanh %43 : vector<8x128xf32>
    %cst_29 = arith.constant 1.000000e+00 : f32
    %45 = vector.broadcast %cst_29 : f32 to vector<8x128xf32>
    %46 = arith.addf %44, %45 : vector<8x128xf32>
    %cst_30 = arith.constant 5.000000e-01 : f32
    %47 = vector.broadcast %cst_30 : f32 to vector<8x128xf32>
    %48 = arith.mulf %47, %46 : vector<8x128xf32>
    %49 = arith.mulf %38, %15 : vector<8x128xf32>
    %50 = arith.mulf %30, %40 : vector<8x128xf32>
    %51 = arith.addf %49, %50 : vector<8x128xf32>
    %52 = math.tanh %51 : vector<8x128xf32>
    %53 = arith.mulf %48, %52 : vector<8x128xf32>
    %54 = arith.addi %12, %c0_i32_16 : i32
    %55 = vector.broadcast %54 : i32 to vector<8x1xi32>
    %56 = arith.cmpi sgt, %13, %55 : vector<8x1xi32>
    %cst_31 = arith.constant 0.000000e+00 : f32
    %57 = vector.shape_cast %56 : vector<8x1xi1> to vector<8x1xi1>
    %58 = vector.broadcast %57 : vector<8x1xi1> to vector<8x128xi1>
    %59 = vector.broadcast %cst_31 : f32 to vector<8x128xf32>
    %60 = arith.select %58, %53, %59 : vector<8x128xi1>, vector<8x128xf32>
    %61 = arith.index_cast %c0_i32_16 : i32 to index
    %c0_32 = arith.constant 0 : index
    %c0_33 = arith.constant 0 : index
    %62 = vector.load %arg9[%61, %c0_32, %c0_33] : memref<7x8x128xf32, #tpu.memory_space<vmem>>, vector<1x8x128xf32>
    %63 = vector.shape_cast %62 : vector<1x8x128xf32> to vector<8x128xf32>
    %64 = vector.shape_cast %60 : vector<8x128xf32> to vector<1x8x128xf32>
    tpu.vector_store %arg9[%61, %c0_32, %c0_33], %64 {strides = array<i32>} : memref<7x8x128xf32, #tpu.memory_space<vmem>>, vector<1x8x128xf32>,
    %65 = vector.shape_cast %56 : vector<8x1xi1> to vector<8x1xi1>
    %66 = vector.broadcast %65 : vector<8x1xi1> to vector<8x128xi1>
    %67 = arith.select %66, %53, %14 : vector<8x128xi1>, vector<8x128xf32>
    %68 = vector.shape_cast %56 : vector<8x1xi1> to vector<8x1xi1>
    %69 = vector.broadcast %68 : vector<8x1xi1> to vector<8x128xi1>
    %70 = arith.select %69, %51, %15 : vector<8x128xi1>, vector<8x128xf32>
    %c1_i32 = arith.constant 1 : i32
    %71 = arith.index_cast %c1_i32 : i32 to index
    %c0_34 = arith.constant 0 : index
    %c0_35 = arith.constant 0 : index
    %72 = vector.load %arg12[%71, %c0_34, %c0_35] : memref<7x8x512xf32, #tpu.memory_space<vmem>>, vector<1x8x512xf32>
    %73 = vector.shape_cast %72 : vector<1x8x512xf32> to vector<8x512xf32>
    %74 = arith.truncf %67 : vector<8x128xf32> to vector<8x128xbf16>
    %c0_36 = arith.constant 0 : index
    %c0_37 = arith.constant 0 : index
    %75 = vector.load %arg5[%c0_36, %c0_37] : memref<128x512xbf16, #tpu.memory_space<vmem>>, vector<128x512xbf16>
    %cst_38 = arith.constant dense<0.000000e+00> : vector<8x512xf32>
    %76 = tpu.matmul %74, %75, %cst_38 {dimension_numbers = #tpu.dot_dimension_numbers<[1], [0], [0], [1], [0, 0, 1, 1], [], []>} : vector<8x128xbf16>, vector<128x512xbf16>, vector<8x512xf32> -> vector<8x512xf32>
    %77 = arith.addf %73, %76 : vector<8x512xf32>
    %78 = vector.extract_strided_slice %77 {offsets = [0, 0], sizes = [8, 128], strides = [1, 1]} : vector<8x512xf32> to vector<8x128xf32>
    %cst_39 = arith.constant 5.000000e-01 : f32
    %79 = vector.broadcast %cst_39 : f32 to vector<8x128xf32>
    %80 = arith.mulf %79, %78 : vector<8x128xf32>
    %81 = math.tanh %80 : vector<8x128xf32>
    %cst_40 = arith.constant 1.000000e+00 : f32
    %82 = vector.broadcast %cst_40 : f32 to vector<8x128xf32>
    %83 = arith.addf %81, %82 : vector<8x128xf32>
    %cst_41 = arith.constant 5.000000e-01 : f32
    %84 = vector.broadcast %cst_41 : f32 to vector<8x128xf32>
    %85 = arith.mulf %84, %83 : vector<8x128xf32>
    %86 = vector.extract_strided_slice %77 {offsets = [0, 128], sizes = [8, 128], strides = [1, 1]} : vector<8x512xf32> to vector<8x128xf32>
    %cst_42 = arith.constant 5.000000e-01 : f32
    %87 = vector.broadcast %cst_42 : f32 to vector<8x128xf32>
    %88 = arith.mulf %87, %86 : vector<8x128xf32>
    %89 = math.tanh %88 : vector<8x128xf32>
    %cst_43 = arith.constant 1.000000e+00 : f32
    %90 = vector.broadcast %cst_43 : f32 to vector<8x128xf32>
    %91 = arith.addf %89, %90 : vector<8x128xf32>
    %cst_44 = arith.constant 5.000000e-01 : f32
    %92 = vector.broadcast %cst_44 : f32 to vector<8x128xf32>
    %93 = arith.mulf %92, %91 : vector<8x128xf32>
    %94 = vector.extract_strided_slice %77 {offsets = [0, 256], sizes = [8, 128], strides = [1, 1]} : vector<8x512xf32> to vector<8x128xf32>
    %95 = math.tanh %94 : vector<8x128xf32>
    %96 = vector.extract_strided_slice %77 {offsets = [0, 384], sizes = [8, 128], strides = [1, 1]} : vector<8x512xf32> to vector<8x128xf32>
    %cst_45 = arith.constant 5.000000e-01 : f32
    %97 = vector.broadcast %cst_45 : f32 to vector<8x128xf32>
    %98 = arith.mulf %97, %96 : vector<8x128xf32>
    %99 = math.tanh %98 : vector<8x128xf32>
    %cst_46 = arith.constant 1.000000e+00 : f32
    %100 = vector.broadcast %cst_46 : f32 to vector<8x128xf32>
    %101 = arith.addf %99, %100 : vector<8x128xf32>
    %cst_47 = arith.constant 5.000000e-01 : f32
    %102 = vector.broadcast %cst_47 : f32 to vector<8x128xf32>
    %103 = arith.mulf %102, %101 : vector<8x128xf32>
    %104 = arith.mulf %93, %70 : vector<8x128xf32>
    %105 = arith.mulf %85, %95 : vector<8x128xf32>
    %106 = arith.addf %104, %105 : vector<8x128xf32>
    %107 = math.tanh %106 : vector<8x128xf32>
    %108 = arith.mulf %103, %107 : vector<8x128xf32>
    %109 = arith.addi %12, %c1_i32 : i32
    %110 = vector.broadcast %109 : i32 to vector<8x1xi32>
    %111 = arith.cmpi sgt, %13, %110 : vector<8x1xi32>
    %cst_48 = arith.constant 0.000000e+00 : f32
    %112 = vector.shape_cast %111 : vector<8x1xi1> to vector<8x1xi1>
    %113 = vector.broadcast %112 : vector<8x1xi1> to vector<8x128xi1>
    %114 = vector.broadcast %cst_48 : f32 to vector<8x128xf32>
    %115 = arith.select %113, %108, %114 : vector<8x128xi1>, vector<8x128xf32>
    %116 = arith.index_cast %c1_i32 : i32 to index
    %c0_49 = arith.constant 0 : index
    %c0_50 = arith.constant 0 : index
    %117 = vector.load %arg9[%116, %c0_49, %c0_50] : memref<7x8x128xf32, #tpu.memory_space<vmem>>, vector<1x8x128xf32>
    %118 = vector.shape_cast %117 : vector<1x8x128xf32> to vector<8x128xf32>
    %119 = vector.shape_cast %115 : vector<8x128xf32> to vector<1x8x128xf32>
    tpu.vector_store %arg9[%116, %c0_49, %c0_50], %119 {strides = array<i32>} : memref<7x8x128xf32, #tpu.memory_space<vmem>>, vector<1x8x128xf32>,
    %120 = vector.shape_cast %111 : vector<8x1xi1> to vector<8x1xi1>
    %121 = vector.broadcast %120 : vector<8x1xi1> to vector<8x128xi1>
    %122 = arith.select %121, %108, %67 : vector<8x128xi1>, vector<8x128xf32>
    %123 = vector.shape_cast %111 : vector<8x1xi1> to vector<8x1xi1>
    %124 = vector.broadcast %123 : vector<8x1xi1> to vector<8x128xi1>
    %125 = arith.select %124, %106, %70 : vector<8x128xi1>, vector<8x128xf32>
    %c2_i32 = arith.constant 2 : i32
    %126 = arith.index_cast %c2_i32 : i32 to index
    %c0_51 = arith.constant 0 : index
    %c0_52 = arith.constant 0 : index
    %127 = vector.load %arg12[%126, %c0_51, %c0_52] : memref<7x8x512xf32, #tpu.memory_space<vmem>>, vector<1x8x512xf32>
    %128 = vector.shape_cast %127 : vector<1x8x512xf32> to vector<8x512xf32>
    %129 = arith.truncf %122 : vector<8x128xf32> to vector<8x128xbf16>
    %c0_53 = arith.constant 0 : index
    %c0_54 = arith.constant 0 : index
    %130 = vector.load %arg5[%c0_53, %c0_54] : memref<128x512xbf16, #tpu.memory_space<vmem>>, vector<128x512xbf16>
    %cst_55 = arith.constant dense<0.000000e+00> : vector<8x512xf32>
    %131 = tpu.matmul %129, %130, %cst_55 {dimension_numbers = #tpu.dot_dimension_numbers<[1], [0], [0], [1], [0, 0, 1, 1], [], []>} : vector<8x128xbf16>, vector<128x512xbf16>, vector<8x512xf32> -> vector<8x512xf32>
    %132 = arith.addf %128, %131 : vector<8x512xf32>
    %133 = vector.extract_strided_slice %132 {offsets = [0, 0], sizes = [8, 128], strides = [1, 1]} : vector<8x512xf32> to vector<8x128xf32>
    %cst_56 = arith.constant 5.000000e-01 : f32
    %134 = vector.broadcast %cst_56 : f32 to vector<8x128xf32>
    %135 = arith.mulf %134, %133 : vector<8x128xf32>
    %136 = math.tanh %135 : vector<8x128xf32>
    %cst_57 = arith.constant 1.000000e+00 : f32
    %137 = vector.broadcast %cst_57 : f32 to vector<8x128xf32>
    %138 = arith.addf %136, %137 : vector<8x128xf32>
    %cst_58 = arith.constant 5.000000e-01 : f32
    %139 = vector.broadcast %cst_58 : f32 to vector<8x128xf32>
    %140 = arith.mulf %139, %138 : vector<8x128xf32>
    %141 = vector.extract_strided_slice %132 {offsets = [0, 128], sizes = [8, 128], strides = [1, 1]} : vector<8x512xf32> to vector<8x128xf32>
    %cst_59 = arith.constant 5.000000e-01 : f32
    %142 = vector.broadcast %cst_59 : f32 to vector<8x128xf32>
    %143 = arith.mulf %142, %141 : vector<8x128xf32>
    %144 = math.tanh %143 : vector<8x128xf32>
    %cst_60 = arith.constant 1.000000e+00 : f32
    %145 = vector.broadcast %cst_60 : f32 to vector<8x128xf32>
    %146 = arith.addf %144, %145 : vector<8x128xf32>
    %cst_61 = arith.constant 5.000000e-01 : f32
    %147 = vector.broadcast %cst_61 : f32 to vector<8x128xf32>
    %148 = arith.mulf %147, %146 : vector<8x128xf32>
    %149 = vector.extract_strided_slice %132 {offsets = [0, 256], sizes = [8, 128], strides = [1, 1]} : vector<8x512xf32> to vector<8x128xf32>
    %150 = math.tanh %149 : vector<8x128xf32>
    %151 = vector.extract_strided_slice %132 {offsets = [0, 384], sizes = [8, 128], strides = [1, 1]} : vector<8x512xf32> to vector<8x128xf32>
    %cst_62 = arith.constant 5.000000e-01 : f32
    %152 = vector.broadcast %cst_62 : f32 to vector<8x128xf32>
    %153 = arith.mulf %152, %151 : vector<8x128xf32>
    %154 = math.tanh %153 : vector<8x128xf32>
    %cst_63 = arith.constant 1.000000e+00 : f32
    %155 = vector.broadcast %cst_63 : f32 to vector<8x128xf32>
    %156 = arith.addf %154, %155 : vector<8x128xf32>
    %cst_64 = arith.constant 5.000000e-01 : f32
    %157 = vector.broadcast %cst_64 : f32 to vector<8x128xf32>
    %158 = arith.mulf %157, %156 : vector<8x128xf32>
    %159 = arith.mulf %148, %125 : vector<8x128xf32>
    %160 = arith.mulf %140, %150 : vector<8x128xf32>
    %161 = arith.addf %159, %160 : vector<8x128xf32>
    %162 = math.tanh %161 : vector<8x128xf32>
    %163 = arith.mulf %158, %162 : vector<8x128xf32>
    %164 = arith.addi %12, %c2_i32 : i32
    %165 = vector.broadcast %164 : i32 to vector<8x1xi32>
    %166 = arith.cmpi sgt, %13, %165 : vector<8x1xi32>
    %cst_65 = arith.constant 0.000000e+00 : f32
    %167 = vector.shape_cast %166 : vector<8x1xi1> to vector<8x1xi1>
    %168 = vector.broadcast %167 : vector<8x1xi1> to vector<8x128xi1>
    %169 = vector.broadcast %cst_65 : f32 to vector<8x128xf32>
    %170 = arith.select %168, %163, %169 : vector<8x128xi1>, vector<8x128xf32>
    %171 = arith.index_cast %c2_i32 : i32 to index
    %c0_66 = arith.constant 0 : index
    %c0_67 = arith.constant 0 : index
    %172 = vector.load %arg9[%171, %c0_66, %c0_67] : memref<7x8x128xf32, #tpu.memory_space<vmem>>, vector<1x8x128xf32>
    %173 = vector.shape_cast %172 : vector<1x8x128xf32> to vector<8x128xf32>
    %174 = vector.shape_cast %170 : vector<8x128xf32> to vector<1x8x128xf32>
    tpu.vector_store %arg9[%171, %c0_66, %c0_67], %174 {strides = array<i32>} : memref<7x8x128xf32, #tpu.memory_space<vmem>>, vector<1x8x128xf32>,
    %175 = vector.shape_cast %166 : vector<8x1xi1> to vector<8x1xi1>
    %176 = vector.broadcast %175 : vector<8x1xi1> to vector<8x128xi1>
    %177 = arith.select %176, %163, %122 : vector<8x128xi1>, vector<8x128xf32>
    %178 = vector.shape_cast %166 : vector<8x1xi1> to vector<8x1xi1>
    %179 = vector.broadcast %178 : vector<8x1xi1> to vector<8x128xi1>
    %180 = arith.select %179, %161, %125 : vector<8x128xi1>, vector<8x128xf32>
    %c3_i32 = arith.constant 3 : i32
    %181 = arith.index_cast %c3_i32 : i32 to index
    %c0_68 = arith.constant 0 : index
    %c0_69 = arith.constant 0 : index
    %182 = vector.load %arg12[%181, %c0_68, %c0_69] : memref<7x8x512xf32, #tpu.memory_space<vmem>>, vector<1x8x512xf32>
    %183 = vector.shape_cast %182 : vector<1x8x512xf32> to vector<8x512xf32>
    %184 = arith.truncf %177 : vector<8x128xf32> to vector<8x128xbf16>
    %c0_70 = arith.constant 0 : index
    %c0_71 = arith.constant 0 : index
    %185 = vector.load %arg5[%c0_70, %c0_71] : memref<128x512xbf16, #tpu.memory_space<vmem>>, vector<128x512xbf16>
    %cst_72 = arith.constant dense<0.000000e+00> : vector<8x512xf32>
    %186 = tpu.matmul %184, %185, %cst_72 {dimension_numbers = #tpu.dot_dimension_numbers<[1], [0], [0], [1], [0, 0, 1, 1], [], []>} : vector<8x128xbf16>, vector<128x512xbf16>, vector<8x512xf32> -> vector<8x512xf32>
    %187 = arith.addf %183, %186 : vector<8x512xf32>
    %188 = vector.extract_strided_slice %187 {offsets = [0, 0], sizes = [8, 128], strides = [1, 1]} : vector<8x512xf32> to vector<8x128xf32>
    %cst_73 = arith.constant 5.000000e-01 : f32
    %189 = vector.broadcast %cst_73 : f32 to vector<8x128xf32>
    %190 = arith.mulf %189, %188 : vector<8x128xf32>
    %191 = math.tanh %190 : vector<8x128xf32>
    %cst_74 = arith.constant 1.000000e+00 : f32
    %192 = vector.broadcast %cst_74 : f32 to vector<8x128xf32>
    %193 = arith.addf %191, %192 : vector<8x128xf32>
    %cst_75 = arith.constant 5.000000e-01 : f32
    %194 = vector.broadcast %cst_75 : f32 to vector<8x128xf32>
    %195 = arith.mulf %194, %193 : vector<8x128xf32>
    %196 = vector.extract_strided_slice %187 {offsets = [0, 128], sizes = [8, 128], strides = [1, 1]} : vector<8x512xf32> to vector<8x128xf32>
    %cst_76 = arith.constant 5.000000e-01 : f32
    %197 = vector.broadcast %cst_76 : f32 to vector<8x128xf32>
    %198 = arith.mulf %197, %196 : vector<8x128xf32>
    %199 = math.tanh %198 : vector<8x128xf32>
    %cst_77 = arith.constant 1.000000e+00 : f32
    %200 = vector.broadcast %cst_77 : f32 to vector<8x128xf32>
    %201 = arith.addf %199, %200 : vector<8x128xf32>
    %cst_78 = arith.constant 5.000000e-01 : f32
    %202 = vector.broadcast %cst_78 : f32 to vector<8x128xf32>
    %203 = arith.mulf %202, %201 : vector<8x128xf32>
    %204 = vector.extract_strided_slice %187 {offsets = [0, 256], sizes = [8, 128], strides = [1, 1]} : vector<8x512xf32> to vector<8x128xf32>
    %205 = math.tanh %204 : vector<8x128xf32>
    %206 = vector.extract_strided_slice %187 {offsets = [0, 384], sizes = [8, 128], strides = [1, 1]} : vector<8x512xf32> to vector<8x128xf32>
    %cst_79 = arith.constant 5.000000e-01 : f32
    %207 = vector.broadcast %cst_79 : f32 to vector<8x128xf32>
    %208 = arith.mulf %207, %206 : vector<8x128xf32>
    %209 = math.tanh %208 : vector<8x128xf32>
    %cst_80 = arith.constant 1.000000e+00 : f32
    %210 = vector.broadcast %cst_80 : f32 to vector<8x128xf32>
    %211 = arith.addf %209, %210 : vector<8x128xf32>
    %cst_81 = arith.constant 5.000000e-01 : f32
    %212 = vector.broadcast %cst_81 : f32 to vector<8x128xf32>
    %213 = arith.mulf %212, %211 : vector<8x128xf32>
    %214 = arith.mulf %203, %180 : vector<8x128xf32>
    %215 = arith.mulf %195, %205 : vector<8x128xf32>
    %216 = arith.addf %214, %215 : vector<8x128xf32>
    %217 = math.tanh %216 : vector<8x128xf32>
    %218 = arith.mulf %213, %217 : vector<8x128xf32>
    %219 = arith.addi %12, %c3_i32 : i32
    %220 = vector.broadcast %219 : i32 to vector<8x1xi32>
    %221 = arith.cmpi sgt, %13, %220 : vector<8x1xi32>
    %cst_82 = arith.constant 0.000000e+00 : f32
    %222 = vector.shape_cast %221 : vector<8x1xi1> to vector<8x1xi1>
    %223 = vector.broadcast %222 : vector<8x1xi1> to vector<8x128xi1>
    %224 = vector.broadcast %cst_82 : f32 to vector<8x128xf32>
    %225 = arith.select %223, %218, %224 : vector<8x128xi1>, vector<8x128xf32>
    %226 = arith.index_cast %c3_i32 : i32 to index
    %c0_83 = arith.constant 0 : index
    %c0_84 = arith.constant 0 : index
    %227 = vector.load %arg9[%226, %c0_83, %c0_84] : memref<7x8x128xf32, #tpu.memory_space<vmem>>, vector<1x8x128xf32>
    %228 = vector.shape_cast %227 : vector<1x8x128xf32> to vector<8x128xf32>
    %229 = vector.shape_cast %225 : vector<8x128xf32> to vector<1x8x128xf32>
    tpu.vector_store %arg9[%226, %c0_83, %c0_84], %229 {strides = array<i32>} : memref<7x8x128xf32, #tpu.memory_space<vmem>>, vector<1x8x128xf32>,
    %230 = vector.shape_cast %221 : vector<8x1xi1> to vector<8x1xi1>
    %231 = vector.broadcast %230 : vector<8x1xi1> to vector<8x128xi1>
    %232 = arith.select %231, %218, %177 : vector<8x128xi1>, vector<8x128xf32>
    %233 = vector.shape_cast %221 : vector<8x1xi1> to vector<8x1xi1>
    %234 = vector.broadcast %233 : vector<8x1xi1> to vector<8x128xi1>
    %235 = arith.select %234, %216, %180 : vector<8x128xi1>, vector<8x128xf32>
    %c4_i32 = arith.constant 4 : i32
    %236 = arith.index_cast %c4_i32 : i32 to index
    %c0_85 = arith.constant 0 : index
    %c0_86 = arith.constant 0 : index
    %237 = vector.load %arg12[%236, %c0_85, %c0_86] : memref<7x8x512xf32, #tpu.memory_space<vmem>>, vector<1x8x512xf32>
    %238 = vector.shape_cast %237 : vector<1x8x512xf32> to vector<8x512xf32>
    %239 = arith.truncf %232 : vector<8x128xf32> to vector<8x128xbf16>
    %c0_87 = arith.constant 0 : index
    %c0_88 = arith.constant 0 : index
    %240 = vector.load %arg5[%c0_87, %c0_88] : memref<128x512xbf16, #tpu.memory_space<vmem>>, vector<128x512xbf16>
    %cst_89 = arith.constant dense<0.000000e+00> : vector<8x512xf32>
    %241 = tpu.matmul %239, %240, %cst_89 {dimension_numbers = #tpu.dot_dimension_numbers<[1], [0], [0], [1], [0, 0, 1, 1], [], []>} : vector<8x128xbf16>, vector<128x512xbf16>, vector<8x512xf32> -> vector<8x512xf32>
    %242 = arith.addf %238, %241 : vector<8x512xf32>
    %243 = vector.extract_strided_slice %242 {offsets = [0, 0], sizes = [8, 128], strides = [1, 1]} : vector<8x512xf32> to vector<8x128xf32>
    %cst_90 = arith.constant 5.000000e-01 : f32
    %244 = vector.broadcast %cst_90 : f32 to vector<8x128xf32>
    %245 = arith.mulf %244, %243 : vector<8x128xf32>
    %246 = math.tanh %245 : vector<8x128xf32>
    %cst_91 = arith.constant 1.000000e+00 : f32
    %247 = vector.broadcast %cst_91 : f32 to vector<8x128xf32>
    %248 = arith.addf %246, %247 : vector<8x128xf32>
    %cst_92 = arith.constant 5.000000e-01 : f32
    %249 = vector.broadcast %cst_92 : f32 to vector<8x128xf32>
    %250 = arith.mulf %249, %248 : vector<8x128xf32>
    %251 = vector.extract_strided_slice %242 {offsets = [0, 128], sizes = [8, 128], strides = [1, 1]} : vector<8x512xf32> to vector<8x128xf32>
    %cst_93 = arith.constant 5.000000e-01 : f32
    %252 = vector.broadcast %cst_93 : f32 to vector<8x128xf32>
    %253 = arith.mulf %252, %251 : vector<8x128xf32>
    %254 = math.tanh %253 : vector<8x128xf32>
    %cst_94 = arith.constant 1.000000e+00 : f32
    %255 = vector.broadcast %cst_94 : f32 to vector<8x128xf32>
    %256 = arith.addf %254, %255 : vector<8x128xf32>
    %cst_95 = arith.constant 5.000000e-01 : f32
    %257 = vector.broadcast %cst_95 : f32 to vector<8x128xf32>
    %258 = arith.mulf %257, %256 : vector<8x128xf32>
    %259 = vector.extract_strided_slice %242 {offsets = [0, 256], sizes = [8, 128], strides = [1, 1]} : vector<8x512xf32> to vector<8x128xf32>
    %260 = math.tanh %259 : vector<8x128xf32>
    %261 = vector.extract_strided_slice %242 {offsets = [0, 384], sizes = [8, 128], strides = [1, 1]} : vector<8x512xf32> to vector<8x128xf32>
    %cst_96 = arith.constant 5.000000e-01 : f32
    %262 = vector.broadcast %cst_96 : f32 to vector<8x128xf32>
    %263 = arith.mulf %262, %261 : vector<8x128xf32>
    %264 = math.tanh %263 : vector<8x128xf32>
    %cst_97 = arith.constant 1.000000e+00 : f32
    %265 = vector.broadcast %cst_97 : f32 to vector<8x128xf32>
    %266 = arith.addf %264, %265 : vector<8x128xf32>
    %cst_98 = arith.constant 5.000000e-01 : f32
    %267 = vector.broadcast %cst_98 : f32 to vector<8x128xf32>
    %268 = arith.mulf %267, %266 : vector<8x128xf32>
    %269 = arith.mulf %258, %235 : vector<8x128xf32>
    %270 = arith.mulf %250, %260 : vector<8x128xf32>
    %271 = arith.addf %269, %270 : vector<8x128xf32>
    %272 = math.tanh %271 : vector<8x128xf32>
    %273 = arith.mulf %268, %272 : vector<8x128xf32>
    %274 = arith.addi %12, %c4_i32 : i32
    %275 = vector.broadcast %274 : i32 to vector<8x1xi32>
    %276 = arith.cmpi sgt, %13, %275 : vector<8x1xi32>
    %cst_99 = arith.constant 0.000000e+00 : f32
    %277 = vector.shape_cast %276 : vector<8x1xi1> to vector<8x1xi1>
    %278 = vector.broadcast %277 : vector<8x1xi1> to vector<8x128xi1>
    %279 = vector.broadcast %cst_99 : f32 to vector<8x128xf32>
    %280 = arith.select %278, %273, %279 : vector<8x128xi1>, vector<8x128xf32>
    %281 = arith.index_cast %c4_i32 : i32 to index
    %c0_100 = arith.constant 0 : index
    %c0_101 = arith.constant 0 : index
    %282 = vector.load %arg9[%281, %c0_100, %c0_101] : memref<7x8x128xf32, #tpu.memory_space<vmem>>, vector<1x8x128xf32>
    %283 = vector.shape_cast %282 : vector<1x8x128xf32> to vector<8x128xf32>
    %284 = vector.shape_cast %280 : vector<8x128xf32> to vector<1x8x128xf32>
    tpu.vector_store %arg9[%281, %c0_100, %c0_101], %284 {strides = array<i32>} : memref<7x8x128xf32, #tpu.memory_space<vmem>>, vector<1x8x128xf32>,
    %285 = vector.shape_cast %276 : vector<8x1xi1> to vector<8x1xi1>
    %286 = vector.broadcast %285 : vector<8x1xi1> to vector<8x128xi1>
    %287 = arith.select %286, %273, %232 : vector<8x128xi1>, vector<8x128xf32>
    %288 = vector.shape_cast %276 : vector<8x1xi1> to vector<8x1xi1>
    %289 = vector.broadcast %288 : vector<8x1xi1> to vector<8x128xi1>
    %290 = arith.select %289, %271, %235 : vector<8x128xi1>, vector<8x128xf32>
    %c5_i32 = arith.constant 5 : i32
    %291 = arith.index_cast %c5_i32 : i32 to index
    %c0_102 = arith.constant 0 : index
    %c0_103 = arith.constant 0 : index
    %292 = vector.load %arg12[%291, %c0_102, %c0_103] : memref<7x8x512xf32, #tpu.memory_space<vmem>>, vector<1x8x512xf32>
    %293 = vector.shape_cast %292 : vector<1x8x512xf32> to vector<8x512xf32>
    %294 = arith.truncf %287 : vector<8x128xf32> to vector<8x128xbf16>
    %c0_104 = arith.constant 0 : index
    %c0_105 = arith.constant 0 : index
    %295 = vector.load %arg5[%c0_104, %c0_105] : memref<128x512xbf16, #tpu.memory_space<vmem>>, vector<128x512xbf16>
    %cst_106 = arith.constant dense<0.000000e+00> : vector<8x512xf32>
    %296 = tpu.matmul %294, %295, %cst_106 {dimension_numbers = #tpu.dot_dimension_numbers<[1], [0], [0], [1], [0, 0, 1, 1], [], []>} : vector<8x128xbf16>, vector<128x512xbf16>, vector<8x512xf32> -> vector<8x512xf32>
    %297 = arith.addf %293, %296 : vector<8x512xf32>
    %298 = vector.extract_strided_slice %297 {offsets = [0, 0], sizes = [8, 128], strides = [1, 1]} : vector<8x512xf32> to vector<8x128xf32>
    %cst_107 = arith.constant 5.000000e-01 : f32
    %299 = vector.broadcast %cst_107 : f32 to vector<8x128xf32>
    %300 = arith.mulf %299, %298 : vector<8x128xf32>
    %301 = math.tanh %300 : vector<8x128xf32>
    %cst_108 = arith.constant 1.000000e+00 : f32
    %302 = vector.broadcast %cst_108 : f32 to vector<8x128xf32>
    %303 = arith.addf %301, %302 : vector<8x128xf32>
    %cst_109 = arith.constant 5.000000e-01 : f32
    %304 = vector.broadcast %cst_109 : f32 to vector<8x128xf32>
    %305 = arith.mulf %304, %303 : vector<8x128xf32>
    %306 = vector.extract_strided_slice %297 {offsets = [0, 128], sizes = [8, 128], strides = [1, 1]} : vector<8x512xf32> to vector<8x128xf32>
    %cst_110 = arith.constant 5.000000e-01 : f32
    %307 = vector.broadcast %cst_110 : f32 to vector<8x128xf32>
    %308 = arith.mulf %307, %306 : vector<8x128xf32>
    %309 = math.tanh %308 : vector<8x128xf32>
    %cst_111 = arith.constant 1.000000e+00 : f32
    %310 = vector.broadcast %cst_111 : f32 to vector<8x128xf32>
    %311 = arith.addf %309, %310 : vector<8x128xf32>
    %cst_112 = arith.constant 5.000000e-01 : f32
    %312 = vector.broadcast %cst_112 : f32 to vector<8x128xf32>
    %313 = arith.mulf %312, %311 : vector<8x128xf32>
    %314 = vector.extract_strided_slice %297 {offsets = [0, 256], sizes = [8, 128], strides = [1, 1]} : vector<8x512xf32> to vector<8x128xf32>
    %315 = math.tanh %314 : vector<8x128xf32>
    %316 = vector.extract_strided_slice %297 {offsets = [0, 384], sizes = [8, 128], strides = [1, 1]} : vector<8x512xf32> to vector<8x128xf32>
    %cst_113 = arith.constant 5.000000e-01 : f32
    %317 = vector.broadcast %cst_113 : f32 to vector<8x128xf32>
    %318 = arith.mulf %317, %316 : vector<8x128xf32>
    %319 = math.tanh %318 : vector<8x128xf32>
    %cst_114 = arith.constant 1.000000e+00 : f32
    %320 = vector.broadcast %cst_114 : f32 to vector<8x128xf32>
    %321 = arith.addf %319, %320 : vector<8x128xf32>
    %cst_115 = arith.constant 5.000000e-01 : f32
    %322 = vector.broadcast %cst_115 : f32 to vector<8x128xf32>
    %323 = arith.mulf %322, %321 : vector<8x128xf32>
    %324 = arith.mulf %313, %290 : vector<8x128xf32>
    %325 = arith.mulf %305, %315 : vector<8x128xf32>
    %326 = arith.addf %324, %325 : vector<8x128xf32>
    %327 = math.tanh %326 : vector<8x128xf32>
    %328 = arith.mulf %323, %327 : vector<8x128xf32>
    %329 = arith.addi %12, %c5_i32 : i32
    %330 = vector.broadcast %329 : i32 to vector<8x1xi32>
    %331 = arith.cmpi sgt, %13, %330 : vector<8x1xi32>
    %cst_116 = arith.constant 0.000000e+00 : f32
    %332 = vector.shape_cast %331 : vector<8x1xi1> to vector<8x1xi1>
    %333 = vector.broadcast %332 : vector<8x1xi1> to vector<8x128xi1>
    %334 = vector.broadcast %cst_116 : f32 to vector<8x128xf32>
    %335 = arith.select %333, %328, %334 : vector<8x128xi1>, vector<8x128xf32>
    %336 = arith.index_cast %c5_i32 : i32 to index
    %c0_117 = arith.constant 0 : index
    %c0_118 = arith.constant 0 : index
    %337 = vector.load %arg9[%336, %c0_117, %c0_118] : memref<7x8x128xf32, #tpu.memory_space<vmem>>, vector<1x8x128xf32>
    %338 = vector.shape_cast %337 : vector<1x8x128xf32> to vector<8x128xf32>
    %339 = vector.shape_cast %335 : vector<8x128xf32> to vector<1x8x128xf32>
    tpu.vector_store %arg9[%336, %c0_117, %c0_118], %339 {strides = array<i32>} : memref<7x8x128xf32, #tpu.memory_space<vmem>>, vector<1x8x128xf32>,
    %340 = vector.shape_cast %331 : vector<8x1xi1> to vector<8x1xi1>
    %341 = vector.broadcast %340 : vector<8x1xi1> to vector<8x128xi1>
    %342 = arith.select %341, %328, %287 : vector<8x128xi1>, vector<8x128xf32>
    %343 = vector.shape_cast %331 : vector<8x1xi1> to vector<8x1xi1>
    %344 = vector.broadcast %343 : vector<8x1xi1> to vector<8x128xi1>
    %345 = arith.select %344, %326, %290 : vector<8x128xi1>, vector<8x128xf32>
    %c6_i32 = arith.constant 6 : i32
    %346 = arith.index_cast %c6_i32 : i32 to index
    %c0_119 = arith.constant 0 : index
    %c0_120 = arith.constant 0 : index
    %347 = vector.load %arg12[%346, %c0_119, %c0_120] : memref<7x8x512xf32, #tpu.memory_space<vmem>>, vector<1x8x512xf32>
    %348 = vector.shape_cast %347 : vector<1x8x512xf32> to vector<8x512xf32>
    %349 = arith.truncf %342 : vector<8x128xf32> to vector<8x128xbf16>
    %c0_121 = arith.constant 0 : index
    %c0_122 = arith.constant 0 : index
    %350 = vector.load %arg5[%c0_121, %c0_122] : memref<128x512xbf16, #tpu.memory_space<vmem>>, vector<128x512xbf16>
    %cst_123 = arith.constant dense<0.000000e+00> : vector<8x512xf32>
    %351 = tpu.matmul %349, %350, %cst_123 {dimension_numbers = #tpu.dot_dimension_numbers<[1], [0], [0], [1], [0, 0, 1, 1], [], []>} : vector<8x128xbf16>, vector<128x512xbf16>, vector<8x512xf32> -> vector<8x512xf32>
    %352 = arith.addf %348, %351 : vector<8x512xf32>
    %353 = vector.extract_strided_slice %352 {offsets = [0, 0], sizes = [8, 128], strides = [1, 1]} : vector<8x512xf32> to vector<8x128xf32>
    %cst_124 = arith.constant 5.000000e-01 : f32
    %354 = vector.broadcast %cst_124 : f32 to vector<8x128xf32>
    %355 = arith.mulf %354, %353 : vector<8x128xf32>
    %356 = math.tanh %355 : vector<8x128xf32>
    %cst_125 = arith.constant 1.000000e+00 : f32
    %357 = vector.broadcast %cst_125 : f32 to vector<8x128xf32>
    %358 = arith.addf %356, %357 : vector<8x128xf32>
    %cst_126 = arith.constant 5.000000e-01 : f32
    %359 = vector.broadcast %cst_126 : f32 to vector<8x128xf32>
    %360 = arith.mulf %359, %358 : vector<8x128xf32>
    %361 = vector.extract_strided_slice %352 {offsets = [0, 128], sizes = [8, 128], strides = [1, 1]} : vector<8x512xf32> to vector<8x128xf32>
    %cst_127 = arith.constant 5.000000e-01 : f32
    %362 = vector.broadcast %cst_127 : f32 to vector<8x128xf32>
    %363 = arith.mulf %362, %361 : vector<8x128xf32>
    %364 = math.tanh %363 : vector<8x128xf32>
    %cst_128 = arith.constant 1.000000e+00 : f32
    %365 = vector.broadcast %cst_128 : f32 to vector<8x128xf32>
    %366 = arith.addf %364, %365 : vector<8x128xf32>
    %cst_129 = arith.constant 5.000000e-01 : f32
    %367 = vector.broadcast %cst_129 : f32 to vector<8x128xf32>
    %368 = arith.mulf %367, %366 : vector<8x128xf32>
    %369 = vector.extract_strided_slice %352 {offsets = [0, 256], sizes = [8, 128], strides = [1, 1]} : vector<8x512xf32> to vector<8x128xf32>
    %370 = math.tanh %369 : vector<8x128xf32>
    %371 = vector.extract_strided_slice %352 {offsets = [0, 384], sizes = [8, 128], strides = [1, 1]} : vector<8x512xf32> to vector<8x128xf32>
    %cst_130 = arith.constant 5.000000e-01 : f32
    %372 = vector.broadcast %cst_130 : f32 to vector<8x128xf32>
    %373 = arith.mulf %372, %371 : vector<8x128xf32>
    %374 = math.tanh %373 : vector<8x128xf32>
    %cst_131 = arith.constant 1.000000e+00 : f32
    %375 = vector.broadcast %cst_131 : f32 to vector<8x128xf32>
    %376 = arith.addf %374, %375 : vector<8x128xf32>
    %cst_132 = arith.constant 5.000000e-01 : f32
    %377 = vector.broadcast %cst_132 : f32 to vector<8x128xf32>
    %378 = arith.mulf %377, %376 : vector<8x128xf32>
    %379 = arith.mulf %368, %345 : vector<8x128xf32>
    %380 = arith.mulf %360, %370 : vector<8x128xf32>
    %381 = arith.addf %379, %380 : vector<8x128xf32>
    %382 = math.tanh %381 : vector<8x128xf32>
    %383 = arith.mulf %378, %382 : vector<8x128xf32>
    %384 = arith.addi %12, %c6_i32 : i32
    %385 = vector.broadcast %384 : i32 to vector<8x1xi32>
    %386 = arith.cmpi sgt, %13, %385 : vector<8x1xi32>
    %cst_133 = arith.constant 0.000000e+00 : f32
    %387 = vector.shape_cast %386 : vector<8x1xi1> to vector<8x1xi1>
    %388 = vector.broadcast %387 : vector<8x1xi1> to vector<8x128xi1>
    %389 = vector.broadcast %cst_133 : f32 to vector<8x128xf32>
    %390 = arith.select %388, %383, %389 : vector<8x128xi1>, vector<8x128xf32>
    %391 = arith.index_cast %c6_i32 : i32 to index
    %c0_134 = arith.constant 0 : index
    %c0_135 = arith.constant 0 : index
    %392 = vector.load %arg9[%391, %c0_134, %c0_135] : memref<7x8x128xf32, #tpu.memory_space<vmem>>, vector<1x8x128xf32>
    %393 = vector.shape_cast %392 : vector<1x8x128xf32> to vector<8x128xf32>
    %394 = vector.shape_cast %390 : vector<8x128xf32> to vector<1x8x128xf32>
    tpu.vector_store %arg9[%391, %c0_134, %c0_135], %394 {strides = array<i32>} : memref<7x8x128xf32, #tpu.memory_space<vmem>>, vector<1x8x128xf32>,
    %395 = vector.shape_cast %386 : vector<8x1xi1> to vector<8x1xi1>
    %396 = vector.broadcast %395 : vector<8x1xi1> to vector<8x128xi1>
    %397 = arith.select %396, %383, %342 : vector<8x128xi1>, vector<8x128xf32>
    %398 = vector.shape_cast %386 : vector<8x1xi1> to vector<8x1xi1>
    %399 = vector.broadcast %398 : vector<8x1xi1> to vector<8x128xi1>
    %400 = arith.select %399, %381, %345 : vector<8x128xi1>, vector<8x128xf32>
    %c7_i32_136 = arith.constant 7 : i32
    %c0_137 = arith.constant 0 : index
    %c0_138 = arith.constant 0 : index
    %401 = vector.load %arg13[%c0_137, %c0_138] : memref<8x128xf32, #tpu.memory_space<vmem>>, vector<8x128xf32>
    tpu.vector_store %arg13[%c0_137, %c0_138], %397 {strides = array<i32>} : memref<8x128xf32, #tpu.memory_space<vmem>>, vector<8x128xf32>,
    %c0_139 = arith.constant 0 : index
    %c0_140 = arith.constant 0 : index
    %402 = vector.load %arg14[%c0_139, %c0_140] : memref<8x128xf32, #tpu.memory_space<vmem>>, vector<8x128xf32>
    tpu.vector_store %arg14[%c0_139, %c0_140], %400 {strides = array<i32>} : memref<8x128xf32, #tpu.memory_space<vmem>>, vector<8x128xf32>,
    %c0_i32_141 = arith.constant 0 : i32
    %403 = arith.cmpi eq, %arg1, %c0_i32_141 : i32
    %404 = arith.extui %403 : i1 to i32
    %c0_i32_142 = arith.constant 0 : i32
    %405 = arith.cmpi ne, %404, %c0_i32_142 : i32
    scf.if %405 {
      %c0_143 = arith.constant 0 : index
      %c0_144 = arith.constant 0 : index
      %406 = vector.load %arg13[%c0_143, %c0_144] : memref<8x128xf32, #tpu.memory_space<vmem>>, vector<8x128xf32>
      %c0_145 = arith.constant 0 : index
      %c0_146 = arith.constant 0 : index
      %407 = vector.load %arg10[%c0_145, %c0_146] : memref<8x128xf32, #tpu.memory_space<vmem>>, vector<8x128xf32>
      tpu.vector_store %arg10[%c0_145, %c0_146], %406 {strides = array<i32>} : memref<8x128xf32, #tpu.memory_space<vmem>>, vector<8x128xf32>,
      %c0_147 = arith.constant 0 : index
      %c0_148 = arith.constant 0 : index
      %408 = vector.load %arg14[%c0_147, %c0_148] : memref<8x128xf32, #tpu.memory_space<vmem>>, vector<8x128xf32>
      %c0_149 = arith.constant 0 : index
      %c0_150 = arith.constant 0 : index
      %409 = vector.load %arg11[%c0_149, %c0_150] : memref<8x128xf32, #tpu.memory_space<vmem>>, vector<8x128xf32>
      tpu.vector_store %arg11[%c0_149, %c0_150], %408 {strides = array<i32>} : memref<8x128xf32, #tpu.memory_space<vmem>>, vector<8x128xf32>,
    } else {
    }
    return
  }
  func.func @transform_0(%arg0: i32, %arg1: i32) -> (i32, i32, i32) {
    %c0_i32 = arith.constant 0 : i32
    %c0_i32_0 = arith.constant 0 : i32
    return %arg1, %arg0, %c0_i32 : i32, i32, i32
  }
  func.func @transform_1(%arg0: i32, %arg1: i32) -> (i32, i32) {
    %c0_i32 = arith.constant 0 : i32
    %c0_i32_0 = arith.constant 0 : i32
    return %arg0, %c0_i32 : i32, i32
  }
  func.func @transform_2(%arg0: i32, %arg1: i32) -> (i32, i32) {
    %c0_i32 = arith.constant 0 : i32
    %c0_i32_0 = arith.constant 0 : i32
    %c0_i32_1 = arith.constant 0 : i32
    return %c0_i32, %c0_i32_0 : i32, i32
  }
  func.func @transform_3(%arg0: i32, %arg1: i32) -> (i32, i32) {
    %c0_i32 = arith.constant 0 : i32
    %c0_i32_0 = arith.constant 0 : i32
    %c0_i32_1 = arith.constant 0 : i32
    return %c0_i32, %c0_i32_0 : i32, i32
  }
  func.func @transform_4(%arg0: i32, %arg1: i32) -> (i32, i32) {
    %c0_i32 = arith.constant 0 : i32
    %c0_i32_0 = arith.constant 0 : i32
    %c0_i32_1 = arith.constant 0 : i32
    return %c0_i32, %c0_i32_0 : i32, i32
  }
  func.func @transform_5(%arg0: i32, %arg1: i32) -> (i32, i32) {
    %c0_i32 = arith.constant 0 : i32
    %c0_i32_0 = arith.constant 0 : i32
    return %arg0, %c0_i32 : i32, i32
  }
  func.func @transform_6(%arg0: i32, %arg1: i32) -> (i32, i32) {
    %c0_i32 = arith.constant 0 : i32
    %c0_i32_0 = arith.constant 0 : i32
    return %arg0, %c0_i32 : i32, i32
  }
  func.func @transform_7(%arg0: i32, %arg1: i32) -> (i32, i32, i32) {
    %c0_i32 = arith.constant 0 : i32
    %c0_i32_0 = arith.constant 0 : i32
    return %arg1, %arg0, %c0_i32 : i32, i32, i32
  }
  func.func @transform_8(%arg0: i32, %arg1: i32) -> (i32, i32) {
    %c0_i32 = arith.constant 0 : i32
    %c0_i32_0 = arith.constant 0 : i32
    return %arg0, %c0_i32 : i32, i32
  }
  func.func @transform_9(%arg0: i32, %arg1: i32) -> (i32, i32) {
    %c0_i32 = arith.constant 0 : i32
    %c0_i32_0 = arith.constant 0 : i32
    return %arg0, %c0_i32 : i32, i32
  }
}

module attributes {stable_mosaic.version = 11 : i64} {
  func.func @linear_kernel(%arg0: i32, %arg1: i32, %arg2: memref<16x128xbf16, #tpu.memory_space<vmem>>, %arg3: memref<128x128xbf16, #tpu.memory_space<vmem>>, %arg4: memref<1x128xf32, #tpu.memory_space<vmem>>, %arg5: memref<16x128xf32, #tpu.memory_space<vmem>>) attributes {dimension_semantics = [#tpu.dimension_semantics<parallel>, #tpu.dimension_semantics<parallel>], iteration_bounds = array<i64: 1, 1>, scalar_prefetch = 0 : i64, scratch_operands = 0 : i64, tpu.core_type = #tpu.core_type<tc>, window_params = [{transform_indices = @transform_0, window_bounds = array<i64: 16, 128>}, {transform_indices = @transform_1, window_bounds = array<i64: 128, 128>}, {transform_indices = @transform_2, window_bounds = array<i64: 1, 128>}, {transform_indices = @transform_3, window_bounds = array<i64: 16, 128>}]} {
    %c0 = arith.constant 0 : index
    %c0_0 = arith.constant 0 : index
    %0 = vector.load %arg2[%c0, %c0_0] : memref<16x128xbf16, #tpu.memory_space<vmem>>, vector<16x128xbf16>
    %c0_1 = arith.constant 0 : index
    %c0_2 = arith.constant 0 : index
    %1 = vector.load %arg3[%c0_1, %c0_2] : memref<128x128xbf16, #tpu.memory_space<vmem>>, vector<128x128xbf16>
    %cst = arith.constant dense<0.000000e+00> : vector<16x128xf32>
    %2 = tpu.matmul %0, %1, %cst {dimension_numbers = #tpu.dot_dimension_numbers<[1], [0], [0], [1], [0, 0, 1, 1], [], []>} : vector<16x128xbf16>, vector<128x128xbf16>, vector<16x128xf32> -> vector<16x128xf32>
    %c0_3 = arith.constant 0 : index
    %c0_4 = arith.constant 0 : index
    %3 = vector.load %arg4[%c0_3, %c0_4] : memref<1x128xf32, #tpu.memory_space<vmem>>, vector<1x128xf32>
    %4 = vector.broadcast %3 : vector<1x128xf32> to vector<16x128xf32>
    %5 = arith.addf %2, %4 : vector<16x128xf32>
    %c0_5 = arith.constant 0 : index
    %c0_6 = arith.constant 0 : index
    %6 = vector.load %arg5[%c0_5, %c0_6] : memref<16x128xf32, #tpu.memory_space<vmem>>, vector<16x128xf32>
    tpu.vector_store %arg5[%c0_5, %c0_6], %5 {strides = array<i32>} : memref<16x128xf32, #tpu.memory_space<vmem>>, vector<16x128xf32>,
    return
  }
  func.func @transform_0(%arg0: i32, %arg1: i32) -> (i32, i32) {
    %c0_i32 = arith.constant 0 : i32
    %c0_i32_0 = arith.constant 0 : i32
    return %arg0, %c0_i32 : i32, i32
  }
  func.func @transform_1(%arg0: i32, %arg1: i32) -> (i32, i32) {
    %c0_i32 = arith.constant 0 : i32
    %c0_i32_0 = arith.constant 0 : i32
    return %c0_i32, %arg1 : i32, i32
  }
  func.func @transform_2(%arg0: i32, %arg1: i32) -> (i32, i32) {
    %c0_i32 = arith.constant 0 : i32
    %c0_i32_0 = arith.constant 0 : i32
    return %c0_i32, %arg1 : i32, i32
  }
  func.func @transform_3(%arg0: i32, %arg1: i32) -> (i32, i32) {
    %c0_i32 = arith.constant 0 : i32
    return %arg0, %arg1 : i32, i32
  }
}

</mosaic_0001>

<bundles_post_ra>
// kernel: seq2seq_forward.5
= control target key start
LH: loop header
LB: loop body
LE: loop exit
PB: predicated region body
PF: predicated region fallthrough
CT: control target
= control target key end

     0   :  { %v191_v0 = vmov 0.0   ;;  %vm192_vm0 = vmmov 0   ;;  %s249_s1 = inlined_call_operand.vmem [shape: bf16[128,128], index: 1, kind: input, shape index: {}]   ;;  %s250_s0 = inlined_call_operand.vmem [shape: bf16[16,128], index: 0, kind: input, shape index: {}]   ;;  %s251_s2 = inlined_call_operand.vmem [shape: f32[1,128], index: 2, kind: input, shape index: {}]   ;;  %s252_s3 = inlined_call_operand.vmem [shape: f32[16,128], index: 3, kind: output, shape index: {}]  }
   0x1   :  { %160 = vmatprep.subr.bf16.mxu0 %v191_v0  ;;  %v182_v1 = vld [vmem:[%s249_s1] sm:$0xff]   ;;  %176 = vmatprep.mubr.msk.bf16.mxu0 %vm192_vm0, %v191_v0  ;;  %v183_v2 = vld [vmem:[%s249_s1 + $0x8] sm:$0xff]   ;;  %v184_v3 = vld [vmem:[%s249_s1 + $0x10] sm:$0xff]  }
   0x2   :  { %161 = vmatpush3.bf16.msra.mxu0 %v182_v1  ;;  %v185_v4 = vld [vmem:[%s249_s1 + $0x18] sm:$0xff]   ;;  %v186_v5 = vld [vmem:[%s249_s1 + $0x20] sm:$0xff]   ;;  %v187_v6 = vld [vmem:[%s249_s1 + $0x28] sm:$0xff]  }
   0x3   :  { %162 = vmatprep.subr.bf16.mxu0 %v191_v0  ;;  %v188_v7 = vld [vmem:[%s249_s1 + $0x30] sm:$0xff]   ;;  %v189_v8 = vld [vmem:[%s249_s1 + $0x38] sm:$0xff]   ;;  %v190_v9 = vld [vmem:[%s250_s0] sm:$0xff]  }
   0x4   :  { %v141_v10 = vld [vmem:[%s251_s2] ss:$0 sm:$0xff] }
   0x6   :  { %163 = vmatpush3.bf16.msra.mxu0 %v183_v2 }
   0x7   :  { %164 = vmatprep.subr.bf16.mxu0 %v191_v0 }
   0xa   :  { %165 = vmatpush3.bf16.msra.mxu0 %v184_v3 }
   0xb   :  { %166 = vmatprep.subr.bf16.mxu0 %v191_v0 }
   0xe   :  { %167 = vmatpush3.bf16.msra.mxu0 %v185_v4 }
   0xf   :  { %168 = vmatprep.subr.bf16.mxu0 %v191_v0 }
  0x12   :  { %169 = vmatpush3.bf16.msra.mxu0 %v186_v5 }
  0x13   :  { %170 = vmatprep.subr.bf16.mxu0 %v191_v0 }
  0x16   :  { %171 = vmatpush3.bf16.msra.mxu0 %v187_v6 }
  0x17   :  { %172 = vmatprep.subr.bf16.mxu0 %v191_v0 }
  0x1a   :  { %173 = vmatpush3.bf16.msra.mxu0 %v188_v7 }
  0x1b   :  { %174 = vmatprep.subr.bf16.mxu0 %v191_v0 }
  0x1e   :  { %175 = vmatpush3.bf16.msra.mxu0 %v189_v8 }
  0x21   :  { %177 = vmatmul.mubr.bf16.vlgmr.msra.gmra.mrb[0].mxu0 %v190_v9 }
  0xf4   :  { %v128_v11 = vpop.f32.mrb[0].mxu0 }
  0xf5   :  { %v129_v12 = vadd.f32 %v141_v10, %v128_v11  ;;  %v178_v13 = vpop.f32.mrb[1].mxu0 }
  0xf6   :  { %v131_v14 = vpop.f32.mrb[2].mxu0 }
  0xf7   :  { %135 = vst [vmem:[%s252_s3] sm:$0xff] %v129_v12  ;;  %v132_v15 = vadd.f32 %v141_v10, %v131_v14  ;;  %v179_v16 = vpop.f32.mrb[3].mxu0 }
  0xf9   :  { %136 = vst [vmem:[%s252_s3 + $0x8] sm:$0xff] %v132_v15 }

// kernel: seq2seq_forward.3
= control target key start
LH: loop header
LB: loop body
LE: loop exit
PB: predicated region body
PF: predicated region fallthrough
CT: control target
= control target key end

     0   :  { %v2885_v1 = vmov 0   ;;  %s2876_s2 = inlined_call_operand.vmem [shape: bf16[128,512], index: 2, kind: input, shape index: {}]   ;;  %s2877_s0 = inlined_call_operand.vmem [shape: bf16[8,8,128], index: 0, kind: input, shape index: {}]   ;;  %s2878_s3 = inlined_call_operand.vmem [shape: bf16[128,512], index: 3, kind: input, shape index: {}]   ;;  %s2879_s1 = inlined_call_operand.vmem [shape: s32[8,1], index: 1, kind: input, shape index: {}]   ;;  %s2880_s5 = inlined_call_operand.vmem [shape: f32[8,128], index: 5, kind: input, shape index: {}, may-alias: {5,6}]   ;;  %s2881_s4 = inlined_call_operand.vmem [shape: f32[1,512], index: 4, kind: input, shape index: {}]   ;;  %s2882_s6 = inlined_call_operand.vmem [shape: f32[8,128], index: 6, kind: input, shape index: {}, may-alias: {5,6}]   ;;  %s2883_s8 = inlined_call_operand.vmem [shape: f32[8,128], index: 8, kind: output, shape index: {1}]   ;;  %s2884_s7 = inlined_call_operand.vmem [shape: f32[8,128], index: 7, kind: output, shape index: {0}]  }
   0x1   :  { %v1703_v0 = vld [vmem:[%s2876_s2 + $0x4] ss:$16 sps:$4 sm:$0xff]   ;;  %315 = vmatprep.mubr.bf16.mxu0 %v2885_v1  ;;  %388 = vmatprep.mubr.bf16.mxu1 %v2885_v1  ;;  %v1705_v2 = vld [vmem:[%s2876_s2 + $0xc] ss:$16 sps:$4 sm:$0xff]   ;;  %v1707_v3 = vld [vmem:[%s2876_s2] ss:$16 sps:$4 sm:$0xff]  }
   0x2   :  { %1701 = vset.pattern.permute.xlu0 %v2885_v1  ;;  %1702 = vset.pattern.permute.xlu1 %v2885_v1  ;;  %v1708_v4 = vld [vmem:[%s2876_s2 + $0x8] ss:$16 sps:$4 sm:$0xff]   ;;  %v1709_v5 = vld [vmem:[%s2876_s2 + $0x24] ss:$16 sps:$4 sm:$0xff]   ;;  %v1711_v6 = vld [vmem:[%s2876_s2 + $0x2c] ss:$16 sps:$4 sm:$0xff]  }
   0x3   :  { %283 = vmatprep.subr.bf16.mxu0 %v1703_v0  ;;  %356 = vmatprep.subr.bf16.mxu1 %v1705_v2  ;;  %v1713_v7 = vld [vmem:[%s2876_s2 + $0x20] ss:$16 sps:$4 sm:$0xff]   ;;  %v1714_v8 = vld [vmem:[%s2876_s2 + $0x28] ss:$16 sps:$4 sm:$0xff]   ;;  %v1715_v9 = vld [vmem:[%s2876_s2 + $0x44] ss:$16 sps:$4 sm:$0xff]  }
   0x4   :  { %284 = vmatpush1.bf16.msra.mxu0 %v1707_v3  ;;  %357 = vmatpush1.bf16.msra.mxu1 %v1708_v4  ;;  %v1717_v10 = vld [vmem:[%s2876_s2 + $0x4c] ss:$16 sps:$4 sm:$0xff]   ;;  %v1719_v11 = vld [vmem:[%s2876_s2 + $0x40] ss:$16 sps:$4 sm:$0xff]   ;;  %v1720_v12 = vld [vmem:[%s2876_s2 + $0x48] ss:$16 sps:$4 sm:$0xff]  }
   0x5   :  { %285 = vmatprep.subr.bf16.mxu0 %v1709_v5  ;;  %358 = vmatprep.subr.bf16.mxu1 %v1711_v6  ;;  %v1721_v13 = vld [vmem:[%s2876_s2 + $0x64] ss:$16 sps:$4 sm:$0xff]   ;;  %v1723_v14 = vld [vmem:[%s2876_s2 + $0x6c] ss:$16 sps:$4 sm:$0xff]   ;;  %v1725_v15 = vld [vmem:[%s2876_s2 + $0x60] ss:$16 sps:$4 sm:$0xff]  }
   0x6   :  { %v1726_v16 = vld [vmem:[%s2876_s2 + $0x68] ss:$16 sps:$4 sm:$0xff]   ;;  %v1727_v17 = vld [vmem:[%s2876_s2 + $0x84] ss:$16 sps:$4 sm:$0xff]   ;;  %v1729_v18 = vld [vmem:[%s2876_s2 + $0x8c] ss:$16 sps:$4 sm:$0xff]  }
   0x7   :  { %v1731_v19 = vld [vmem:[%s2876_s2 + $0x80] ss:$16 sps:$4 sm:$0xff]   ;;  %v1732_v20 = vld [vmem:[%s2876_s2 + $0x88] ss:$16 sps:$4 sm:$0xff]   ;;  %v1733_v21 = vld [vmem:[%s2876_s2 + $0xa4] ss:$16 sps:$4 sm:$0xff]  }
   0x8   :  { %286 = vmatpush1.bf16.msra.mxu0 %v1713_v7  ;;  %359 = vmatpush1.bf16.msra.mxu1 %v1714_v8  ;;  %v1735_v22 = vld [vmem:[%s2876_s2 + $0xac] ss:$16 sps:$4 sm:$0xff]   ;;  %v1737_v23 = vld [vmem:[%s2876_s2 + $0xa0] ss:$16 sps:$4 sm:$0xff]   ;;  %v1738_v24 = vld [vmem:[%s2876_s2 + $0xa8] ss:$16 sps:$4 sm:$0xff]  }
   0x9   :  { %287 = vmatprep.subr.bf16.mxu0 %v1715_v9  ;;  %360 = vmatprep.subr.bf16.mxu1 %v1717_v10  ;;  %v1739_v25 = vld [vmem:[%s2876_s2 + $0xc4] ss:$16 sps:$4 sm:$0xff]   ;;  %v1741_v26 = vld [vmem:[%s2876_s2 + $0xcc] ss:$16 sps:$4 sm:$0xff]   ;;  %v1743_v27 = vld [vmem:[%s2876_s2 + $0xc0] ss:$16 sps:$4 sm:$0xff]  }
   0xa   :  { %v1744_v28 = vld [vmem:[%s2876_s2 + $0xc8] ss:$16 sps:$4 sm:$0xff]   ;;  %v1745_v29 = vld [vmem:[%s2876_s2 + $0xe4] ss:$16 sps:$4 sm:$0xff]   ;;  %v1747_v30 = vld [vmem:[%s2876_s2 + $0xec] ss:$16 sps:$4 sm:$0xff]  }
   0xb   :  { %v1749_v31 = vld [vmem:[%s2876_s2 + $0xe0] ss:$16 sps:$4 sm:$0xff]   ;;  %v1750_v32 = vld [vmem:[%s2876_s2 + $0xe8] ss:$16 sps:$4 sm:$0xff]   ;;  %v2064_v33 = vld [vmem:[%s2878_s3 + $0x4] ss:$16 sps:$4 sm:$0xff]  }
   0xc   :  { %288 = vmatpush1.bf16.msra.mxu0 %v1719_v11  ;;  %361 = vmatpush1.bf16.msra.mxu1 %v1720_v12  ;;  %v2069_v34 = vld [vmem:[%s2878_s3 + $0xc] ss:$16 sps:$4 sm:$0xff]   ;;  %v1751_v35 = vld [vmem:[%s2877_s0] sm:$0xff]   ;;  %v2082_v37 = vld [vmem:[%s2878_s3 + $0x8] ss:$16 sps:$4 sm:$0xff]  }
   0xd   :  { %289 = vmatprep.subr.bf16.mxu0 %v1721_v13  ;;  %362 = vmatprep.subr.bf16.mxu1 %v1723_v14  ;;  %v2077_v36 = vld [vmem:[%s2878_s3] ss:$16 sps:$4 sm:$0xff]   ;;  %v2089_v38 = vld [vmem:[%s2878_s3 + $0x24] ss:$16 sps:$4 sm:$0xff]   ;;  %v2094_v39 = vld [vmem:[%s2878_s3 + $0x2c] ss:$16 sps:$4 sm:$0xff]   ;;  %v79_v13 = vlaneseq }
   0xe   :  { %v2099_v40 = vld [vmem:[%s2878_s3 + $0x20] ss:$16 sps:$4 sm:$0xff]   ;;  %v2106_v41 = vld [vmem:[%s2878_s3 + $0x28] ss:$16 sps:$4 sm:$0xff]   ;;  %v2113_v42 = vld [vmem:[%s2878_s3 + $0x44] ss:$16 sps:$4 sm:$0xff]  }
   0xf   :  { %v2118_v43 = vld [vmem:[%s2878_s3 + $0x4c] ss:$16 sps:$4 sm:$0xff]   ;;  %v2128_v45 = vld [vmem:[%s2878_s3 + $0x40] ss:$16 sps:$4 sm:$0xff]   ;;  %v2133_v46 = vld [vmem:[%s2878_s3 + $0x48] ss:$16 sps:$4 sm:$0xff]  }
  0x10   :  { %290 = vmatpush1.bf16.msra.mxu0 %v1725_v15  ;;  %363 = vmatpush1.bf16.msra.mxu1 %v1726_v16  ;;  %v1764_v44 = vld [vmem:[%s2877_s0 + $0x8] sm:$0xff]   ;;  %v2140_v47 = vld [vmem:[%s2878_s3 + $0x64] ss:$16 sps:$4 sm:$0xff]   ;;  %v2152_v49 = vld [vmem:[%s2878_s3 + $0x60] ss:$16 sps:$4 sm:$0xff]   ;;  %v80_v14 = vshrl.u32 %v79_v13, 7 }
  0x11   :  { %291 = vmatprep.subr.bf16.mxu0 %v1727_v17  ;;  %364 = vmatprep.subr.bf16.mxu1 %v1729_v18  ;;  %v2147_v48 = vld [vmem:[%s2878_s3 + $0x6c] ss:$16 sps:$4 sm:$0xff]   ;;  %v2157_v50 = vld [vmem:[%s2878_s3 + $0x68] ss:$16 sps:$4 sm:$0xff]   ;;  %v2164_v51 = vld [vmem:[%s2878_s3 + $0x84] ss:$16 sps:$4 sm:$0xff]  }
  0x12   :  { %v2171_v52 = vld [vmem:[%s2878_s3 + $0x8c] ss:$16 sps:$4 sm:$0xff]   ;;  %v1777_v53 = vld [vmem:[%s2877_s0 + $0x10] sm:$0xff]   ;;  %v2181_v54 = vld [vmem:[%s2879_s1] sm:$0xff]  ;;  %v89_v15 = vsub.s32 2, %v80_v14  ;;  %v93_v16 = vsub.s32 3, %v80_v14 }
  0x13   :  { %v2188_v55 = vld [vmem:[%s2878_s3 + $0x80] ss:$16 sps:$4 sm:$0xff]   ;;  %v2193_v56 = vld [vmem:[%s2878_s3 + $0x88] ss:$16 sps:$4 sm:$0xff]   ;;  %vm767_vm0 = vcmp.gt.s32.totalorder %v2181_v54, 0  ;;  %vm887_vm1 = vcmp.gt.s32.totalorder %v2181_v54, 1 }
  0x14   :  { %292 = vmatpush1.bf16.msra.mxu0 %v1731_v19  ;;  %365 = vmatpush1.bf16.msra.mxu1 %v1732_v20  ;;  %v2201_v57 = vld [vmem:[%s2878_s3 + $0xa4] ss:$16 sps:$4 sm:$0xff]   ;;  %v2206_v58 = vld [vmem:[%s2878_s3 + $0xac] ss:$16 sps:$4 sm:$0xff]   ;;  %v768_v59 = vsel %vm767_vm0, 1, %v2885_v1  ;;  %v888_v62 = vsel %vm887_vm1, 1, %v2885_v1 }
  0x15   :  { %293 = vmatprep.subr.bf16.mxu0 %v1733_v21  ;;  %366 = vmatprep.subr.bf16.mxu1 %v1735_v22  ;;  %v2215_v60 = vld [vmem:[%s2878_s3 + $0xa0] ss:$16 sps:$4 sm:$0xff]   ;;  %v2220_v61 = vld [vmem:[%s2878_s3 + $0xa8] ss:$16 sps:$4 sm:$0xff]   ;;  %v2228_v63 = vld [vmem:[%s2878_s3 + $0xc4] ss:$16 sps:$4 sm:$0xff]  }
  0x16   :  { %770 = vperm.xlu0 %1701, %v768_v59   ;;  %v2233_v0 = vld [vmem:[%s2878_s3 + $0xcc] ss:$16 sps:$4 sm:$0xff]   ;;  %v2245_v3 = vld [vmem:[%s2878_s3 + $0xc0] ss:$16 sps:$4 sm:$0xff]   ;;  %v2250_v4 = vld [vmem:[%s2878_s3 + $0xc8] ss:$16 sps:$4 sm:$0xff]  }
  0x17   :  { %v1790_v2 = vld [vmem:[%s2877_s0 + $0x18] sm:$0xff]   ;;  %v2257_v5 = vld [vmem:[%s2878_s3 + $0xe4] ss:$16 sps:$4 sm:$0xff]   ;;  %vm1247_vm2 = vcmp.gt.s32.totalorder %v2181_v54, 4  ;;  %v2270_v7 = vld [vmem:[%s2878_s3 + $0xe0] ss:$16 sps:$4 sm:$0xff]  }
  0x18   :  { %294 = vmatpush1.bf16.msra.mxu0 %v1737_v23  ;;  %367 = vmatpush1.bf16.msra.mxu1 %v1738_v24  ;;  %v2262_v6 = vld [vmem:[%s2878_s3 + $0xec] ss:$16 sps:$4 sm:$0xff]   ;;  %v2275_v8 = vld [vmem:[%s2878_s3 + $0xe8] ss:$16 sps:$4 sm:$0xff]   ;;  %v2280_v9 = vld [vmem:[%s2880_s5] sm:$0xff]  ;;  %v1248_v10 = vsel %vm1247_vm2, 1, %v2885_v1 }
  0x19   :  { %295 = vmatprep.subr.bf16.mxu0 %v1739_v25  ;;  %368 = vmatprep.subr.bf16.mxu1 %v1741_v26  ;;  %vm1487_vm3 = vcmp.gt.s32.totalorder %v2181_v54, 6  ;;  %v469_v11 = vpack.c.bf16 %v2280_v9, %v2280_v9  ;;  %v81_v17 = vsub.s32 0, %v80_v14  ;;  %v77_v18 = vld [vmem:[%s2881_s4] sm:$0xf]  ;;  %v85_v19 = vsub.s32 1, %v80_v14 }
  0x1a   :  { %890 = vperm.xlu0 %1701, %v888_v62   ;;  %v1488_v12 = vsel %vm1487_vm3, 1, %v2885_v1  ;;  %v2332_v20 = vrot.slane %v77_v18, %v89_v15  ;;  %v2338_v23 = vrot.slane %v77_v18, %v93_v16  ;;  %vm1007_vm5 = vcmp.gt.s32.totalorder %v2181_v54, 2 }
  0x1b   :  { %v82_v24 = vrot.slane %v77_v18, %v81_v17  ;;  %vm1127_vm6 = vcmp.gt.s32.totalorder %v2181_v54, 3  ;;  %vm1367_vm7 = vcmp.gt.s32.totalorder %v2181_v54, 5  ;;  %vm1607_vm8 = vcmp.gt.s32.totalorder %v2181_v54, 7 }
  0x1c   :  { %296 = vmatpush1.bf16.msra.mxu0 %v1743_v27  ;;  %369 = vmatpush1.bf16.msra.mxu1 %v1744_v28  ;;  %v86_v27 = vrot.slane %v77_v18, %v85_v19 }
  0x1d   :  { %297 = vmatprep.subr.bf16.mxu0 %v1745_v29  ;;  %370 = vmatprep.subr.bf16.mxu1 %v1747_v30 }
  0x1e   :  { %1250 = vperm.xlu0 %1701, %v1248_v10  }
  0x20   :  { %298 = vmatpush1.bf16.msra.mxu0 %v1749_v31  ;;  %371 = vmatpush1.bf16.msra.mxu1 %v1750_v32 }
  0x21   :  { %662 = vmatprep.subr.bf16.mxu0 %v2064_v33  ;;  %703 = vmatprep.subr.bf16.mxu1 %v2069_v34 }
  0x22   :  { %1490 = vperm.xlu0 %1701, %v1488_v12  }
  0x23   :  { %316 = vmatmul.mubr.bf16.vlgmr.msra.gmra.mrb[0].mxu0 %v1751_v35  ;;  %389 = vmatmul.mubr.bf16.vlgmr.msra.gmra.mrb[0].mxu1 %v1751_v35 }
  0x24   :  { %663 = vmatpush1.bf16.msra.mxu0 %v2077_v36  ;;  %704 = vmatpush1.bf16.msra.mxu1 %v2082_v37 }
  0x25   :  { %664 = vmatprep.subr.bf16.mxu0 %v2089_v38  ;;  %705 = vmatprep.subr.bf16.mxu1 %v2094_v39 }
  0x26   :  { %325 = vmatprep.mubr.bf16.mxu0 %v2885_v1  ;;  %398 = vmatprep.mubr.bf16.mxu1 %v2885_v1 }
  0x28   :  { %665 = vmatpush1.bf16.msra.mxu0 %v2099_v40  ;;  %706 = vmatpush1.bf16.msra.mxu1 %v2106_v41 }
  0x29   :  { %666 = vmatprep.subr.bf16.mxu0 %v2113_v42  ;;  %707 = vmatprep.subr.bf16.mxu1 %v2118_v43 }
  0x2b   :  { %326 = vmatmul.mubr.bf16.gmra.mrb[4].mxu0 %v1764_v44  ;;  %399 = vmatmul.mubr.bf16.gmra.mrb[4].mxu1 %v1764_v44 }
  0x2c   :  { %667 = vmatpush1.bf16.msra.mxu0 %v2128_v45  ;;  %708 = vmatpush1.bf16.msra.mxu1 %v2133_v46 }
  0x2d   :  { %668 = vmatprep.subr.bf16.mxu0 %v2140_v47  ;;  %709 = vmatprep.subr.bf16.mxu1 %v2147_v48 }
  0x2e   :  { %335 = vmatprep.mubr.bf16.mxu0 %v2885_v1  ;;  %408 = vmatprep.mubr.bf16.mxu1 %v2885_v1 }
  0x30   :  { %669 = vmatpush1.bf16.msra.mxu0 %v2152_v49  ;;  %710 = vmatpush1.bf16.msra.mxu1 %v2157_v50 }
  0x31   :  { %670 = vmatprep.subr.bf16.mxu0 %v2164_v51  ;;  %711 = vmatprep.subr.bf16.mxu1 %v2171_v52 }
  0x33   :  { %336 = vmatmul.mubr.bf16.gmra.mrb[8].mxu0 %v1777_v53  ;;  %409 = vmatmul.mubr.bf16.gmra.mrb[8].mxu1 %v1777_v53 }
  0x34   :  { %671 = vmatpush1.bf16.msra.mxu0 %v2188_v55  ;;  %712 = vmatpush1.bf16.msra.mxu1 %v2193_v56 }
  0x35   :  { %672 = vmatprep.subr.bf16.mxu0 %v2201_v57  ;;  %713 = vmatprep.subr.bf16.mxu1 %v2206_v58 }
  0x36   :  { %345 = vmatprep.mubr.bf16.mxu0 %v2885_v1  ;;  %418 = vmatprep.mubr.bf16.mxu1 %v2885_v1 }
  0x38   :  { %673 = vmatpush1.bf16.msra.mxu0 %v2215_v60  ;;  %714 = vmatpush1.bf16.msra.mxu1 %v2220_v61 }
  0x39   :  { %674 = vmatprep.subr.bf16.mxu0 %v2228_v63  ;;  %715 = vmatprep.subr.bf16.mxu1 %v2233_v0 }
  0x3b   :  { %346 = vmatmul.mubr.bf16.gmra.mrb[12].mxu0 %v1790_v2  ;;  %419 = vmatmul.mubr.bf16.gmra.mrb[12].mxu1 %v1790_v2 }
  0x3c   :  { %675 = vmatpush1.bf16.msra.mxu0 %v2245_v3  ;;  %716 = vmatpush1.bf16.msra.mxu1 %v2250_v4 }
  0x3d   :  { %676 = vmatprep.subr.bf16.mxu0 %v2257_v5  ;;  %717 = vmatprep.subr.bf16.mxu1 %v2262_v6 }
  0x3e   :  { %694 = vmatprep.mubr.bf16.mxu0 %v2885_v1  ;;  %735 = vmatprep.mubr.bf16.mxu1 %v2885_v1 }
  0x40   :  { %677 = vmatpush1.bf16.msra.mxu0 %v2270_v7  ;;  %718 = vmatpush1.bf16.msra.mxu1 %v2275_v8 }
  0x41   :  { %781 = vmatprep.subr.bf16.mxu0 %v2064_v33  ;;  %822 = vmatprep.subr.bf16.mxu1 %v2069_v34 }
  0x43   :  { %695 = vmatmul.mubr.bf16.vlgmr.msra.gmra.mrb[16].mxu0 %v469_v11  ;;  %736 = vmatmul.mubr.bf16.vlgmr.msra.gmra.mrb[16].mxu1 %v469_v11 }
  0x44   :  { %782 = vmatpush1.bf16.msra.mxu0 %v2077_v36  ;;  %823 = vmatpush1.bf16.msra.mxu1 %v2082_v37 }
  0x45   :  { %783 = vmatprep.subr.bf16.mxu0 %v2089_v38  ;;  %824 = vmatprep.subr.bf16.mxu1 %v2094_v39 }
  0x46   :  { %813 = vmatprep.mubr.bf16.mxu0 %v2885_v1  ;;  %854 = vmatprep.mubr.bf16.mxu1 %v2885_v1 }
  0x48   :  { %784 = vmatpush1.bf16.msra.mxu0 %v2099_v40  ;;  %825 = vmatpush1.bf16.msra.mxu1 %v2106_v41 }
  0x49   :  { %785 = vmatprep.subr.bf16.mxu0 %v2113_v42  ;;  %826 = vmatprep.subr.bf16.mxu1 %v2118_v43 }
  0x4c   :  { %786 = vmatpush1.bf16.msra.mxu0 %v2128_v45  ;;  %827 = vmatpush1.bf16.msra.mxu1 %v2133_v46 }
  0x4d   :  { %787 = vmatprep.subr.bf16.mxu0 %v2140_v47  ;;  %828 = vmatprep.subr.bf16.mxu1 %v2147_v48 }
  0x50   :  { %788 = vmatpush1.bf16.msra.mxu0 %v2152_v49  ;;  %829 = vmatpush1.bf16.msra.mxu1 %v2157_v50 }
  0x51   :  { %789 = vmatprep.subr.bf16.mxu0 %v2164_v51  ;;  %830 = vmatprep.subr.bf16.mxu1 %v2171_v52 }
  0x54   :  { %790 = vmatpush1.bf16.msra.mxu0 %v2188_v55  ;;  %831 = vmatpush1.bf16.msra.mxu1 %v2193_v56 }
  0x55   :  { %791 = vmatprep.subr.bf16.mxu0 %v2201_v57  ;;  %832 = vmatprep.subr.bf16.mxu1 %v2206_v58 }
  0x58   :  { %792 = vmatpush1.bf16.msra.mxu0 %v2215_v60  ;;  %833 = vmatpush1.bf16.msra.mxu1 %v2220_v61 }
  0x59   :  { %793 = vmatprep.subr.bf16.mxu0 %v2228_v63  ;;  %834 = vmatprep.subr.bf16.mxu1 %v2233_v0 }
  0x5c   :  { %794 = vmatpush1.bf16.msra.mxu0 %v2245_v3  ;;  %835 = vmatpush1.bf16.msra.mxu1 %v2250_v4 }
  0x5d   :  { %795 = vmatprep.subr.bf16.mxu0 %v2257_v5  ;;  %836 = vmatprep.subr.bf16.mxu1 %v2262_v6 }
  0x60   :  { %796 = vmatpush1.bf16.msra.mxu0 %v2270_v7  ;;  %837 = vmatpush1.bf16.msra.mxu1 %v2275_v8 }
  0x61   :  { %901 = vmatprep.subr.bf16.mxu0 %v2064_v33  ;;  %942 = vmatprep.subr.bf16.mxu1 %v2069_v34 }
  0xf6   :  { %v2334_v21 = vpop.f32.mrb[0].mxu0  ;;  %v2336_v22 = vpop.f32.mrb[0].mxu1 }
  0xf7   :  { %v319_v25 = vpop.f32.mrb[1].mxu0  ;;  %v392_v26 = vpop.f32.mrb[1].mxu1 }
  0xf8   :  { %v321_v28 = vpop.f32.mrb[2].mxu0  ;;  %v394_v29 = vpop.f32.mrb[2].mxu1 }
  0xf9   :  { %v2340_v30 = vadd.f32 %v321_v28, %v82_v24  ;;  %v323_v31 = vpop.f32.mrb[3].mxu0  ;;  %v2343_v32 = vadd.f32 %v394_v29, %v2332_v20  ;;  %v396_v35 = vpop.f32.mrb[3].mxu1 }
  0xfa   :  { %v2345_v44 = vadd.f32 %v323_v31, %v86_v27  ;;  %v2348_v53 = vadd.f32 %v396_v35, %v2338_v23 }
  0xfe   :  { %v327_v59 = vpop.f32.mrb[4].mxu0  ;;  %v400_v62 = vpop.f32.mrb[4].mxu1 }
  0xff   :  { %v2350_v2 = vadd.f32 %v327_v59, %v82_v24  ;;  %v329_v10 = vpop.f32.mrb[5].mxu0  ;;  %v2353_v11 = vadd.f32 %v400_v62, %v2332_v20  ;;  %v402_v12 = vpop.f32.mrb[5].mxu1 }
 0x100   :  { %v2355_v13 = vadd.f32 %v329_v10, %v86_v27  ;;  %v331_v14 = vpop.f32.mrb[6].mxu0  ;;  %v2358_v15 = vadd.f32 %v402_v12, %v2338_v23  ;;  %v404_v16 = vpop.f32.mrb[6].mxu1 }
 0x101   :  { %2887 = vst [vmem:[#allocation5_spill] sm:$0xff] %v2353_v11  ;;  %v2360_v17 = vadd.f32 %v331_v14, %v82_v24  ;;  %v333_v18 = vpop.f32.mrb[7].mxu0  ;;  %v2363_v19 = vadd.f32 %v404_v16, %v2332_v20  ;;  %v406_v28 = vpop.f32.mrb[7].mxu1 }
 0x102   :  { %2888 = vst [vmem:[#allocation6_spill] sm:$0xff] %v2355_v13  ;;  %2889 = vst [vmem:[#allocation7_spill] sm:$0xff] %v2358_v15  ;;  %v2365_v29 = vadd.f32 %v333_v18, %v86_v27  ;;  %v2368_v31 = vadd.f32 %v406_v28, %v2338_v23 }
 0x103   :  { %2890 = vst [vmem:[#allocation8_spill] sm:$0xff] %v2360_v17  ;;  %2891 = vst [vmem:[#allocation9_spill] sm:$0xff] %v2363_v19 }
 0x104   :  { %2892 = vst [vmem:[#allocation10_spill] sm:$0xff] %v2365_v29  ;;  %2893 = vst [vmem:[#allocation11_spill] sm:$0xff] %v2368_v31 }
 0x106   :  { %v337_v35 = vpop.f32.mrb[8].mxu0  ;;  %v410_v59 = vpop.f32.mrb[8].mxu1 }
 0x107   :  { %v2370_v62 = vadd.f32 %v337_v35, %v82_v24  ;;  %v339_v10 = vpop.f32.mrb[9].mxu0  ;;  %v2373_v12 = vadd.f32 %v410_v59, %v2332_v20  ;;  %v412_v14 = vpop.f32.mrb[9].mxu1 }
 0x108   :  { %v2375_v1 = vadd.f32 %v339_v10, %v86_v27  ;;  %v341_v17 = vpop.f32.mrb[10].mxu0  ;;  %v2378_v16 = vadd.f32 %v412_v14, %v2338_v23  ;;  %v414_v18 = vpop.f32.mrb[10].mxu1 }
 0x109   :  { %2894 = vst [vmem:[#allocation12_spill] sm:$0xff] %v2370_v62  ;;  %2895 = vst [vmem:[#allocation13_spill] sm:$0xff] %v2373_v12  ;;  %v2380_v29 = vadd.f32 %v341_v17, %v82_v24  ;;  %v343_v28 = vpop.f32.mrb[11].mxu0  ;;  %v2383_v31 = vadd.f32 %v414_v18, %v2332_v20  ;;  %v416_v35 = vpop.f32.mrb[11].mxu1 }
 0x10a   :  { %2896 = vst [vmem:[#allocation14_spill] sm:$0xff] %v2375_v1  ;;  %2897 = vst [vmem:[#allocation15_spill] sm:$0xff] %v2378_v16  ;;  %v2385_v62 = vadd.f32 %v343_v28, %v86_v27  ;;  %v2388_v59 = vadd.f32 %v416_v35, %v2338_v23 }
 0x10b   :  { %2898 = vst [vmem:[#allocation16_spill] sm:$0xff] %v2380_v29  ;;  %2899 = vst [vmem:[#allocation17_spill] sm:$0xff] %v2383_v31 }
 0x10c   :  { %2900 = vst [vmem:[#allocation18_spill] sm:$0xff] %v2385_v62  ;;  %2901 = vst [vmem:[#allocation19_spill] sm:$0xff] %v2388_v59 }
 0x10e   :  { %v347_v12 = vpop.f32.mrb[12].mxu0  ;;  %v420_v10 = vpop.f32.mrb[12].mxu1 }
 0x10f   :  { %v2390_v1 = vadd.f32 %v347_v12, %v82_v24  ;;  %v349_v19 = vpop.f32.mrb[13].mxu0  ;;  %v2393_v14 = vadd.f32 %v420_v10, %v2332_v20  ;;  %v422_v17 = vpop.f32.mrb[13].mxu1 }
 0x110   :  { %v2395_v29 = vadd.f32 %v349_v19, %v86_v27  ;;  %v351_v16 = vpop.f32.mrb[14].mxu0  ;;  %v2398_v18 = vadd.f32 %v422_v17, %v2338_v23  ;;  %v424_v28 = vpop.f32.mrb[14].mxu1  ;;  %v318_v19 = vadd.f32 %v2334_v21, %v82_v24  ;;  %v320_v17 = vadd.f32 %v319_v25, %v86_v27 }
 0x111   :  { %2902 = vst [vmem:[#allocation20_spill] sm:$0xff] %v2390_v1  ;;  %2903 = vst [vmem:[#allocation21_spill] sm:$0xff] %v2393_v14  ;;  %v2400_v62 = vadd.f32 %v351_v16, %v82_v24  ;;  %v353_v35 = vpop.f32.mrb[15].mxu0  ;;  %v2403_v59 = vadd.f32 %v424_v28, %v2332_v20  ;;  %v426_v12 = vpop.f32.mrb[15].mxu1 }
 0x112   :  { %2904 = vst [vmem:[#allocation22_spill] sm:$0xff] %v2395_v29  ;;  %2905 = vst [vmem:[#allocation23_spill] sm:$0xff] %v2398_v18  ;;  %v2405_v1 = vadd.f32 %v353_v35, %v86_v27  ;;  %v2408_v10 = vadd.f32 %v426_v12, %v2338_v23  ;;  %v391_v29 = vadd.f32 %v2336_v22, %v2332_v20  ;;  %v35_v27 = vld [vmem:[%s2882_s6] sm:$0xff] }
 0x113   :  { %2906 = vst [vmem:[#allocation24_spill] sm:$0xff] %v2400_v62  ;;  %2907 = vst [vmem:[#allocation25_spill] sm:$0xff] %v2403_v59  ;;  %v393_v18 = vadd.f32 %v392_v26, %v2338_v23 }
 0x114   :  { %2908 = vst [vmem:[#allocation26_spill] sm:$0xff] %v2405_v1  ;;  %2909 = vst [vmem:[#allocation27_spill] sm:$0xff] %v2408_v10 }
 0x116   :  { %v696_v16 = vpop.f32.mrb[16].mxu0  ;;  %v737_v62 = vpop.f32.mrb[16].mxu1 }
 0x117   :  { %v744_v14 = vadd.f32 %v696_v16, %v318_v19  ;;  %v746_v31 = vadd.f32 %v737_v62, %v391_v29  ;;  %v698_v28 = vpop.f32.mrb[17].mxu0  ;;  %v739_v59 = vpop.f32.mrb[17].mxu1 }
 0x118   :  { %v745_v15 = vadd.f32 %v698_v28, %v320_v17  ;;  %v747_v35 = vadd.f32 %v739_v59, %v393_v18  ;;  %v700_v1 = vpop.f32.mrb[18].mxu0  ;;  %v741_v13 = vpop.f32.mrb[18].mxu1  ;;  %v2910_v28 = vmov 0  }
 0x119   :  { %v748_v12 = vmul.f32 0.5, %v744_v14  ;;  %v701_v10 = vpop.f32.mrb[19].mxu0  ;;  %v742_v11 = vpop.f32.mrb[19].mxu1 }
 0x11a   :  { %v752_v21 = vmul.f32 0.5, %v745_v15  ;;  %v757_v20 = vmul.f32 0.5, %v747_v35  ;;  %v771_v29 = vpop.permute.xlu0 %770  ;;  %v1128_v35 = vsel %vm1127_vm6, 1, %v2910_v28 }
 0x11b   :  { %1803 = vtanh.f32 %v748_v12  ;;  %vm772_vm4 = vcmp.eq.s32.totalorder %v771_v29, 1  ;;  %v1368_v12 = vsel %vm1367_vm7, 1, %v2910_v28 }
 0x11c   :  { %1805 = vtanh.f32 %v752_v21  ;;  %v1608_v21 = vsel %vm1607_vm8, 1, %v2910_v28 }
 0x11d   :  { %1807 = vtanh.f32 %v746_v31 }
 0x11e   :  { %1809 = vtanh.f32 %v757_v20 }
 0x125   :  { %v1804_v22 = vpop.eup %1803 }
 0x126   :  { %v1806_v23 = vpop.eup %1805  ;;  %v750_v24 = vadd.f32 1.0, %v1804_v22 }
 0x127   :  { %v754_v25 = vadd.f32 1.0, %v1806_v23  ;;  %v1808_v1 = vpop.eup %1807 }
 0x128   :  { %v751_v26 = vmul.f32 0.5, %v750_v24  ;;  %v1810_v59 = vpop.eup %1809 }
 0x129   :  { %v755_v13 = vmul.f32 0.5, %v754_v25  ;;  %v759_v14 = vadd.f32 1.0, %v1810_v59 }
 0x12a   :  { %v762_v62 = vmul.f32 %v1808_v1, %v751_v26 }
 0x12b   :  { %v761_v11 = vmul.f32 %v755_v13, %v35_v27  ;;  %v760_v18 = vmul.f32 0.5, %v759_v14 }
 0x12d   :  { %v763_v15 = vadd.f32 %v762_v62, %v761_v11 }
 0x12f   :  { %1811 = vtanh.f32 %v763_v15  ;;  %v2417_v31 = vsel %vm772_vm4, %v763_v15, %v35_v27 }
 0x139   :  { %v1812_v10 = vpop.eup %1811 }
 0x13a   :  { %v765_v19 = vmul.f32 %v1812_v10, %v760_v18 }
 0x13c   :  { %v2420_v17 = vsel %vm772_vm4, %v765_v19, %v2280_v9  ;;  %v1008_v9 = vsel %vm1007_vm5, 1, %v2910_v28 }
 0x13d   :  { %v780_v16 = vpack.c.bf16 %v2420_v17, %v2420_v17  ;;  %1010 = vperm.xlu1 %1702, %v1008_v9   ;;  %v891_v9 = vpop.permute.xlu0 %890 }
 0x13e   :  { %vm892_vm9 = vcmp.eq.s32.totalorder %v891_v9, 1 }
 0x13f   :  { %814 = vmatmul.mubr.bf16.vlgmr.msra.gmra.mrb[20].mxu0 %v780_v16  ;;  %855 = vmatmul.mubr.bf16.vlgmr.msra.gmra.mrb[20].mxu1 %v780_v16 }
 0x140   :  { %902 = vmatpush1.bf16.msra.mxu0 %v2077_v36  ;;  %943 = vmatpush1.bf16.msra.mxu1 %v2082_v37 }
 0x141   :  { %903 = vmatprep.subr.bf16.mxu0 %v2089_v38  ;;  %944 = vmatprep.subr.bf16.mxu1 %v2094_v39 }
 0x142   :  { %933 = vmatprep.mubr.bf16.mxu0 %v2910_v28  ;;  %974 = vmatprep.mubr.bf16.mxu1 %v2910_v28 }
 0x143   :  { %1130 = vperm.xlu1 %1702, %v1128_v35  }
 0x144   :  { %904 = vmatpush1.bf16.msra.mxu0 %v2099_v40  ;;  %945 = vmatpush1.bf16.msra.mxu1 %v2106_v41 }
 0x145   :  { %905 = vmatprep.subr.bf16.mxu0 %v2113_v42  ;;  %946 = vmatprep.subr.bf16.mxu1 %v2118_v43 }
 0x147   :  { %1370 = vperm.xlu1 %1702, %v1368_v12  }
 0x148   :  { %906 = vmatpush1.bf16.msra.mxu0 %v2128_v45  ;;  %947 = vmatpush1.bf16.msra.mxu1 %v2133_v46 }
 0x149   :  { %907 = vmatprep.subr.bf16.mxu0 %v2140_v47  ;;  %948 = vmatprep.subr.bf16.mxu1 %v2147_v48 }
 0x14b   :  { %1610 = vperm.xlu1 %1702, %v1608_v21  }
 0x14c   :  { %908 = vmatpush1.bf16.msra.mxu0 %v2152_v49  ;;  %949 = vmatpush1.bf16.msra.mxu1 %v2157_v50 }
 0x14d   :  { %909 = vmatprep.subr.bf16.mxu0 %v2164_v51  ;;  %950 = vmatprep.subr.bf16.mxu1 %v2171_v52 }
 0x150   :  { %910 = vmatpush1.bf16.msra.mxu0 %v2188_v55  ;;  %951 = vmatpush1.bf16.msra.mxu1 %v2193_v56 }
 0x151   :  { %911 = vmatprep.subr.bf16.mxu0 %v2201_v57  ;;  %952 = vmatprep.subr.bf16.mxu1 %v2206_v58 }
 0x154   :  { %912 = vmatpush1.bf16.msra.mxu0 %v2215_v60  ;;  %953 = vmatpush1.bf16.msra.mxu1 %v2220_v61 }
 0x155   :  { %913 = vmatprep.subr.bf16.mxu0 %v2228_v63  ;;  %954 = vmatprep.subr.bf16.mxu1 %v2233_v0 }
 0x158   :  { %914 = vmatpush1.bf16.msra.mxu0 %v2245_v3  ;;  %955 = vmatpush1.bf16.msra.mxu1 %v2250_v4 }
 0x159   :  { %915 = vmatprep.subr.bf16.mxu0 %v2257_v5  ;;  %956 = vmatprep.subr.bf16.mxu1 %v2262_v6 }
 0x15c   :  { %916 = vmatpush1.bf16.msra.mxu0 %v2270_v7  ;;  %957 = vmatpush1.bf16.msra.mxu1 %v2275_v8 }
 0x15d   :  { %1021 = vmatprep.subr.bf16.mxu0 %v2064_v33  ;;  %1062 = vmatprep.subr.bf16.mxu1 %v2069_v34 }
 0x212   :  { %v815_v20 = vpop.f32.mrb[20].mxu0  ;;  %v856_v22 = vpop.f32.mrb[20].mxu1 }
 0x213   :  { %v863_v23 = vadd.f32 %v815_v20, %v2340_v30  ;;  %v865_v24 = vadd.f32 %v856_v22, %v2343_v32  ;;  %v817_v25 = vpop.f32.mrb[21].mxu0  ;;  %v858_v26 = vpop.f32.mrb[21].mxu1 }
 0x214   :  { %v864_v27 = vadd.f32 %v817_v25, %v2345_v44  ;;  %v866_v1 = vadd.f32 %v858_v26, %v2348_v53  ;;  %v819_v13 = vpop.f32.mrb[22].mxu0  ;;  %v860_v29 = vpop.f32.mrb[22].mxu1 }
 0x215   :  { %v867_v62 = vmul.f32 0.5, %v863_v23  ;;  %v820_v54 = vpop.f32.mrb[23].mxu0  ;;  %v861_v11 = vpop.f32.mrb[23].mxu1 }
 0x216   :  { %v871_v15 = vmul.f32 0.5, %v864_v27  ;;  %v876_v59 = vmul.f32 0.5, %v866_v1  ;;  %v2911_v1 = vld [vmem:[#allocation5_spill] sm:$0xff]  ;;  %v2912_v54 = vld [vmem:[#allocation6_spill] sm:$0xff] }
 0x217   :  { %1813 = vtanh.f32 %v867_v62 }
 0x218   :  { %1815 = vtanh.f32 %v871_v15  ;;  %v2913_v15 = vld [vmem:[#allocation7_spill] sm:$0xff] }
 0x219   :  { %1817 = vtanh.f32 %v865_v24 }
 0x21a   :  { %1819 = vtanh.f32 %v876_v59 }
 0x221   :  { %v1814_v14 = vpop.eup %1813 }
 0x222   :  { %v1816_v30 = vpop.eup %1815  ;;  %v869_v18 = vadd.f32 1.0, %v1814_v14 }
 0x223   :  { %v873_v32 = vadd.f32 1.0, %v1816_v30  ;;  %v1818_v19 = vpop.eup %1817 }
 0x224   :  { %v870_v10 = vmul.f32 0.5, %v869_v18  ;;  %v1820_v21 = vpop.eup %1819 }
 0x225   :  { %v874_v44 = vmul.f32 0.5, %v873_v32  ;;  %v878_v20 = vadd.f32 1.0, %v1820_v21 }
 0x226   :  { %v881_v16 = vmul.f32 %v1818_v19, %v870_v10 }
 0x227   :  { %v880_v53 = vmul.f32 %v874_v44, %v2417_v31  ;;  %v879_v22 = vmul.f32 0.5, %v878_v20 }
 0x229   :  { %v882_v35 = vadd.f32 %v881_v16, %v880_v53 }
 0x22b   :  { %1821 = vtanh.f32 %v882_v35  ;;  %v2472_v12 = vsel %vm892_vm9, %v882_v35, %v2417_v31 }
 0x235   :  { %v1822_v23 = vpop.eup %1821 }
 0x236   :  { %v884_v24 = vmul.f32 %v1822_v23, %v879_v22  ;;  %v1011_v22 = vpop.permute.xlu1 %1010 }
 0x237   :  { %vm1012_vm10 = vcmp.eq.s32.totalorder %v1011_v22, 1 }
 0x238   :  { %v2475_v25 = vsel %vm892_vm9, %v884_v24, %v2420_v17 }
 0x239   :  { %v900_v26 = vpack.c.bf16 %v2475_v25, %v2475_v25 }
 0x23b   :  { %934 = vmatmul.mubr.bf16.vlgmr.msra.gmra.mrb[24].mxu0 %v900_v26  ;;  %975 = vmatmul.mubr.bf16.vlgmr.msra.gmra.mrb[24].mxu1 %v900_v26 }
 0x23c   :  { %1022 = vmatpush1.bf16.msra.mxu0 %v2077_v36  ;;  %1063 = vmatpush1.bf16.msra.mxu1 %v2082_v37 }
 0x23d   :  { %1023 = vmatprep.subr.bf16.mxu0 %v2089_v38  ;;  %1064 = vmatprep.subr.bf16.mxu1 %v2094_v39 }
 0x23e   :  { %1053 = vmatprep.mubr.bf16.mxu0 %v2910_v28  ;;  %1094 = vmatprep.mubr.bf16.mxu1 %v2910_v28 }
 0x240   :  { %1024 = vmatpush1.bf16.msra.mxu0 %v2099_v40  ;;  %1065 = vmatpush1.bf16.msra.mxu1 %v2106_v41 }
 0x241   :  { %1025 = vmatprep.subr.bf16.mxu0 %v2113_v42  ;;  %1066 = vmatprep.subr.bf16.mxu1 %v2118_v43 }
 0x244   :  { %1026 = vmatpush1.bf16.msra.mxu0 %v2128_v45  ;;  %1067 = vmatpush1.bf16.msra.mxu1 %v2133_v46 }
 0x245   :  { %1027 = vmatprep.subr.bf16.mxu0 %v2140_v47  ;;  %1068 = vmatprep.subr.bf16.mxu1 %v2147_v48 }
 0x248   :  { %1028 = vmatpush1.bf16.msra.mxu0 %v2152_v49  ;;  %1069 = vmatpush1.bf16.msra.mxu1 %v2157_v50 }
 0x249   :  { %1029 = vmatprep.subr.bf16.mxu0 %v2164_v51  ;;  %1070 = vmatprep.subr.bf16.mxu1 %v2171_v52 }
 0x24c   :  { %1030 = vmatpush1.bf16.msra.mxu0 %v2188_v55  ;;  %1071 = vmatpush1.bf16.msra.mxu1 %v2193_v56 }
 0x24d   :  { %1031 = vmatprep.subr.bf16.mxu0 %v2201_v57  ;;  %1072 = vmatprep.subr.bf16.mxu1 %v2206_v58 }
 0x250   :  { %1032 = vmatpush1.bf16.msra.mxu0 %v2215_v60  ;;  %1073 = vmatpush1.bf16.msra.mxu1 %v2220_v61 }
 0x251   :  { %1033 = vmatprep.subr.bf16.mxu0 %v2228_v63  ;;  %1074 = vmatprep.subr.bf16.mxu1 %v2233_v0 }
 0x254   :  { %1034 = vmatpush1.bf16.msra.mxu0 %v2245_v3  ;;  %1075 = vmatpush1.bf16.msra.mxu1 %v2250_v4 }
 0x255   :  { %1035 = vmatprep.subr.bf16.mxu0 %v2257_v5  ;;  %1076 = vmatprep.subr.bf16.mxu1 %v2262_v6 }
 0x258   :  { %1036 = vmatpush1.bf16.msra.mxu0 %v2270_v7  ;;  %1077 = vmatpush1.bf16.msra.mxu1 %v2275_v8 }
 0x259   :  { %1141 = vmatprep.subr.bf16.mxu0 %v2064_v33  ;;  %1182 = vmatprep.subr.bf16.mxu1 %v2069_v34 }
 0x30e   :  { %v935_v31 = vpop.f32.mrb[24].mxu0  ;;  %v976_v17 = vpop.f32.mrb[24].mxu1 }
 0x30f   :  { %v983_v27 = vadd.f32 %v935_v31, %v2350_v2  ;;  %v985_v13 = vadd.f32 %v976_v17, %v2911_v1  ;;  %v937_v29 = vpop.f32.mrb[25].mxu0  ;;  %v978_v62 = vpop.f32.mrb[25].mxu1 }
 0x310   :  { %v984_v11 = vadd.f32 %v937_v29, %v2912_v54  ;;  %v986_v59 = vadd.f32 %v978_v62, %v2913_v15  ;;  %v939_v14 = vpop.f32.mrb[26].mxu0  ;;  %v980_v30 = vpop.f32.mrb[26].mxu1  ;;  %v2916_v15 = vld [vmem:[#allocation10_spill] sm:$0xff] }
 0x311   :  { %v987_v18 = vmul.f32 0.5, %v983_v27  ;;  %v940_v32 = vpop.f32.mrb[27].mxu0  ;;  %v981_v10 = vpop.f32.mrb[27].mxu1  ;;  %v2917_v14 = vld [vmem:[#allocation11_spill] sm:$0xff] }
 0x312   :  { %v991_v19 = vmul.f32 0.5, %v984_v11  ;;  %v996_v44 = vmul.f32 0.5, %v986_v59 }
 0x313   :  { %1823 = vtanh.f32 %v987_v18 }
 0x314   :  { %1825 = vtanh.f32 %v991_v19 }
 0x315   :  { %1827 = vtanh.f32 %v985_v13 }
 0x316   :  { %1829 = vtanh.f32 %v996_v44 }
 0x31d   :  { %v1824_v16 = vpop.eup %1823 }
 0x31e   :  { %v1826_v2 = vpop.eup %1825  ;;  %v989_v53 = vadd.f32 1.0, %v1824_v16 }
 0x31f   :  { %v993_v9 = vadd.f32 1.0, %v1826_v2  ;;  %v1828_v21 = vpop.eup %1827 }
 0x320   :  { %v990_v35 = vmul.f32 0.5, %v989_v53  ;;  %v1830_v17 = vpop.eup %1829 }
 0x321   :  { %v994_v20 = vmul.f32 0.5, %v993_v9  ;;  %v998_v27 = vadd.f32 1.0, %v1830_v17 }
 0x322   :  { %v1001_v23 = vmul.f32 %v1828_v21, %v990_v35 }
 0x323   :  { %v1000_v24 = vmul.f32 %v994_v20, %v2472_v12  ;;  %v999_v1 = vmul.f32 0.5, %v998_v27 }
 0x325   :  { %v1002_v26 = vadd.f32 %v1001_v23, %v1000_v24  ;;  %v1131_v24 = vpop.permute.xlu1 %1130 }
 0x326   :  { %vm1132_vm11 = vcmp.eq.s32.totalorder %v1131_v24, 1  ;;  %v2713_v24 = vld [vmem:[%s2878_s3 + $0x68] ss:$16 sps:$4 sm:$0xff]  }
 0x327   :  { %1831 = vtanh.f32 %v1002_v26  ;;  %v2519_v31 = vsel %vm1012_vm10, %v1002_v26, %v2472_v12 }
 0x331   :  { %v1832_v13 = vpop.eup %1831 }
 0x332   :  { %v1004_v29 = vmul.f32 %v1832_v13, %v999_v1 }
 0x334   :  { %v2522_v62 = vsel %vm1012_vm10, %v1004_v29, %v2475_v25 }
 0x335   :  { %v1020_v54 = vpack.c.bf16 %v2522_v62, %v2522_v62 }
 0x337   :  { %1054 = vmatmul.mubr.bf16.vlgmr.msra.gmra.mrb[28].mxu0 %v1020_v54  ;;  %1095 = vmatmul.mubr.bf16.vlgmr.msra.gmra.mrb[28].mxu1 %v1020_v54 }
 0x338   :  { %1142 = vmatpush1.bf16.msra.mxu0 %v2077_v36  ;;  %1183 = vmatpush1.bf16.msra.mxu1 %v2082_v37 }
 0x339   :  { %1143 = vmatprep.subr.bf16.mxu0 %v2089_v38  ;;  %1184 = vmatprep.subr.bf16.mxu1 %v2094_v39  ;;  %v2914_v38 = vld [vmem:[#allocation8_spill] sm:$0xff] }
 0x33a   :  { %1173 = vmatprep.mubr.bf16.mxu0 %v2910_v28  ;;  %1214 = vmatprep.mubr.bf16.mxu1 %v2910_v28 }
 0x33c   :  { %1144 = vmatpush1.bf16.msra.mxu0 %v2099_v40  ;;  %1185 = vmatpush1.bf16.msra.mxu1 %v2106_v41  ;;  %v2915_v40 = vld [vmem:[#allocation9_spill] sm:$0xff] }
 0x33d   :  { %1145 = vmatprep.subr.bf16.mxu0 %v2113_v42  ;;  %1186 = vmatprep.subr.bf16.mxu1 %v2118_v43 }
 0x340   :  { %1146 = vmatpush1.bf16.msra.mxu0 %v2128_v45  ;;  %1187 = vmatpush1.bf16.msra.mxu1 %v2133_v46 }
 0x341   :  { %1147 = vmatprep.subr.bf16.mxu0 %v2140_v47  ;;  %1188 = vmatprep.subr.bf16.mxu1 %v2147_v48 }
 0x344   :  { %1148 = vmatpush1.bf16.msra.mxu0 %v2152_v49  ;;  %1189 = vmatpush1.bf16.msra.mxu1 %v2157_v50 }
 0x345   :  { %1149 = vmatprep.subr.bf16.mxu0 %v2164_v51  ;;  %1190 = vmatprep.subr.bf16.mxu1 %v2171_v52 }
 0x348   :  { %1150 = vmatpush1.bf16.msra.mxu0 %v2188_v55  ;;  %1191 = vmatpush1.bf16.msra.mxu1 %v2193_v56 }
 0x349   :  { %1151 = vmatprep.subr.bf16.mxu0 %v2201_v57  ;;  %1192 = vmatprep.subr.bf16.mxu1 %v2206_v58 }
 0x34c   :  { %1152 = vmatpush1.bf16.msra.mxu0 %v2215_v60  ;;  %1193 = vmatpush1.bf16.msra.mxu1 %v2220_v61 }
 0x34d   :  { %1153 = vmatprep.subr.bf16.mxu0 %v2228_v63  ;;  %1194 = vmatprep.subr.bf16.mxu1 %v2233_v0 }
 0x350   :  { %1154 = vmatpush1.bf16.msra.mxu0 %v2245_v3  ;;  %1195 = vmatpush1.bf16.msra.mxu1 %v2250_v4 }
 0x351   :  { %1155 = vmatprep.subr.bf16.mxu0 %v2257_v5  ;;  %1196 = vmatprep.subr.bf16.mxu1 %v2262_v6 }
 0x354   :  { %1156 = vmatpush1.bf16.msra.mxu0 %v2270_v7  ;;  %1197 = vmatpush1.bf16.msra.mxu1 %v2275_v8 }
 0x355   :  { %1261 = vmatprep.subr.bf16.mxu0 %v2064_v33  ;;  %1302 = vmatprep.subr.bf16.mxu1 %v2069_v34 }
 0x40a   :  { %v1055_v36 = vpop.f32.mrb[28].mxu0  ;;  %v1096_v37 = vpop.f32.mrb[28].mxu1 }
 0x40b   :  { %v1103_v39 = vadd.f32 %v1055_v36, %v2914_v38  ;;  %v1105_v12 = vadd.f32 %v1096_v37, %v2915_v40  ;;  %v1057_v25 = vpop.f32.mrb[29].mxu0  ;;  %v1098_v11 = vpop.f32.mrb[29].mxu1  ;;  %v2576_v38 = vld [vmem:[%s2878_s3] ss:$16 sps:$4 sm:$0xff]  }
 0x40c   :  { %v1104_v59 = vadd.f32 %v1057_v25, %v2916_v15  ;;  %v1106_v30 = vadd.f32 %v1098_v11, %v2917_v14  ;;  %v1059_v18 = vpop.f32.mrb[30].mxu0  ;;  %v1100_v32 = vpop.f32.mrb[30].mxu1  ;;  %v2602_v40 = vld [vmem:[%s2878_s3 + $0x20] ss:$16 sps:$4 sm:$0xff]  }
 0x40d   :  { %v1107_v10 = vmul.f32 0.5, %v1103_v39  ;;  %v1060_v19 = vpop.f32.mrb[31].mxu0  ;;  %v1101_v44 = vpop.f32.mrb[31].mxu1  ;;  %v2594_v39 = vld [vmem:[%s2878_s3 + $0x2c] ss:$16 sps:$4 sm:$0xff]  }
 0x40e   :  { %v1111_v33 = vmul.f32 0.5, %v1104_v59  ;;  %v1116_v34 = vmul.f32 0.5, %v1106_v30  ;;  %v1251_v14 = vpop.permute.xlu0 %1250 }
 0x40f   :  { %1833 = vtanh.f32 %v1107_v10  ;;  %vm1252_vm12 = vcmp.eq.s32.totalorder %v1251_v14, 1 }
 0x410   :  { %1835 = vtanh.f32 %v1111_v33 }
 0x411   :  { %1837 = vtanh.f32 %v1105_v12 }
 0x412   :  { %1839 = vtanh.f32 %v1116_v34 }
 0x419   :  { %v1834_v16 = vpop.eup %1833 }
 0x41a   :  { %v1836_v2 = vpop.eup %1835  ;;  %v1109_v53 = vadd.f32 1.0, %v1834_v16 }
 0x41b   :  { %v1113_v9 = vadd.f32 1.0, %v1836_v2  ;;  %v1838_v21 = vpop.eup %1837  ;;  %v2665_v2 = vld [vmem:[%s2878_s3 + $0x28] ss:$16 sps:$4 sm:$0xff]  }
 0x41c   :  { %v1110_v35 = vmul.f32 0.5, %v1109_v53  ;;  %v1840_v27 = vpop.eup %1839  ;;  %v2671_v53 = vld [vmem:[%s2878_s3 + $0x44] ss:$16 sps:$4 sm:$0xff]  }
 0x41d   :  { %v1114_v20 = vmul.f32 0.5, %v1113_v9  ;;  %v1118_v1 = vadd.f32 1.0, %v1840_v27  ;;  %v2677_v9 = vld [vmem:[%s2878_s3 + $0x4c] ss:$16 sps:$4 sm:$0xff]   ;;  %v2731_v27 = vld [vmem:[%s2878_s3 + $0x80] ss:$16 sps:$4 sm:$0xff]  }
 0x41e   :  { %v1121_v22 = vmul.f32 %v1838_v21, %v1110_v35  ;;  %v2683_v35 = vld [vmem:[%s2878_s3 + $0x40] ss:$16 sps:$4 sm:$0xff]   ;;  %v2689_v21 = vld [vmem:[%s2878_s3 + $0x48] ss:$16 sps:$4 sm:$0xff]  }
 0x41f   :  { %v1120_v23 = vmul.f32 %v1114_v20, %v2519_v31  ;;  %v1119_v13 = vmul.f32 0.5, %v1118_v1  ;;  %v2695_v20 = vld [vmem:[%s2878_s3 + $0x64] ss:$16 sps:$4 sm:$0xff]   ;;  %v2737_v1 = vld [vmem:[%s2878_s3 + $0x88] ss:$16 sps:$4 sm:$0xff]  }
 0x421   :  { %v1122_v26 = vadd.f32 %v1121_v22, %v1120_v23  ;;  %v2701_v22 = vld [vmem:[%s2878_s3 + $0x6c] ss:$16 sps:$4 sm:$0xff]   ;;  %v2707_v23 = vld [vmem:[%s2878_s3 + $0x60] ss:$16 sps:$4 sm:$0xff]  }
 0x423   :  { %1841 = vtanh.f32 %v1122_v26  ;;  %v2566_v17 = vsel %vm1132_vm11, %v1122_v26, %v2519_v31  ;;  %v2582_v31 = vld [vmem:[%s2878_s3 + $0x8] ss:$16 sps:$4 sm:$0xff]   ;;  %v2719_v26 = vld [vmem:[%s2878_s3 + $0x84] ss:$16 sps:$4 sm:$0xff]  }
 0x42d   :  { %v1842_v29 = vpop.eup %1841 }
 0x42e   :  { %v1124_v54 = vmul.f32 %v1842_v29, %v1119_v13  ;;  %v2743_v13 = vld [vmem:[%s2878_s3 + $0xa4] ss:$16 sps:$4 sm:$0xff]   ;;  %v2749_v29 = vld [vmem:[%s2878_s3 + $0xac] ss:$16 sps:$4 sm:$0xff]  }
 0x430   :  { %v2569_v36 = vsel %vm1132_vm11, %v1124_v54, %v2522_v62  ;;  %v2588_v62 = vld [vmem:[%s2878_s3 + $0x24] ss:$16 sps:$4 sm:$0xff]   ;;  %v2755_v54 = vld [vmem:[%s2878_s3 + $0xa0] ss:$16 sps:$4 sm:$0xff]  }
 0x431   :  { %v1140_v37 = vpack.c.bf16 %v2569_v36, %v2569_v36 }
 0x433   :  { %1174 = vmatmul.mubr.bf16.vlgmr.msra.gmra.mrb[32].mxu0 %v1140_v37  ;;  %1215 = vmatmul.mubr.bf16.vlgmr.msra.gmra.mrb[32].mxu1 %v1140_v37  ;;  %v2767_v37 = vld [vmem:[%s2878_s3 + $0xc4] ss:$16 sps:$4 sm:$0xff]  }
 0x434   :  { %1262 = vmatpush1.bf16.msra.mxu0 %v2576_v38  ;;  %1303 = vmatpush1.bf16.msra.mxu1 %v2582_v31 }
 0x435   :  { %1263 = vmatprep.subr.bf16.mxu0 %v2588_v62  ;;  %1304 = vmatprep.subr.bf16.mxu1 %v2594_v39 }
 0x436   :  { %1293 = vmatprep.mubr.bf16.mxu0 %v2910_v28  ;;  %1334 = vmatprep.mubr.bf16.mxu1 %v2910_v28 }
 0x438   :  { %1264 = vmatpush1.bf16.msra.mxu0 %v2602_v40  ;;  %1305 = vmatpush1.bf16.msra.mxu1 %v2106_v41  ;;  %v2633_v41 = vld [vmem:[%s2878_s3 + $0x4] ss:$16 sps:$4 sm:$0xff]  }
 0x439   :  { %1265 = vmatprep.subr.bf16.mxu0 %v2113_v42  ;;  %1306 = vmatprep.subr.bf16.mxu1 %v2118_v43  ;;  %v2639_v42 = vld [vmem:[%s2878_s3 + $0xc] ss:$16 sps:$4 sm:$0xff]  }
 0x43c   :  { %1266 = vmatpush1.bf16.msra.mxu0 %v2128_v45  ;;  %1307 = vmatpush1.bf16.msra.mxu1 %v2133_v46  ;;  %v2918_v46 = vld [vmem:[#allocation12_spill] sm:$0xff] }
 0x43d   :  { %1267 = vmatprep.subr.bf16.mxu0 %v2140_v47  ;;  %1308 = vmatprep.subr.bf16.mxu1 %v2147_v48  ;;  %v2919_v48 = vld [vmem:[#allocation13_spill] sm:$0xff] }
 0x440   :  { %1268 = vmatpush1.bf16.msra.mxu0 %v2152_v49  ;;  %1309 = vmatpush1.bf16.msra.mxu1 %v2157_v50 }
 0x441   :  { %1269 = vmatprep.subr.bf16.mxu0 %v2164_v51  ;;  %1310 = vmatprep.subr.bf16.mxu1 %v2171_v52  ;;  %v2920_v52 = vld [vmem:[#allocation14_spill] sm:$0xff] }
 0x444   :  { %1270 = vmatpush1.bf16.msra.mxu0 %v2188_v55  ;;  %1311 = vmatpush1.bf16.msra.mxu1 %v2193_v56  ;;  %v2921_v56 = vld [vmem:[#allocation15_spill] sm:$0xff] }
 0x445   :  { %1271 = vmatprep.subr.bf16.mxu0 %v2201_v57  ;;  %1312 = vmatprep.subr.bf16.mxu1 %v2206_v58 }
 0x448   :  { %1272 = vmatpush1.bf16.msra.mxu0 %v2215_v60  ;;  %1313 = vmatpush1.bf16.msra.mxu1 %v2220_v61 }
 0x449   :  { %1273 = vmatprep.subr.bf16.mxu0 %v2228_v63  ;;  %1314 = vmatprep.subr.bf16.mxu1 %v2233_v0 }
 0x44c   :  { %1274 = vmatpush1.bf16.msra.mxu0 %v2245_v3  ;;  %1315 = vmatpush1.bf16.msra.mxu1 %v2250_v4 }
 0x44d   :  { %1275 = vmatprep.subr.bf16.mxu0 %v2257_v5  ;;  %1316 = vmatprep.subr.bf16.mxu1 %v2262_v6 }
 0x450   :  { %1276 = vmatpush1.bf16.msra.mxu0 %v2270_v7  ;;  %1317 = vmatpush1.bf16.msra.mxu1 %v2275_v8 }
 0x451   :  { %1381 = vmatprep.subr.bf16.mxu0 %v2633_v41  ;;  %1422 = vmatprep.subr.bf16.mxu1 %v2639_v42 }
 0x506   :  { %v1175_v43 = vpop.f32.mrb[32].mxu0  ;;  %v1216_v45 = vpop.f32.mrb[32].mxu1 }
 0x507   :  { %v1223_v47 = vadd.f32 %v1175_v43, %v2918_v46  ;;  %v1225_v49 = vadd.f32 %v1216_v45, %v2919_v48  ;;  %v1177_v50 = vpop.f32.mrb[33].mxu0  ;;  %v1218_v51 = vpop.f32.mrb[33].mxu1  ;;  %v2773_v43 = vld [vmem:[%s2878_s3 + $0xcc] ss:$16 sps:$4 sm:$0xff]   ;;  %v2779_v45 = vld [vmem:[%s2878_s3 + $0xc0] ss:$16 sps:$4 sm:$0xff]  }
 0x508   :  { %v1224_v55 = vadd.f32 %v1177_v50, %v2920_v52  ;;  %v1226_v57 = vadd.f32 %v1218_v51, %v2921_v56  ;;  %v1179_v58 = vpop.f32.mrb[34].mxu0  ;;  %v1220_v60 = vpop.f32.mrb[34].mxu1  ;;  %v2785_v46 = vld [vmem:[%s2878_s3 + $0xc8] ss:$16 sps:$4 sm:$0xff]   ;;  %v2797_v48 = vld [vmem:[%s2878_s3 + $0xec] ss:$16 sps:$4 sm:$0xff]  }
 0x509   :  { %v1227_v61 = vmul.f32 0.5, %v1223_v47  ;;  %v1180_v63 = vpop.f32.mrb[35].mxu0  ;;  %v1221_v0 = vpop.f32.mrb[35].mxu1  ;;  %v2791_v47 = vld [vmem:[%s2878_s3 + $0xe4] ss:$16 sps:$4 sm:$0xff]  }
 0x50a   :  { %v1231_v3 = vmul.f32 0.5, %v1224_v55  ;;  %v1236_v4 = vmul.f32 0.5, %v1226_v57  ;;  %v2809_v50 = vld [vmem:[%s2878_s3 + $0xe8] ss:$16 sps:$4 sm:$0xff]   ;;  %v2923_v57 = vld [vmem:[#allocation17_spill] sm:$0xff] }
 0x50b   :  { %1843 = vtanh.f32 %v1227_v61  ;;  %v2922_v55 = vld [vmem:[#allocation16_spill] sm:$0xff]  ;;  %v2924_v63 = vld [vmem:[#allocation18_spill] sm:$0xff] }
 0x50c   :  { %1845 = vtanh.f32 %v1231_v3  ;;  %v2925_v3 = vld [vmem:[#allocation19_spill] sm:$0xff] }
 0x50d   :  { %1847 = vtanh.f32 %v1225_v49  ;;  %v2803_v49 = vld [vmem:[%s2878_s3 + $0xe0] ss:$16 sps:$4 sm:$0xff]  }
 0x50e   :  { %1849 = vtanh.f32 %v1236_v4 }
 0x515   :  { %v1844_v5 = vpop.eup %1843 }
 0x516   :  { %v1846_v6 = vpop.eup %1845  ;;  %v1229_v7 = vadd.f32 1.0, %v1844_v5 }
 0x517   :  { %v1233_v8 = vadd.f32 1.0, %v1846_v6  ;;  %v1848_v25 = vpop.eup %1847 }
 0x518   :  { %v1230_v12 = vmul.f32 0.5, %v1229_v7  ;;  %v1850_v32 = vpop.eup %1849 }
 0x519   :  { %v1234_v11 = vmul.f32 0.5, %v1233_v8  ;;  %v1238_v10 = vadd.f32 1.0, %v1850_v32 }
 0x51a   :  { %v1241_v15 = vmul.f32 %v1848_v25, %v1230_v12 }
 0x51b   :  { %v1240_v59 = vmul.f32 %v1234_v11, %v2566_v17  ;;  %v1239_v19 = vmul.f32 0.5, %v1238_v10 }
 0x51d   :  { %v1242_v30 = vadd.f32 %v1241_v15, %v1240_v59 }
 0x51f   :  { %1851 = vtanh.f32 %v1242_v30  ;;  %v2648_v18 = vsel %vm1252_vm12, %v1242_v30, %v2566_v17  ;;  %v2725_v17 = vld [vmem:[%s2878_s3 + $0x8c] ss:$16 sps:$4 sm:$0xff]  }
 0x529   :  { %v1852_v44 = vpop.eup %1851 }
 0x52a   :  { %v1244_v33 = vmul.f32 %v1852_v44, %v1239_v19  ;;  %v1371_v44 = vpop.permute.xlu1 %1370 }
 0x52b   :  { %vm1372_vm13 = vcmp.eq.s32.totalorder %v1371_v44, 1 }
 0x52c   :  { %v2651_v34 = vsel %vm1252_vm12, %v1244_v33, %v2569_v36  ;;  %v2761_v36 = vld [vmem:[%s2878_s3 + $0xa8] ss:$16 sps:$4 sm:$0xff]  }
 0x52d   :  { %v1260_v16 = vpack.c.bf16 %v2651_v34, %v2651_v34 }
 0x52f   :  { %1294 = vmatmul.mubr.bf16.vlgmr.msra.gmra.mrb[36].mxu0 %v1260_v16  ;;  %1335 = vmatmul.mubr.bf16.vlgmr.msra.gmra.mrb[36].mxu1 %v1260_v16 }
 0x530   :  { %1382 = vmatpush1.bf16.msra.mxu0 %v2576_v38  ;;  %1423 = vmatpush1.bf16.msra.mxu1 %v2582_v31 }
 0x531   :  { %1383 = vmatprep.subr.bf16.mxu0 %v2588_v62  ;;  %1424 = vmatprep.subr.bf16.mxu1 %v2594_v39 }
 0x532   :  { %1413 = vmatprep.mubr.bf16.mxu0 %v2910_v28  ;;  %1454 = vmatprep.mubr.bf16.mxu1 %v2910_v28 }
 0x534   :  { %1384 = vmatpush1.bf16.msra.mxu0 %v2602_v40  ;;  %1425 = vmatpush1.bf16.msra.mxu1 %v2665_v2 }
 0x535   :  { %1385 = vmatprep.subr.bf16.mxu0 %v2671_v53  ;;  %1426 = vmatprep.subr.bf16.mxu1 %v2677_v9 }
 0x538   :  { %1386 = vmatpush1.bf16.msra.mxu0 %v2683_v35  ;;  %1427 = vmatpush1.bf16.msra.mxu1 %v2689_v21 }
 0x539   :  { %1387 = vmatprep.subr.bf16.mxu0 %v2695_v20  ;;  %1428 = vmatprep.subr.bf16.mxu1 %v2701_v22 }
 0x53c   :  { %1388 = vmatpush1.bf16.msra.mxu0 %v2707_v23  ;;  %1429 = vmatpush1.bf16.msra.mxu1 %v2713_v24 }
 0x53d   :  { %1389 = vmatprep.subr.bf16.mxu0 %v2719_v26  ;;  %1430 = vmatprep.subr.bf16.mxu1 %v2725_v17 }
 0x540   :  { %1390 = vmatpush1.bf16.msra.mxu0 %v2731_v27  ;;  %1431 = vmatpush1.bf16.msra.mxu1 %v2737_v1 }
 0x541   :  { %1391 = vmatprep.subr.bf16.mxu0 %v2743_v13  ;;  %1432 = vmatprep.subr.bf16.mxu1 %v2749_v29 }
 0x544   :  { %1392 = vmatpush1.bf16.msra.mxu0 %v2755_v54  ;;  %1433 = vmatpush1.bf16.msra.mxu1 %v2761_v36 }
 0x545   :  { %1393 = vmatprep.subr.bf16.mxu0 %v2767_v37  ;;  %1434 = vmatprep.subr.bf16.mxu1 %v2773_v43 }
 0x548   :  { %1394 = vmatpush1.bf16.msra.mxu0 %v2779_v45  ;;  %1435 = vmatpush1.bf16.msra.mxu1 %v2785_v46 }
 0x549   :  { %1395 = vmatprep.subr.bf16.mxu0 %v2791_v47  ;;  %1436 = vmatprep.subr.bf16.mxu1 %v2797_v48 }
 0x54c   :  { %1396 = vmatpush1.bf16.msra.mxu0 %v2803_v49  ;;  %1437 = vmatpush1.bf16.msra.mxu1 %v2809_v50 }
 0x54d   :  { %1501 = vmatprep.subr.bf16.mxu0 %v2633_v41  ;;  %1542 = vmatprep.subr.bf16.mxu1 %v2639_v42 }
 0x602   :  { %v1295_v51 = vpop.f32.mrb[36].mxu0  ;;  %v1336_v52 = vpop.f32.mrb[36].mxu1 }
 0x603   :  { %v1343_v56 = vadd.f32 %v1295_v51, %v2922_v55  ;;  %v1345_v58 = vadd.f32 %v1336_v52, %v2923_v57  ;;  %v1297_v60 = vpop.f32.mrb[37].mxu0  ;;  %v1338_v61 = vpop.f32.mrb[37].mxu1 }
 0x604   :  { %v1344_v0 = vadd.f32 %v1297_v60, %v2924_v63  ;;  %v1346_v4 = vadd.f32 %v1338_v61, %v2925_v3  ;;  %v1299_v5 = vpop.f32.mrb[38].mxu0  ;;  %v1340_v6 = vpop.f32.mrb[38].mxu1 }
 0x605   :  { %v1347_v7 = vmul.f32 0.5, %v1343_v56  ;;  %v1300_v8 = vpop.f32.mrb[39].mxu0  ;;  %v1341_v12 = vpop.f32.mrb[39].mxu1 }
 0x606   :  { %v1351_v41 = vmul.f32 0.5, %v1344_v0  ;;  %v1356_v42 = vmul.f32 0.5, %v1346_v4  ;;  %v2931_v12 = vld [vmem:[#allocation25_spill] sm:$0xff] }
 0x607   :  { %1853 = vtanh.f32 %v1347_v7  ;;  %v2930_v7 = vld [vmem:[#allocation24_spill] sm:$0xff] }
 0x608   :  { %1855 = vtanh.f32 %v1351_v41 }
 0x609   :  { %1857 = vtanh.f32 %v1345_v58 }
 0x60a   :  { %1859 = vtanh.f32 %v1356_v42 }
 0x611   :  { %v1854_v25 = vpop.eup %1853 }
 0x612   :  { %v1856_v11 = vpop.eup %1855  ;;  %v1349_v15 = vadd.f32 1.0, %v1854_v25 }
 0x613   :  { %v1353_v59 = vadd.f32 1.0, %v1856_v11  ;;  %v1858_v30 = vpop.eup %1857  ;;  %v2932_v11 = vld [vmem:[#allocation26_spill] sm:$0xff] }
 0x614   :  { %v1350_v14 = vmul.f32 0.5, %v1349_v15  ;;  %v1860_v51 = vpop.eup %1859 }
 0x615   :  { %v1354_v32 = vmul.f32 0.5, %v1353_v59  ;;  %v1358_v52 = vadd.f32 1.0, %v1860_v51  ;;  %v2933_v59 = vld [vmem:[#allocation27_spill] sm:$0xff] }
 0x616   :  { %v1361_v10 = vmul.f32 %v1858_v30, %v1350_v14 }
 0x617   :  { %v1360_v19 = vmul.f32 %v1354_v32, %v2648_v18  ;;  %v1359_v55 = vmul.f32 0.5, %v1358_v52 }
 0x619   :  { %v1362_v33 = vadd.f32 %v1361_v10, %v1360_v19 }
 0x61b   :  { %1861 = vtanh.f32 %v1362_v33  ;;  %v2820_v16 = vsel %vm1372_vm13, %v1362_v33, %v2648_v18 }
 0x625   :  { %v1862_v56 = vpop.eup %1861 }
 0x626   :  { %v1364_v57 = vmul.f32 %v1862_v56, %v1359_v55 }
 0x628   :  { %v2823_v58 = vsel %vm1372_vm13, %v1364_v57, %v2651_v34 }
 0x629   :  { %v1380_v60 = vpack.c.bf16 %v2823_v58, %v2823_v58 }
 0x62b   :  { %1414 = vmatmul.mubr.bf16.vlgmr.msra.gmra.mrb[40].mxu0 %v1380_v60  ;;  %1455 = vmatmul.mubr.bf16.vlgmr.msra.gmra.mrb[40].mxu1 %v1380_v60 }
 0x62c   :  { %1502 = vmatpush1.bf16.msra.mxu0 %v2576_v38  ;;  %1543 = vmatpush1.bf16.msra.mxu1 %v2582_v31  ;;  %v2926_v31 = vld [vmem:[#allocation20_spill] sm:$0xff] }
 0x62d   :  { %1503 = vmatprep.subr.bf16.mxu0 %v2588_v62  ;;  %1544 = vmatprep.subr.bf16.mxu1 %v2594_v39  ;;  %v2927_v39 = vld [vmem:[#allocation21_spill] sm:$0xff] }
 0x62e   :  { %1533 = vmatprep.mubr.bf16.mxu0 %v2910_v28  ;;  %1574 = vmatprep.mubr.bf16.mxu1 %v2910_v28 }
 0x630   :  { %1504 = vmatpush1.bf16.msra.mxu0 %v2602_v40  ;;  %1545 = vmatpush1.bf16.msra.mxu1 %v2665_v2  ;;  %v2928_v2 = vld [vmem:[#allocation22_spill] sm:$0xff] }
 0x631   :  { %1505 = vmatprep.subr.bf16.mxu0 %v2671_v53  ;;  %1546 = vmatprep.subr.bf16.mxu1 %v2677_v9  ;;  %v2929_v9 = vld [vmem:[#allocation23_spill] sm:$0xff] }
 0x634   :  { %1506 = vmatpush1.bf16.msra.mxu0 %v2683_v35  ;;  %1547 = vmatpush1.bf16.msra.mxu1 %v2689_v21 }
 0x635   :  { %1507 = vmatprep.subr.bf16.mxu0 %v2695_v20  ;;  %1548 = vmatprep.subr.bf16.mxu1 %v2701_v22 }
 0x638   :  { %1508 = vmatpush1.bf16.msra.mxu0 %v2707_v23  ;;  %1549 = vmatpush1.bf16.msra.mxu1 %v2713_v24 }
 0x639   :  { %1509 = vmatprep.subr.bf16.mxu0 %v2719_v26  ;;  %1550 = vmatprep.subr.bf16.mxu1 %v2725_v17 }
 0x63c   :  { %1510 = vmatpush1.bf16.msra.mxu0 %v2731_v27  ;;  %1551 = vmatpush1.bf16.msra.mxu1 %v2737_v1 }
 0x63d   :  { %1511 = vmatprep.subr.bf16.mxu0 %v2743_v13  ;;  %1552 = vmatprep.subr.bf16.mxu1 %v2749_v29 }
 0x640   :  { %1512 = vmatpush1.bf16.msra.mxu0 %v2755_v54  ;;  %1553 = vmatpush1.bf16.msra.mxu1 %v2761_v36 }
 0x641   :  { %1513 = vmatprep.subr.bf16.mxu0 %v2767_v37  ;;  %1554 = vmatprep.subr.bf16.mxu1 %v2773_v43 }
 0x644   :  { %1514 = vmatpush1.bf16.msra.mxu0 %v2779_v45  ;;  %1555 = vmatpush1.bf16.msra.mxu1 %v2785_v46  ;;  %v1491_v45 = vpop.permute.xlu0 %1490 }
 0x645   :  { %1515 = vmatprep.subr.bf16.mxu0 %v2791_v47  ;;  %1556 = vmatprep.subr.bf16.mxu1 %v2797_v48  ;;  %vm1492_vm14 = vcmp.eq.s32.totalorder %v1491_v45, 1 }
 0x648   :  { %1516 = vmatpush1.bf16.msra.mxu0 %v2803_v49  ;;  %1557 = vmatpush1.bf16.msra.mxu1 %v2809_v50 }
 0x6fe   :  { %v1415_v28 = vpop.f32.mrb[40].mxu0  ;;  %v1456_v38 = vpop.f32.mrb[40].mxu1 }
 0x6ff   :  { %v1463_v62 = vadd.f32 %v1415_v28, %v2926_v31  ;;  %v1465_v40 = vadd.f32 %v1456_v38, %v2927_v39  ;;  %v1417_v18 = vpop.f32.mrb[41].mxu0  ;;  %v1458_v34 = vpop.f32.mrb[41].mxu1 }
 0x700   :  { %v1464_v53 = vadd.f32 %v1417_v18, %v2928_v2  ;;  %v1466_v35 = vadd.f32 %v1458_v34, %v2929_v9  ;;  %v1419_v21 = vpop.f32.mrb[42].mxu0  ;;  %v1460_v20 = vpop.f32.mrb[42].mxu1 }
 0x701   :  { %v1467_v22 = vmul.f32 0.5, %v1463_v62  ;;  %v1420_v23 = vpop.f32.mrb[43].mxu0  ;;  %v1461_v24 = vpop.f32.mrb[43].mxu1 }
 0x702   :  { %v1471_v26 = vmul.f32 0.5, %v1464_v53  ;;  %v1476_v17 = vmul.f32 0.5, %v1466_v35  ;;  %v1611_v38 = vpop.permute.xlu1 %1610 }
 0x703   :  { %1863 = vtanh.f32 %v1467_v22  ;;  %vm1612_vm15 = vcmp.eq.s32.totalorder %v1611_v38, 1 }
 0x704   :  { %1865 = vtanh.f32 %v1471_v26 }
 0x705   :  { %1867 = vtanh.f32 %v1465_v40 }
 0x706   :  { %1869 = vtanh.f32 %v1476_v17 }
 0x70d   :  { %v1864_v27 = vpop.eup %1863 }
 0x70e   :  { %v1866_v1 = vpop.eup %1865  ;;  %v1469_v13 = vadd.f32 1.0, %v1864_v27 }
 0x70f   :  { %v1473_v29 = vadd.f32 1.0, %v1866_v1  ;;  %v1868_v36 = vpop.eup %1867 }
 0x710   :  { %v1470_v54 = vmul.f32 0.5, %v1469_v13  ;;  %v1870_v49 = vpop.eup %1869 }
 0x711   :  { %v1474_v37 = vmul.f32 0.5, %v1473_v29  ;;  %v1478_v50 = vadd.f32 1.0, %v1870_v49 }
 0x712   :  { %v1481_v43 = vmul.f32 %v1868_v36, %v1470_v54 }
 0x713   :  { %v1480_v46 = vmul.f32 %v1474_v37, %v2820_v16  ;;  %v1479_v61 = vmul.f32 0.5, %v1478_v50 }
 0x715   :  { %v1482_v47 = vadd.f32 %v1481_v43, %v1480_v46 }
 0x717   :  { %1871 = vtanh.f32 %v1482_v47  ;;  %v1494_v48 = vsel %vm1492_vm14, %v1482_v47, %v2820_v16 }
 0x721   :  { %v1872_v63 = vpop.eup %1871 }
 0x722   :  { %v1484_v0 = vmul.f32 %v1872_v63, %v1479_v61 }
 0x724   :  { %v1493_v3 = vsel %vm1492_vm14, %v1484_v0, %v2823_v58 }
 0x725   :  { %v1500_v4 = vpack.c.bf16 %v1493_v3, %v1493_v3 }
 0x727   :  { %1534 = vmatmul.mubr.bf16.vlgmr.msra.gmra.mrb[44].mxu0 %v1500_v4  ;;  %1575 = vmatmul.mubr.bf16.vlgmr.msra.gmra.mrb[44].mxu1 %v1500_v4 }
 0x7fa   :  { %v1535_v5 = vpop.f32.mrb[44].mxu0  ;;  %v1576_v6 = vpop.f32.mrb[44].mxu1 }
 0x7fb   :  { %v1583_v8 = vadd.f32 %v1535_v5, %v2930_v7  ;;  %v1585_v41 = vadd.f32 %v1576_v6, %v2931_v12  ;;  %v1537_v42 = vpop.f32.mrb[45].mxu0  ;;  %v1578_v25 = vpop.f32.mrb[45].mxu1 }
 0x7fc   :  { %v1584_v15 = vadd.f32 %v1537_v42, %v2932_v11  ;;  %v1586_v14 = vadd.f32 %v1578_v25, %v2933_v59  ;;  %v1539_v30 = vpop.f32.mrb[46].mxu0  ;;  %v1580_v32 = vpop.f32.mrb[46].mxu1 }
 0x7fd   :  { %v1587_v10 = vmul.f32 0.5, %v1583_v8  ;;  %v1540_v19 = vpop.f32.mrb[47].mxu0  ;;  %v1581_v44 = vpop.f32.mrb[47].mxu1 }
 0x7fe   :  { %v1591_v33 = vmul.f32 0.5, %v1584_v15  ;;  %v1596_v16 = vmul.f32 0.5, %v1586_v14 }
 0x7ff   :  { %1873 = vtanh.f32 %v1587_v10 }
 0x800   :  { %1875 = vtanh.f32 %v1591_v33 }
 0x801   :  { %1877 = vtanh.f32 %v1585_v41 }
 0x802   :  { %1879 = vtanh.f32 %v1596_v16 }
 0x809   :  { %v1874_v51 = vpop.eup %1873 }
 0x80a   :  { %v1876_v52 = vpop.eup %1875  ;;  %v1589_v55 = vadd.f32 1.0, %v1874_v51 }
 0x80b   :  { %v1593_v56 = vadd.f32 1.0, %v1876_v52  ;;  %v1878_v58 = vpop.eup %1877 }
 0x80c   :  { %v1590_v57 = vmul.f32 0.5, %v1589_v55  ;;  %v1880_v40 = vpop.eup %1879 }
 0x80d   :  { %v1594_v60 = vmul.f32 0.5, %v1593_v56  ;;  %v1598_v18 = vadd.f32 1.0, %v1880_v40 }
 0x80e   :  { %v1601_v28 = vmul.f32 %v1878_v58, %v1590_v57 }
 0x80f   :  { %v1600_v31 = vmul.f32 %v1594_v60, %v1494_v48  ;;  %v1599_v34 = vmul.f32 0.5, %v1598_v18 }
 0x811   :  { %v1602_v62 = vadd.f32 %v1601_v28, %v1600_v31 }
 0x813   :  { %1881 = vtanh.f32 %v1602_v62  ;;  %v1614_v39 = vsel %vm1612_vm15, %v1602_v62, %v1494_v48 }
 0x814   :  { %1623 = vst [vmem:[%s2883_s8] sm:$0xff] %v1614_v39 }
 0x81d   :  { %v1882_v2 = vpop.eup %1881 }
 0x81e   :  { %v1604_v53 = vmul.f32 %v1882_v2, %v1599_v34 }
 0x820   :  { %v1613_v9 = vsel %vm1612_vm15, %v1604_v53, %v1493_v3 }
 0x821   :  { %1621 = vst [vmem:[%s2884_s7] sm:$0xff] %v1613_v9 }

// kernel: seq2seq_forward.4
= control target key start
LH: loop header
LB: loop body
LE: loop exit
PB: predicated region body
PF: predicated region fallthrough
CT: control target
= control target key end

     0   :  { %v4115_v1 = vmov 0   ;;  %s4105_s2 = inlined_call_operand.vmem [shape: bf16[128,512], index: 2, kind: input, shape index: {}]   ;;  %s4106_s0 = inlined_call_operand.vmem [shape: bf16[7,8,128], index: 0, kind: input, shape index: {}]   ;;  %s4107_s3 = inlined_call_operand.vmem [shape: bf16[128,512], index: 3, kind: input, shape index: {}]   ;;  %s4108_s1 = inlined_call_operand.vmem [shape: s32[8,1], index: 1, kind: input, shape index: {}]   ;;  %s4109_s5 = inlined_call_operand.vmem [shape: f32[8,128], index: 5, kind: input, shape index: {}]   ;;  %s4110_s4 = inlined_call_operand.vmem [shape: f32[1,512], index: 4, kind: input, shape index: {}]   ;;  %s4111_s6 = inlined_call_operand.vmem [shape: f32[8,128], index: 6, kind: input, shape index: {}]   ;;  %s4112_s7 = inlined_call_operand.vmem [shape: f32[7,8,128], index: 7, kind: output, shape index: {0}]   ;;  %s4113_s9 = inlined_call_operand.vmem [shape: f32[8,128], index: 9, kind: output, shape index: {2}]   ;;  %s4114_s8 = inlined_call_operand.vmem [shape: f32[8,128], index: 8, kind: output, shape index: {1}]  }
   0x1   :  { %v2959_v0 = vld [vmem:[%s4105_s2 + $0x4] ss:$16 sps:$4 sm:$0xff]   ;;  %313 = vmatprep.mubr.bf16.mxu0 %v4115_v1  ;;  %384 = vmatprep.mubr.bf16.mxu1 %v4115_v1  ;;  %v2961_v2 = vld [vmem:[%s4105_s2 + $0xc] ss:$16 sps:$4 sm:$0xff]   ;;  %v2963_v3 = vld [vmem:[%s4105_s2] ss:$16 sps:$4 sm:$0xff]  }
   0x2   :  { %2957 = vset.pattern.permute.xlu0 %v4115_v1  ;;  %2958 = vset.pattern.permute.xlu1 %v4115_v1  ;;  %v2964_v4 = vld [vmem:[%s4105_s2 + $0x8] ss:$16 sps:$4 sm:$0xff]   ;;  %v2965_v5 = vld [vmem:[%s4105_s2 + $0x24] ss:$16 sps:$4 sm:$0xff]   ;;  %v2967_v6 = vld [vmem:[%s4105_s2 + $0x2c] ss:$16 sps:$4 sm:$0xff]  }
   0x3   :  { %281 = vmatprep.subr.bf16.mxu0 %v2959_v0  ;;  %352 = vmatprep.subr.bf16.mxu1 %v2961_v2  ;;  %v2969_v7 = vld [vmem:[%s4105_s2 + $0x20] ss:$16 sps:$4 sm:$0xff]   ;;  %v2970_v8 = vld [vmem:[%s4105_s2 + $0x28] ss:$16 sps:$4 sm:$0xff]   ;;  %v2971_v9 = vld [vmem:[%s4105_s2 + $0x44] ss:$16 sps:$4 sm:$0xff]  }
   0x4   :  { %282 = vmatpush1.bf16.msra.mxu0 %v2963_v3  ;;  %353 = vmatpush1.bf16.msra.mxu1 %v2964_v4  ;;  %v2973_v10 = vld [vmem:[%s4105_s2 + $0x4c] ss:$16 sps:$4 sm:$0xff]   ;;  %v2975_v11 = vld [vmem:[%s4105_s2 + $0x40] ss:$16 sps:$4 sm:$0xff]   ;;  %v2976_v12 = vld [vmem:[%s4105_s2 + $0x48] ss:$16 sps:$4 sm:$0xff]  }
   0x5   :  { %283 = vmatprep.subr.bf16.mxu0 %v2965_v5  ;;  %354 = vmatprep.subr.bf16.mxu1 %v2967_v6  ;;  %v2977_v13 = vld [vmem:[%s4105_s2 + $0x64] ss:$16 sps:$4 sm:$0xff]   ;;  %v2979_v14 = vld [vmem:[%s4105_s2 + $0x6c] ss:$16 sps:$4 sm:$0xff]   ;;  %v2981_v15 = vld [vmem:[%s4105_s2 + $0x60] ss:$16 sps:$4 sm:$0xff]  }
   0x6   :  { %v2982_v16 = vld [vmem:[%s4105_s2 + $0x68] ss:$16 sps:$4 sm:$0xff]   ;;  %v2983_v17 = vld [vmem:[%s4105_s2 + $0x84] ss:$16 sps:$4 sm:$0xff]   ;;  %v2985_v18 = vld [vmem:[%s4105_s2 + $0x8c] ss:$16 sps:$4 sm:$0xff]  }
   0x7   :  { %v2987_v19 = vld [vmem:[%s4105_s2 + $0x80] ss:$16 sps:$4 sm:$0xff]   ;;  %v2988_v20 = vld [vmem:[%s4105_s2 + $0x88] ss:$16 sps:$4 sm:$0xff]   ;;  %v2989_v21 = vld [vmem:[%s4105_s2 + $0xa4] ss:$16 sps:$4 sm:$0xff]  }
   0x8   :  { %284 = vmatpush1.bf16.msra.mxu0 %v2969_v7  ;;  %355 = vmatpush1.bf16.msra.mxu1 %v2970_v8  ;;  %v2991_v22 = vld [vmem:[%s4105_s2 + $0xac] ss:$16 sps:$4 sm:$0xff]   ;;  %v2993_v23 = vld [vmem:[%s4105_s2 + $0xa0] ss:$16 sps:$4 sm:$0xff]   ;;  %v2994_v24 = vld [vmem:[%s4105_s2 + $0xa8] ss:$16 sps:$4 sm:$0xff]  }
   0x9   :  { %285 = vmatprep.subr.bf16.mxu0 %v2971_v9  ;;  %356 = vmatprep.subr.bf16.mxu1 %v2973_v10  ;;  %v2995_v25 = vld [vmem:[%s4105_s2 + $0xc4] ss:$16 sps:$4 sm:$0xff]   ;;  %v2997_v26 = vld [vmem:[%s4105_s2 + $0xcc] ss:$16 sps:$4 sm:$0xff]   ;;  %v2999_v27 = vld [vmem:[%s4105_s2 + $0xc0] ss:$16 sps:$4 sm:$0xff]  }
   0xa   :  { %v3000_v28 = vld [vmem:[%s4105_s2 + $0xc8] ss:$16 sps:$4 sm:$0xff]   ;;  %v3001_v29 = vld [vmem:[%s4105_s2 + $0xe4] ss:$16 sps:$4 sm:$0xff]   ;;  %v3003_v30 = vld [vmem:[%s4105_s2 + $0xec] ss:$16 sps:$4 sm:$0xff]  }
   0xb   :  { %v3005_v31 = vld [vmem:[%s4105_s2 + $0xe0] ss:$16 sps:$4 sm:$0xff]   ;;  %v3006_v32 = vld [vmem:[%s4105_s2 + $0xe8] ss:$16 sps:$4 sm:$0xff]   ;;  %v3331_v33 = vld [vmem:[%s4107_s3 + $0x4] ss:$16 sps:$4 sm:$0xff]  }
   0xc   :  { %286 = vmatpush1.bf16.msra.mxu0 %v2975_v11  ;;  %357 = vmatpush1.bf16.msra.mxu1 %v2976_v12  ;;  %v3336_v34 = vld [vmem:[%s4107_s3 + $0xc] ss:$16 sps:$4 sm:$0xff]   ;;  %v3007_v35 = vld [vmem:[%s4106_s0] sm:$0xff]   ;;  %v3349_v37 = vld [vmem:[%s4107_s3 + $0x8] ss:$16 sps:$4 sm:$0xff]  }
   0xd   :  { %287 = vmatprep.subr.bf16.mxu0 %v2977_v13  ;;  %358 = vmatprep.subr.bf16.mxu1 %v2979_v14  ;;  %v3344_v36 = vld [vmem:[%s4107_s3] ss:$16 sps:$4 sm:$0xff]   ;;  %v3356_v38 = vld [vmem:[%s4107_s3 + $0x24] ss:$16 sps:$4 sm:$0xff]   ;;  %v3361_v39 = vld [vmem:[%s4107_s3 + $0x2c] ss:$16 sps:$4 sm:$0xff]  }
   0xe   :  { %v3366_v40 = vld [vmem:[%s4107_s3 + $0x20] ss:$16 sps:$4 sm:$0xff]   ;;  %v3373_v41 = vld [vmem:[%s4107_s3 + $0x28] ss:$16 sps:$4 sm:$0xff]   ;;  %v3380_v42 = vld [vmem:[%s4107_s3 + $0x44] ss:$16 sps:$4 sm:$0xff]  }
   0xf   :  { %v3385_v43 = vld [vmem:[%s4107_s3 + $0x4c] ss:$16 sps:$4 sm:$0xff]   ;;  %v3395_v45 = vld [vmem:[%s4107_s3 + $0x40] ss:$16 sps:$4 sm:$0xff]   ;;  %v3402_v46 = vld [vmem:[%s4107_s3 + $0x48] ss:$16 sps:$4 sm:$0xff]  }
  0x10   :  { %288 = vmatpush1.bf16.msra.mxu0 %v2981_v15  ;;  %359 = vmatpush1.bf16.msra.mxu1 %v2982_v16  ;;  %v3020_v44 = vld [vmem:[%s4106_s0 + $0x8] sm:$0xff]   ;;  %v3407_v47 = vld [vmem:[%s4107_s3 + $0x64] ss:$16 sps:$4 sm:$0xff]   ;;  %v3419_v49 = vld [vmem:[%s4107_s3 + $0x60] ss:$16 sps:$4 sm:$0xff]  }
  0x11   :  { %289 = vmatprep.subr.bf16.mxu0 %v2983_v17  ;;  %360 = vmatprep.subr.bf16.mxu1 %v2985_v18  ;;  %v3414_v48 = vld [vmem:[%s4107_s3 + $0x6c] ss:$16 sps:$4 sm:$0xff]   ;;  %v3426_v50 = vld [vmem:[%s4107_s3 + $0x68] ss:$16 sps:$4 sm:$0xff]   ;;  %v3431_v51 = vld [vmem:[%s4107_s3 + $0x84] ss:$16 sps:$4 sm:$0xff]  }
  0x12   :  { %v3438_v52 = vld [vmem:[%s4107_s3 + $0x8c] ss:$16 sps:$4 sm:$0xff]   ;;  %v3033_v53 = vld [vmem:[%s4106_s0 + $0x10] sm:$0xff]   ;;  %v3453_v55 = vld [vmem:[%s4108_s1] sm:$0xff] }
  0x13   :  { %v3448_v54 = vld [vmem:[%s4107_s3 + $0x80] ss:$16 sps:$4 sm:$0xff]   ;;  %v3458_v56 = vld [vmem:[%s4107_s3 + $0x88] ss:$16 sps:$4 sm:$0xff]   ;;  %v3463_v57 = vld [vmem:[%s4107_s3 + $0xa4] ss:$16 sps:$4 sm:$0xff]  }
  0x14   :  { %290 = vmatpush1.bf16.msra.mxu0 %v2987_v19  ;;  %361 = vmatpush1.bf16.msra.mxu1 %v2988_v20  ;;  %vm757_vm0 = vcmp.gt.s32.totalorder %v3453_v55, 0  ;;  %v3471_v58 = vld [vmem:[%s4107_s3 + $0xac] ss:$16 sps:$4 sm:$0xff]   ;;  %vm1071_vm1 = vcmp.gt.s32.totalorder %v3453_v55, 1  ;;  %v3480_v60 = vld [vmem:[%s4107_s3 + $0xa0] ss:$16 sps:$4 sm:$0xff]  }
  0x15   :  { %291 = vmatprep.subr.bf16.mxu0 %v2989_v21  ;;  %362 = vmatprep.subr.bf16.mxu1 %v2991_v22  ;;  %v758_v59 = vsel %vm757_vm0, 1, %v4115_v1  ;;  %v3485_v61 = vld [vmem:[%s4107_s3 + $0xa8] ss:$16 sps:$4 sm:$0xff]   ;;  %v3490_v62 = vld [vmem:[%s4107_s3 + $0xc4] ss:$16 sps:$4 sm:$0xff]   ;;  %v1072_v0 = vsel %vm1071_vm1, 1, %v4115_v1 }
  0x16   :  { %760 = vperm.xlu0 %2957, %v758_v59   ;;  %v3495_v63 = vld [vmem:[%s4107_s3 + $0xcc] ss:$16 sps:$4 sm:$0xff]   ;;  %v3046_v2 = vld [vmem:[%s4106_s0 + $0x18] ss:$0 sps:$4 sm:$0xff]   ;;  %v3510_v3 = vld [vmem:[%s4107_s3 + $0xc0] ss:$16 sps:$4 sm:$0xff]  }
  0x17   :  { %v3515_v4 = vld [vmem:[%s4107_s3 + $0xc8] ss:$16 sps:$4 sm:$0xff]   ;;  %v3520_v5 = vld [vmem:[%s4107_s3 + $0xe4] ss:$16 sps:$4 sm:$0xff]   ;;  %v3525_v6 = vld [vmem:[%s4107_s3 + $0xec] ss:$16 sps:$4 sm:$0xff]  }
  0x18   :  { %292 = vmatpush1.bf16.msra.mxu0 %v2993_v23  ;;  %363 = vmatpush1.bf16.msra.mxu1 %v2994_v24  ;;  %vm2016_vm2 = vcmp.gt.s32.totalorder %v3453_v55, 4  ;;  %v3537_v7 = vld [vmem:[%s4107_s3 + $0xe0] ss:$16 sps:$4 sm:$0xff]   ;;  %v3542_v8 = vld [vmem:[%s4107_s3 + $0xe8] ss:$16 sps:$4 sm:$0xff]   ;;  %vm2646_vm3 = vcmp.gt.s32.totalorder %v3453_v55, 6 }
  0x19   :  { %293 = vmatprep.subr.bf16.mxu0 %v2995_v25  ;;  %364 = vmatprep.subr.bf16.mxu1 %v2997_v26  ;;  %v3547_v9 = vld [vmem:[%s4109_s5] sm:$0xff]  ;;  %v2017_v10 = vsel %vm2016_vm2, 1, %v4115_v1  ;;  %v2647_v12 = vsel %vm2646_vm3, 1, %v4115_v1  ;;  %vm1386_vm5 = vcmp.gt.s32.totalorder %v3453_v55, 2  ;;  %vm1701_vm6 = vcmp.gt.s32.totalorder %v3453_v55, 3 }
  0x1a   :  { %1074 = vperm.xlu0 %2957, %v1072_v0   ;;  %v459_v11 = vpack.c.bf16 %v3547_v9, %v3547_v9  ;;  %vm2331_vm7 = vcmp.gt.s32.totalorder %v3453_v55, 5 }
  0x1c   :  { %294 = vmatpush1.bf16.msra.mxu0 %v2999_v27  ;;  %365 = vmatpush1.bf16.msra.mxu1 %v3000_v28 }
  0x1d   :  { %295 = vmatprep.subr.bf16.mxu0 %v3001_v29  ;;  %366 = vmatprep.subr.bf16.mxu1 %v3003_v30  ;;  %v79_v29 = vlaneseq }
  0x1e   :  { %2019 = vperm.xlu0 %2957, %v2017_v10   ;;  %v77_v10 = vld [vmem:[%s4110_s4] sm:$0xf] }
  0x20   :  { %296 = vmatpush1.bf16.msra.mxu0 %v3005_v31  ;;  %367 = vmatpush1.bf16.msra.mxu1 %v3006_v32 }
  0x21   :  { %652 = vmatprep.subr.bf16.mxu0 %v3331_v33  ;;  %693 = vmatprep.subr.bf16.mxu1 %v3336_v34 }
  0x22   :  { %2649 = vperm.xlu0 %2957, %v2647_v12  }
  0x23   :  { %314 = vmatmul.mubr.bf16.vlgmr.msra.gmra.mrb[0].mxu0 %v3007_v35  ;;  %385 = vmatmul.mubr.bf16.vlgmr.msra.gmra.mrb[0].mxu1 %v3007_v35 }
  0x24   :  { %653 = vmatpush1.bf16.msra.mxu0 %v3344_v36  ;;  %694 = vmatpush1.bf16.msra.mxu1 %v3349_v37 }
  0x25   :  { %654 = vmatprep.subr.bf16.mxu0 %v3356_v38  ;;  %695 = vmatprep.subr.bf16.mxu1 %v3361_v39 }
  0x26   :  { %323 = vmatprep.mubr.bf16.mxu0 %v4115_v1  ;;  %394 = vmatprep.mubr.bf16.mxu1 %v4115_v1 }
  0x28   :  { %655 = vmatpush1.bf16.msra.mxu0 %v3366_v40  ;;  %696 = vmatpush1.bf16.msra.mxu1 %v3373_v41 }
  0x29   :  { %656 = vmatprep.subr.bf16.mxu0 %v3380_v42  ;;  %697 = vmatprep.subr.bf16.mxu1 %v3385_v43 }
  0x2b   :  { %324 = vmatmul.mubr.bf16.gmra.mrb[4].mxu0 %v3020_v44  ;;  %395 = vmatmul.mubr.bf16.gmra.mrb[4].mxu1 %v3020_v44  ;;  %v80_v44 = vshrl.u32 %v79_v29, 7 }
  0x2c   :  { %657 = vmatpush1.bf16.msra.mxu0 %v3395_v45  ;;  %698 = vmatpush1.bf16.msra.mxu1 %v3402_v46 }
  0x2d   :  { %658 = vmatprep.subr.bf16.mxu0 %v3407_v47  ;;  %699 = vmatprep.subr.bf16.mxu1 %v3414_v48  ;;  %v81_v0 = vsub.s32 0, %v80_v44  ;;  %v93_v12 = vsub.s32 3, %v80_v44 }
  0x2e   :  { %333 = vmatprep.mubr.bf16.mxu0 %v4115_v1  ;;  %404 = vmatprep.mubr.bf16.mxu1 %v4115_v1 }
  0x30   :  { %659 = vmatpush1.bf16.msra.mxu0 %v3419_v49  ;;  %700 = vmatpush1.bf16.msra.mxu1 %v3426_v50 }
  0x31   :  { %660 = vmatprep.subr.bf16.mxu0 %v3431_v51  ;;  %701 = vmatprep.subr.bf16.mxu1 %v3438_v52 }
  0x33   :  { %334 = vmatmul.mubr.bf16.gmra.mrb[8].mxu0 %v3033_v53  ;;  %405 = vmatmul.mubr.bf16.gmra.mrb[8].mxu1 %v3033_v53 }
  0x34   :  { %661 = vmatpush1.bf16.msra.mxu0 %v3448_v54  ;;  %702 = vmatpush1.bf16.msra.mxu1 %v3458_v56 }
  0x35   :  { %662 = vmatprep.subr.bf16.mxu0 %v3463_v57  ;;  %703 = vmatprep.subr.bf16.mxu1 %v3471_v58 }
  0x36   :  { %343 = vmatprep.mubr.bf16.mxu0 %v4115_v1  ;;  %414 = vmatprep.mubr.bf16.mxu1 %v4115_v1 }
  0x38   :  { %663 = vmatpush1.bf16.msra.mxu0 %v3480_v60  ;;  %704 = vmatpush1.bf16.msra.mxu1 %v3485_v61 }
  0x39   :  { %664 = vmatprep.subr.bf16.mxu0 %v3490_v62  ;;  %705 = vmatprep.subr.bf16.mxu1 %v3495_v63 }
  0x3b   :  { %344 = vmatmul.mubr.bf16.gmra.mrb[12].mxu0 %v3046_v2  ;;  %415 = vmatmul.mubr.bf16.gmra.mrb[12].mxu1 %v3046_v2  ;;  %v89_v2 = vsub.s32 2, %v80_v44 }
  0x3c   :  { %665 = vmatpush1.bf16.msra.mxu0 %v3510_v3  ;;  %706 = vmatpush1.bf16.msra.mxu1 %v3515_v4 }
  0x3d   :  { %666 = vmatprep.subr.bf16.mxu0 %v3520_v5  ;;  %707 = vmatprep.subr.bf16.mxu1 %v3525_v6 }
  0x3e   :  { %684 = vmatprep.mubr.bf16.mxu0 %v4115_v1  ;;  %725 = vmatprep.mubr.bf16.mxu1 %v4115_v1 }
  0x40   :  { %667 = vmatpush1.bf16.msra.mxu0 %v3537_v7  ;;  %708 = vmatpush1.bf16.msra.mxu1 %v3542_v8 }
  0x41   :  { %965 = vmatprep.subr.bf16.mxu0 %v3331_v33  ;;  %1006 = vmatprep.subr.bf16.mxu1 %v3336_v34 }
  0x43   :  { %685 = vmatmul.mubr.bf16.vlgmr.msra.gmra.mrb[16].mxu0 %v459_v11  ;;  %726 = vmatmul.mubr.bf16.vlgmr.msra.gmra.mrb[16].mxu1 %v459_v11  ;;  %v85_v11 = vsub.s32 1, %v80_v44 }
  0x44   :  { %966 = vmatpush1.bf16.msra.mxu0 %v3344_v36  ;;  %1007 = vmatpush1.bf16.msra.mxu1 %v3349_v37 }
  0x45   :  { %967 = vmatprep.subr.bf16.mxu0 %v3356_v38  ;;  %1008 = vmatprep.subr.bf16.mxu1 %v3361_v39 }
  0x46   :  { %997 = vmatprep.mubr.bf16.mxu0 %v4115_v1  ;;  %1038 = vmatprep.mubr.bf16.mxu1 %v4115_v1  ;;  %v3639_v1 = vrot.slane %v77_v10, %v81_v0 }
  0x48   :  { %968 = vmatpush1.bf16.msra.mxu0 %v3366_v40  ;;  %1009 = vmatpush1.bf16.msra.mxu1 %v3373_v41 }
  0x49   :  { %969 = vmatprep.subr.bf16.mxu0 %v3380_v42  ;;  %1010 = vmatprep.subr.bf16.mxu1 %v3385_v43 }
  0x4c   :  { %970 = vmatpush1.bf16.msra.mxu0 %v3395_v45  ;;  %1011 = vmatpush1.bf16.msra.mxu1 %v3402_v46 }
  0x4d   :  { %971 = vmatprep.subr.bf16.mxu0 %v3407_v47  ;;  %1012 = vmatprep.subr.bf16.mxu1 %v3414_v48 }
  0x50   :  { %972 = vmatpush1.bf16.msra.mxu0 %v3419_v49  ;;  %1013 = vmatpush1.bf16.msra.mxu1 %v3426_v50 }
  0x51   :  { %973 = vmatprep.subr.bf16.mxu0 %v3431_v51  ;;  %1014 = vmatprep.subr.bf16.mxu1 %v3438_v52 }
  0x54   :  { %974 = vmatpush1.bf16.msra.mxu0 %v3448_v54  ;;  %1015 = vmatpush1.bf16.msra.mxu1 %v3458_v56 }
  0x55   :  { %975 = vmatprep.subr.bf16.mxu0 %v3463_v57  ;;  %1016 = vmatprep.subr.bf16.mxu1 %v3471_v58 }
  0x58   :  { %976 = vmatpush1.bf16.msra.mxu0 %v3480_v60  ;;  %1017 = vmatpush1.bf16.msra.mxu1 %v3485_v61 }
  0x59   :  { %977 = vmatprep.subr.bf16.mxu0 %v3490_v62  ;;  %1018 = vmatprep.subr.bf16.mxu1 %v3495_v63 }
  0x5c   :  { %978 = vmatpush1.bf16.msra.mxu0 %v3510_v3  ;;  %1019 = vmatpush1.bf16.msra.mxu1 %v3515_v4 }
  0x5d   :  { %979 = vmatprep.subr.bf16.mxu0 %v3520_v5  ;;  %1020 = vmatprep.subr.bf16.mxu1 %v3525_v6 }
  0x60   :  { %980 = vmatpush1.bf16.msra.mxu0 %v3537_v7  ;;  %1021 = vmatpush1.bf16.msra.mxu1 %v3542_v8 }
  0x61   :  { %1280 = vmatprep.subr.bf16.mxu0 %v3331_v33  ;;  %1321 = vmatprep.subr.bf16.mxu1 %v3336_v34 }
  0xf6   :  { %v315_v13 = vpop.f32.mrb[0].mxu0  ;;  %v386_v14 = vpop.f32.mrb[0].mxu1 }
  0xf7   :  { %v317_v15 = vpop.f32.mrb[1].mxu0  ;;  %v388_v16 = vpop.f32.mrb[1].mxu1  ;;  %v316_v29 = vadd.f32 %v315_v13, %v3639_v1 }
  0xf8   :  { %v3596_v17 = vpop.f32.mrb[2].mxu0  ;;  %v3598_v18 = vpop.f32.mrb[2].mxu1 }
  0xf9   :  { %v3600_v19 = vpop.f32.mrb[3].mxu0  ;;  %v3602_v20 = vpop.f32.mrb[3].mxu1 }
  0xfe   :  { %v3604_v21 = vpop.f32.mrb[4].mxu0  ;;  %v3606_v22 = vpop.f32.mrb[4].mxu1 }
  0xff   :  { %4117 = vst [vmem:[#allocation5_spill] sm:$0xff] %v3606_v22  ;;  %v3608_v23 = vpop.f32.mrb[5].mxu0  ;;  %v3610_v24 = vpop.f32.mrb[5].mxu1 }
 0x100   :  { %4118 = vst [vmem:[#allocation6_spill] sm:$0xff] %v3608_v23  ;;  %4119 = vst [vmem:[#allocation7_spill] sm:$0xff] %v3610_v24  ;;  %v3612_v25 = vpop.f32.mrb[6].mxu0  ;;  %v3614_v26 = vpop.f32.mrb[6].mxu1 }
 0x101   :  { %4120 = vst [vmem:[#allocation8_spill] sm:$0xff] %v3612_v25  ;;  %4121 = vst [vmem:[#allocation9_spill] sm:$0xff] %v3614_v26  ;;  %v3616_v27 = vpop.f32.mrb[7].mxu0  ;;  %v3618_v28 = vpop.f32.mrb[7].mxu1 }
 0x102   :  { %4122 = vst [vmem:[#allocation10_spill] sm:$0xff] %v3616_v27  ;;  %4123 = vst [vmem:[#allocation11_spill] sm:$0xff] %v3618_v28 }
 0x106   :  { %v3620_v30 = vpop.f32.mrb[8].mxu0  ;;  %v3622_v31 = vpop.f32.mrb[8].mxu1 }
 0x107   :  { %4124 = vst [vmem:[#allocation12_spill] sm:$0xff] %v3620_v30  ;;  %4125 = vst [vmem:[#allocation13_spill] sm:$0xff] %v3622_v31  ;;  %v3624_v32 = vpop.f32.mrb[9].mxu0  ;;  %v3626_v33 = vpop.f32.mrb[9].mxu1 }
 0x108   :  { %4126 = vst [vmem:[#allocation14_spill] sm:$0xff] %v3624_v32  ;;  %4127 = vst [vmem:[#allocation15_spill] sm:$0xff] %v3626_v33  ;;  %v3628_v34 = vpop.f32.mrb[10].mxu0  ;;  %v3630_v35 = vpop.f32.mrb[10].mxu1  ;;  %v3641_v33 = vrot.slane %v77_v10, %v89_v2 }
 0x109   :  { %4128 = vst [vmem:[#allocation16_spill] sm:$0xff] %v3628_v34  ;;  %4129 = vst [vmem:[#allocation17_spill] sm:$0xff] %v3630_v35  ;;  %v3632_v53 = vpop.f32.mrb[11].mxu0  ;;  %v3634_v59 = vpop.f32.mrb[11].mxu1  ;;  %v3643_v34 = vrot.slane %v77_v10, %v85_v11  ;;  %v3645_v35 = vrot.slane %v77_v10, %v93_v12 }
 0x10a   :  { %4130 = vst [vmem:[#allocation18_spill] sm:$0xff] %v3632_v53  ;;  %4131 = vst [vmem:[#allocation19_spill] sm:$0xff] %v3634_v59  ;;  %v387_v59 = vadd.f32 %v386_v14, %v3641_v33 }
 0x10b   :  { %v318_v53 = vadd.f32 %v317_v15, %v3643_v34  ;;  %v389_v32 = vadd.f32 %v388_v16, %v3645_v35 }
 0x116   :  { %v686_v31 = vpop.f32.mrb[16].mxu0  ;;  %v727_v30 = vpop.f32.mrb[16].mxu1 }
 0x117   :  { %v734_v28 = vadd.f32 %v686_v31, %v316_v29  ;;  %v736_v44 = vadd.f32 %v727_v30, %v387_v59  ;;  %v688_v0 = vpop.f32.mrb[17].mxu0  ;;  %v729_v27 = vpop.f32.mrb[17].mxu1 }
 0x118   :  { %v735_v2 = vadd.f32 %v688_v0, %v318_v53  ;;  %v737_v26 = vadd.f32 %v729_v27, %v389_v32  ;;  %v690_v11 = vpop.f32.mrb[18].mxu0  ;;  %v731_v25 = vpop.f32.mrb[18].mxu1  ;;  %v36_v27 = vld [vmem:[%s4111_s6] sm:$0xff] }
 0x119   :  { %v738_v10 = vmul.f32 0.5, %v734_v28  ;;  %v691_v12 = vpop.f32.mrb[19].mxu0  ;;  %v732_v24 = vpop.f32.mrb[19].mxu1 }
 0x11a   :  { %v742_v13 = vmul.f32 0.5, %v735_v2  ;;  %v747_v14 = vmul.f32 0.5, %v737_v26  ;;  %v761_v28 = vpop.permute.xlu0 %760 }
 0x11b   :  { %3107 = vtanh.f32 %v738_v10  ;;  %vm762_vm4 = vcmp.eq.s32.totalorder %v761_v28, 1  ;;  %v4132_v10 = vmov 0  }
 0x11c   :  { %3109 = vtanh.f32 %v742_v13 }
 0x11d   :  { %3111 = vtanh.f32 %v736_v44 }
 0x11e   :  { %3113 = vtanh.f32 %v747_v14 }
 0x125   :  { %v3108_v15 = vpop.eup %3107 }
 0x126   :  { %v3110_v16 = vpop.eup %3109  ;;  %v740_v23 = vadd.f32 1.0, %v3108_v15 }
 0x127   :  { %v744_v22 = vadd.f32 1.0, %v3110_v16  ;;  %v3112_v31 = vpop.eup %3111 }
 0x128   :  { %v741_v30 = vmul.f32 0.5, %v740_v23  ;;  %v3114_v26 = vpop.eup %3113 }
 0x129   :  { %v745_v25 = vmul.f32 0.5, %v744_v22  ;;  %v749_v29 = vadd.f32 1.0, %v3114_v26 }
 0x12a   :  { %v752_v32 = vmul.f32 %v3112_v31, %v741_v30 }
 0x12b   :  { %v751_v24 = vmul.f32 %v745_v25, %v36_v27  ;;  %v750_v44 = vmul.f32 0.5, %v749_v29 }
 0x12d   :  { %v753_v53 = vadd.f32 %v752_v32, %v751_v24 }
 0x12f   :  { %3115 = vtanh.f32 %v753_v53  ;;  %v3654_v59 = vsel %vm762_vm4, %v753_v53, %v36_v27 }
 0x139   :  { %v3116_v0 = vpop.eup %3115 }
 0x13a   :  { %v755_v2 = vmul.f32 %v3116_v0, %v750_v44 }
 0x13c   :  { %v763_v23 = vsel %vm762_vm4, %v755_v2, 0.0  ;;  %v3657_v11 = vsel %vm762_vm4, %v755_v2, %v3547_v9  ;;  %v393_v9 = vadd.f32 %v3602_v20, %v3645_v35 }
 0x13d   :  { %764 = vst [vmem:[%s4112_s7] sm:$0xff] %v763_v23  ;;  %v772_v22 = vpack.c.bf16 %v3657_v11, %v3657_v11 }
 0x13f   :  { %998 = vmatmul.mubr.bf16.vlgmr.msra.gmra.mrb[20].mxu0 %v772_v22  ;;  %1039 = vmatmul.mubr.bf16.vlgmr.msra.gmra.mrb[20].mxu1 %v772_v22  ;;  %v1075_v22 = vpop.permute.xlu0 %1074 }
 0x140   :  { %1281 = vmatpush1.bf16.msra.mxu0 %v3344_v36  ;;  %1322 = vmatpush1.bf16.msra.mxu1 %v3349_v37  ;;  %v1387_v36 = vsel %vm1386_vm5, 1, %v4132_v10  ;;  %v1702_v37 = vsel %vm1701_vm6, 1, %v4132_v10  ;;  %vm1076_vm8 = vcmp.eq.s32.totalorder %v1075_v22, 1 }
 0x141   :  { %1282 = vmatprep.subr.bf16.mxu0 %v3356_v38  ;;  %1323 = vmatprep.subr.bf16.mxu1 %v3361_v39  ;;  %v2332_v38 = vsel %vm2331_vm7, 1, %v4132_v10  ;;  %v320_v39 = vadd.f32 %v3596_v17, %v3639_v1 }
 0x142   :  { %1312 = vmatprep.mubr.bf16.mxu0 %v4132_v10  ;;  %1353 = vmatprep.mubr.bf16.mxu1 %v4132_v10 }
 0x143   :  { %1389 = vperm.xlu1 %2958, %v1387_v36  }
 0x144   :  { %1283 = vmatpush1.bf16.msra.mxu0 %v3366_v40  ;;  %1324 = vmatpush1.bf16.msra.mxu1 %v3373_v41  ;;  %v391_v40 = vadd.f32 %v3598_v18, %v3641_v33  ;;  %v322_v41 = vadd.f32 %v3600_v19, %v3643_v34 }
 0x145   :  { %1284 = vmatprep.subr.bf16.mxu0 %v3380_v42  ;;  %1325 = vmatprep.subr.bf16.mxu1 %v3385_v43 }
 0x147   :  { %1704 = vperm.xlu1 %2958, %v1702_v37  }
 0x148   :  { %1285 = vmatpush1.bf16.msra.mxu0 %v3395_v45  ;;  %1326 = vmatpush1.bf16.msra.mxu1 %v3402_v46 }
 0x149   :  { %1286 = vmatprep.subr.bf16.mxu0 %v3407_v47  ;;  %1327 = vmatprep.subr.bf16.mxu1 %v3414_v48 }
 0x14b   :  { %2334 = vperm.xlu1 %2958, %v2332_v38  }
 0x14c   :  { %1287 = vmatpush1.bf16.msra.mxu0 %v3419_v49  ;;  %1328 = vmatpush1.bf16.msra.mxu1 %v3426_v50 }
 0x14d   :  { %1288 = vmatprep.subr.bf16.mxu0 %v3431_v51  ;;  %1329 = vmatprep.subr.bf16.mxu1 %v3438_v52 }
 0x150   :  { %1289 = vmatpush1.bf16.msra.mxu0 %v3448_v54  ;;  %1330 = vmatpush1.bf16.msra.mxu1 %v3458_v56 }
 0x151   :  { %1290 = vmatprep.subr.bf16.mxu0 %v3463_v57  ;;  %1331 = vmatprep.subr.bf16.mxu1 %v3471_v58 }
 0x154   :  { %1291 = vmatpush1.bf16.msra.mxu0 %v3480_v60  ;;  %1332 = vmatpush1.bf16.msra.mxu1 %v3485_v61 }
 0x155   :  { %1292 = vmatprep.subr.bf16.mxu0 %v3490_v62  ;;  %1333 = vmatprep.subr.bf16.mxu1 %v3495_v63 }
 0x158   :  { %1293 = vmatpush1.bf16.msra.mxu0 %v3510_v3  ;;  %1334 = vmatpush1.bf16.msra.mxu1 %v3515_v4 }
 0x159   :  { %1294 = vmatprep.subr.bf16.mxu0 %v3520_v5  ;;  %1335 = vmatprep.subr.bf16.mxu1 %v3525_v6 }
 0x15c   :  { %1295 = vmatpush1.bf16.msra.mxu0 %v3537_v7  ;;  %1336 = vmatpush1.bf16.msra.mxu1 %v3542_v8 }
 0x212   :  { %v999_v12 = vpop.f32.mrb[20].mxu0  ;;  %v1040_v13 = vpop.f32.mrb[20].mxu1 }
 0x213   :  { %v1047_v14 = vadd.f32 %v999_v12, %v320_v39  ;;  %v1049_v55 = vadd.f32 %v1040_v13, %v391_v40  ;;  %v1001_v15 = vpop.f32.mrb[21].mxu0  ;;  %v1042_v16 = vpop.f32.mrb[21].mxu1 }
 0x214   :  { %v1048_v30 = vadd.f32 %v1001_v15, %v322_v41  ;;  %v1050_v27 = vadd.f32 %v1042_v16, %v393_v9  ;;  %v1003_v31 = vpop.f32.mrb[22].mxu0  ;;  %v1044_v25 = vpop.f32.mrb[22].mxu1  ;;  %v3742_v15 = vld [vmem:[%s4107_s3 + $0x8] ss:$16 sps:$4 sm:$0xff]   ;;  %v3751_v16 = vld [vmem:[%s4107_s3 + $0x24] ss:$16 sps:$4 sm:$0xff]  }
 0x215   :  { %v1051_v17 = vmul.f32 0.5, %v1047_v14  ;;  %v1004_v28 = vpop.f32.mrb[23].mxu0  ;;  %v1045_v32 = vpop.f32.mrb[23].mxu1  ;;  %v3766_v31 = vld [vmem:[%s4107_s3 + $0x28] ss:$16 sps:$4 sm:$0xff]  }
 0x216   :  { %v1055_v18 = vmul.f32 0.5, %v1048_v30  ;;  %v1060_v19 = vmul.f32 0.5, %v1050_v27  ;;  %v3756_v30 = vld [vmem:[%s4107_s3 + $0x2c] ss:$16 sps:$4 sm:$0xff]   ;;  %v3761_v27 = vld [vmem:[%s4107_s3 + $0x20] ss:$16 sps:$4 sm:$0xff]  }
 0x217   :  { %3117 = vtanh.f32 %v1051_v17 }
 0x218   :  { %3119 = vtanh.f32 %v1055_v18  ;;  %v1390_v18 = vpop.permute.xlu1 %1389 }
 0x219   :  { %3121 = vtanh.f32 %v1049_v55  ;;  %v3737_v55 = vld [vmem:[%s4107_s3] ss:$16 sps:$4 sm:$0xff]   ;;  %vm1391_vm9 = vcmp.eq.s32.totalorder %v1390_v18, 1 }
 0x21a   :  { %3123 = vtanh.f32 %v1060_v19 }
 0x221   :  { %v3118_v24 = vpop.eup %3117 }
 0x222   :  { %v3120_v20 = vpop.eup %3119  ;;  %v1053_v53 = vadd.f32 1.0, %v3118_v24 }
 0x223   :  { %v1057_v26 = vadd.f32 1.0, %v3120_v20  ;;  %v3122_v44 = vpop.eup %3121 }
 0x224   :  { %v1054_v29 = vmul.f32 0.5, %v1053_v53  ;;  %v3124_v38 = vpop.eup %3123 }
 0x225   :  { %v1058_v0 = vmul.f32 0.5, %v1057_v26  ;;  %v1062_v39 = vadd.f32 1.0, %v3124_v38  ;;  %v3834_v38 = vld [vmem:[%s4107_s3 + $0x4c] ss:$16 sps:$4 sm:$0xff]  }
 0x226   :  { %v1065_v2 = vmul.f32 %v3122_v44, %v1054_v29 }
 0x227   :  { %v1064_v23 = vmul.f32 %v1058_v0, %v3654_v59  ;;  %v1063_v40 = vmul.f32 0.5, %v1062_v39  ;;  %v3839_v39 = vld [vmem:[%s4107_s3 + $0x40] ss:$16 sps:$4 sm:$0xff]  }
 0x229   :  { %v1066_v36 = vadd.f32 %v1065_v2, %v1064_v23 }
 0x22b   :  { %3125 = vtanh.f32 %v1066_v36  ;;  %v3712_v37 = vsel %vm1076_vm8, %v1066_v36, %v3654_v59  ;;  %v3727_v59 = vld [vmem:[%s4107_s3 + $0x4] ss:$16 sps:$4 sm:$0xff]  }
 0x22c   :  { %1595 = vmatprep.subr.bf16.mxu0 %v3727_v59 }
 0x235   :  { %v3126_v41 = vpop.eup %3125 }
 0x236   :  { %v1068_v9 = vmul.f32 %v3126_v41, %v1063_v40  ;;  %v3844_v40 = vld [vmem:[%s4107_s3 + $0x48] ss:$16 sps:$4 sm:$0xff]   ;;  %v3853_v41 = vld [vmem:[%s4107_s3 + $0x64] ss:$16 sps:$4 sm:$0xff]  }
 0x238   :  { %v1077_v12 = vsel %vm1076_vm8, %v1068_v9, 0.0  ;;  %v3715_v13 = vsel %vm1076_vm8, %v1068_v9, %v3657_v11  ;;  %v3732_v11 = vld [vmem:[%s4107_s3 + $0xc] ss:$16 sps:$4 sm:$0xff]  }
 0x239   :  { %2778 = vst [vmem:[%s4112_s7 + $0x8] sm:$0xff] %v1077_v12  ;;  %v1087_v14 = vpack.c.bf16 %v3715_v13, %v3715_v13  ;;  %1636 = vmatprep.subr.bf16.mxu1 %v3732_v11  ;;  %v3858_v9 = vld [vmem:[%s4107_s3 + $0x6c] ss:$16 sps:$4 sm:$0xff]   ;;  %v3863_v12 = vld [vmem:[%s4107_s3 + $0x60] ss:$16 sps:$4 sm:$0xff]  }
 0x23b   :  { %1313 = vmatmul.mubr.bf16.vlgmr.msra.gmra.mrb[24].mxu0 %v1087_v14  ;;  %1354 = vmatmul.mubr.bf16.vlgmr.msra.gmra.mrb[24].mxu1 %v1087_v14  ;;  %v3877_v14 = vld [vmem:[%s4107_s3 + $0x84] ss:$16 sps:$4 sm:$0xff]  }
 0x23c   :  { %1627 = vmatprep.mubr.bf16.mxu0 %v4132_v10  ;;  %1668 = vmatprep.mubr.bf16.mxu1 %v4132_v10 }
 0x23d   :  { %1596 = vmatpush1.bf16.msra.mxu0 %v3737_v55  ;;  %1637 = vmatpush1.bf16.msra.mxu1 %v3742_v15 }
 0x23e   :  { %1597 = vmatprep.subr.bf16.mxu0 %v3751_v16  ;;  %1638 = vmatprep.subr.bf16.mxu1 %v3756_v30 }
 0x241   :  { %1598 = vmatpush1.bf16.msra.mxu0 %v3761_v27  ;;  %1639 = vmatpush1.bf16.msra.mxu1 %v3766_v31 }
 0x242   :  { %1599 = vmatprep.subr.bf16.mxu0 %v3380_v42  ;;  %1640 = vmatprep.subr.bf16.mxu1 %v3385_v43  ;;  %v326_v42 = vadd.f32 %v3604_v21, %v3639_v1  ;;  %v4133_v43 = vld [vmem:[#allocation5_spill] sm:$0xff] }
 0x245   :  { %1600 = vmatpush1.bf16.msra.mxu0 %v3395_v45  ;;  %1641 = vmatpush1.bf16.msra.mxu1 %v3402_v46  ;;  %v397_v45 = vadd.f32 %v4133_v43, %v3641_v33  ;;  %v4134_v46 = vld [vmem:[#allocation6_spill] sm:$0xff]  ;;  %v3887_v43 = vld [vmem:[%s4107_s3 + $0x80] ss:$16 sps:$4 sm:$0xff]  }
 0x246   :  { %1601 = vmatprep.subr.bf16.mxu0 %v3407_v47  ;;  %1642 = vmatprep.subr.bf16.mxu1 %v3414_v48  ;;  %v328_v47 = vadd.f32 %v4134_v46, %v3643_v34  ;;  %v4135_v48 = vld [vmem:[#allocation7_spill] sm:$0xff] }
 0x247   :  { %v3901_v46 = vld [vmem:[%s4107_s3 + $0xa4] ss:$16 sps:$4 sm:$0xff]  }
 0x249   :  { %1602 = vmatpush1.bf16.msra.mxu0 %v3419_v49  ;;  %1643 = vmatpush1.bf16.msra.mxu1 %v3426_v50  ;;  %v399_v49 = vadd.f32 %v4135_v48, %v3645_v35  ;;  %v3911_v48 = vld [vmem:[%s4107_s3 + $0xa0] ss:$16 sps:$4 sm:$0xff]  }
 0x24a   :  { %1603 = vmatprep.subr.bf16.mxu0 %v3431_v51  ;;  %1644 = vmatprep.subr.bf16.mxu1 %v3438_v52 }
 0x24d   :  { %1604 = vmatpush1.bf16.msra.mxu0 %v3448_v54  ;;  %1645 = vmatpush1.bf16.msra.mxu1 %v3458_v56 }
 0x24e   :  { %1605 = vmatprep.subr.bf16.mxu0 %v3463_v57  ;;  %1646 = vmatprep.subr.bf16.mxu1 %v3471_v58 }
 0x251   :  { %1606 = vmatpush1.bf16.msra.mxu0 %v3480_v60  ;;  %1647 = vmatpush1.bf16.msra.mxu1 %v3485_v61 }
 0x252   :  { %1607 = vmatprep.subr.bf16.mxu0 %v3490_v62  ;;  %1648 = vmatprep.subr.bf16.mxu1 %v3495_v63 }
 0x255   :  { %1608 = vmatpush1.bf16.msra.mxu0 %v3510_v3  ;;  %1649 = vmatpush1.bf16.msra.mxu1 %v3515_v4 }
 0x256   :  { %1609 = vmatprep.subr.bf16.mxu0 %v3520_v5  ;;  %1650 = vmatprep.subr.bf16.mxu1 %v3525_v6 }
 0x259   :  { %1610 = vmatpush1.bf16.msra.mxu0 %v3537_v7  ;;  %1651 = vmatpush1.bf16.msra.mxu1 %v3542_v8 }
 0x25a   :  { %1910 = vmatprep.subr.bf16.mxu0 %v3727_v59  ;;  %1951 = vmatprep.subr.bf16.mxu1 %v3732_v11 }
 0x30e   :  { %v1314_v50 = vpop.f32.mrb[24].mxu0  ;;  %v1355_v51 = vpop.f32.mrb[24].mxu1 }
 0x30f   :  { %v1362_v52 = vadd.f32 %v1314_v50, %v326_v42  ;;  %v1364_v54 = vadd.f32 %v1355_v51, %v397_v45  ;;  %v1316_v56 = vpop.f32.mrb[25].mxu0  ;;  %v1357_v57 = vpop.f32.mrb[25].mxu1  ;;  %v3882_v42 = vld [vmem:[%s4107_s3 + $0x8c] ss:$16 sps:$4 sm:$0xff]   ;;  %v3892_v45 = vld [vmem:[%s4107_s3 + $0x88] ss:$16 sps:$4 sm:$0xff]  }
 0x310   :  { %v1363_v58 = vadd.f32 %v1316_v56, %v328_v47  ;;  %v1365_v60 = vadd.f32 %v1357_v57, %v399_v49  ;;  %v1318_v61 = vpop.f32.mrb[26].mxu0  ;;  %v1359_v62 = vpop.f32.mrb[26].mxu1  ;;  %v3906_v47 = vld [vmem:[%s4107_s3 + $0xac] ss:$16 sps:$4 sm:$0xff]   ;;  %v3916_v49 = vld [vmem:[%s4107_s3 + $0xa8] ss:$16 sps:$4 sm:$0xff]  }
 0x311   :  { %v1366_v63 = vmul.f32 0.5, %v1362_v52  ;;  %v1319_v3 = vpop.f32.mrb[27].mxu0  ;;  %v1360_v4 = vpop.f32.mrb[27].mxu1  ;;  %v3925_v50 = vld [vmem:[%s4107_s3 + $0xc4] ss:$16 sps:$4 sm:$0xff]   ;;  %v4136_v61 = vld [vmem:[#allocation8_spill] sm:$0xff] }
 0x312   :  { %v1370_v5 = vmul.f32 0.5, %v1363_v58  ;;  %v1375_v6 = vmul.f32 0.5, %v1365_v60  ;;  %v3930_v51 = vld [vmem:[%s4107_s3 + $0xcc] ss:$16 sps:$4 sm:$0xff]   ;;  %v3935_v52 = vld [vmem:[%s4107_s3 + $0xc0] ss:$16 sps:$4 sm:$0xff]   ;;  %v330_v62 = vadd.f32 %v4136_v61, %v3639_v1 }
 0x313   :  { %3127 = vtanh.f32 %v1366_v63  ;;  %v3949_v56 = vld [vmem:[%s4107_s3 + $0xe4] ss:$16 sps:$4 sm:$0xff]   ;;  %v3954_v57 = vld [vmem:[%s4107_s3 + $0xec] ss:$16 sps:$4 sm:$0xff]   ;;  %v3959_v58 = vld [vmem:[%s4107_s3 + $0xe0] ss:$16 sps:$4 sm:$0xff]  }
 0x314   :  { %3129 = vtanh.f32 %v1370_v5  ;;  %v3964_v60 = vld [vmem:[%s4107_s3 + $0xe8] ss:$16 sps:$4 sm:$0xff]   ;;  %v4137_v63 = vld [vmem:[#allocation9_spill] sm:$0xff] }
 0x315   :  { %3131 = vtanh.f32 %v1364_v54  ;;  %v3940_v54 = vld [vmem:[%s4107_s3 + $0xc8] ss:$16 sps:$4 sm:$0xff]   ;;  %v401_v3 = vadd.f32 %v4137_v63, %v3641_v33 }
 0x316   :  { %3133 = vtanh.f32 %v1375_v6  ;;  %v4138_v4 = vld [vmem:[#allocation10_spill] sm:$0xff]  ;;  %v4139_v6 = vld [vmem:[#allocation11_spill] sm:$0xff] }
 0x317   :  { %v332_v5 = vadd.f32 %v4138_v4, %v3643_v34 }
 0x31d   :  { %v3128_v7 = vpop.eup %3127 }
 0x31e   :  { %v3130_v8 = vpop.eup %3129  ;;  %v1368_v21 = vadd.f32 1.0, %v3128_v7  ;;  %v403_v7 = vadd.f32 %v4139_v6, %v3645_v35 }
 0x31f   :  { %v1372_v25 = vadd.f32 1.0, %v3130_v8  ;;  %v3132_v28 = vpop.eup %3131 }
 0x320   :  { %v1369_v17 = vmul.f32 0.5, %v1368_v21  ;;  %v3134_v26 = vpop.eup %3133 }
 0x321   :  { %v1373_v32 = vmul.f32 0.5, %v1372_v25  ;;  %v1377_v29 = vadd.f32 1.0, %v3134_v26 }
 0x322   :  { %v1380_v19 = vmul.f32 %v3132_v28, %v1369_v17 }
 0x323   :  { %v1379_v24 = vmul.f32 %v1373_v32, %v3712_v37  ;;  %v1378_v44 = vmul.f32 0.5, %v1377_v29 }
 0x325   :  { %v1381_v20 = vadd.f32 %v1380_v19, %v1379_v24 }
 0x327   :  { %3135 = vtanh.f32 %v1381_v20  ;;  %v3808_v53 = vsel %vm1391_vm9, %v1381_v20, %v3712_v37  ;;  %v3829_v37 = vld [vmem:[%s4107_s3 + $0x44] ss:$16 sps:$4 sm:$0xff]  }
 0x331   :  { %v3136_v0 = vpop.eup %3135 }
 0x332   :  { %v1383_v2 = vmul.f32 %v3136_v0, %v1378_v44 }
 0x334   :  { %v1392_v23 = vsel %vm1391_vm9, %v1383_v2, 0.0  ;;  %v3811_v22 = vsel %vm1391_vm9, %v1383_v2, %v3715_v13  ;;  %v3868_v13 = vld [vmem:[%s4107_s3 + $0x68] ss:$16 sps:$4 sm:$0xff]  }
 0x335   :  { %2811 = vst [vmem:[%s4112_s7 + $0x10] sm:$0xff] %v1392_v23  ;;  %v1402_v36 = vpack.c.bf16 %v3811_v22, %v3811_v22 }
 0x337   :  { %1628 = vmatmul.mubr.bf16.vlgmr.msra.gmra.mrb[28].mxu0 %v1402_v36  ;;  %1669 = vmatmul.mubr.bf16.vlgmr.msra.gmra.mrb[28].mxu1 %v1402_v36 }
 0x338   :  { %1911 = vmatpush1.bf16.msra.mxu0 %v3737_v55  ;;  %1952 = vmatpush1.bf16.msra.mxu1 %v3742_v15 }
 0x339   :  { %1912 = vmatprep.subr.bf16.mxu0 %v3751_v16  ;;  %1953 = vmatprep.subr.bf16.mxu1 %v3756_v30 }
 0x33a   :  { %1942 = vmatprep.mubr.bf16.mxu0 %v4132_v10  ;;  %1983 = vmatprep.mubr.bf16.mxu1 %v4132_v10 }
 0x33c   :  { %1913 = vmatpush1.bf16.msra.mxu0 %v3761_v27  ;;  %1954 = vmatpush1.bf16.msra.mxu1 %v3766_v31 }
 0x33d   :  { %1914 = vmatprep.subr.bf16.mxu0 %v3829_v37  ;;  %1955 = vmatprep.subr.bf16.mxu1 %v3834_v38 }
 0x340   :  { %1915 = vmatpush1.bf16.msra.mxu0 %v3839_v39  ;;  %1956 = vmatpush1.bf16.msra.mxu1 %v3844_v40 }
 0x341   :  { %1916 = vmatprep.subr.bf16.mxu0 %v3853_v41  ;;  %1957 = vmatprep.subr.bf16.mxu1 %v3858_v9 }
 0x344   :  { %1917 = vmatpush1.bf16.msra.mxu0 %v3863_v12  ;;  %1958 = vmatpush1.bf16.msra.mxu1 %v3868_v13 }
 0x345   :  { %1918 = vmatprep.subr.bf16.mxu0 %v3877_v14  ;;  %1959 = vmatprep.subr.bf16.mxu1 %v3882_v42 }
 0x348   :  { %1919 = vmatpush1.bf16.msra.mxu0 %v3887_v43  ;;  %1960 = vmatpush1.bf16.msra.mxu1 %v3892_v45 }
 0x349   :  { %1920 = vmatprep.subr.bf16.mxu0 %v3901_v46  ;;  %1961 = vmatprep.subr.bf16.mxu1 %v3906_v47 }
 0x34c   :  { %1921 = vmatpush1.bf16.msra.mxu0 %v3911_v48  ;;  %1962 = vmatpush1.bf16.msra.mxu1 %v3916_v49 }
 0x34d   :  { %1922 = vmatprep.subr.bf16.mxu0 %v3925_v50  ;;  %1963 = vmatprep.subr.bf16.mxu1 %v3930_v51 }
 0x350   :  { %1923 = vmatpush1.bf16.msra.mxu0 %v3935_v52  ;;  %1964 = vmatpush1.bf16.msra.mxu1 %v3940_v54 }
 0x351   :  { %1924 = vmatprep.subr.bf16.mxu0 %v3949_v56  ;;  %1965 = vmatprep.subr.bf16.mxu1 %v3954_v57 }
 0x354   :  { %1925 = vmatpush1.bf16.msra.mxu0 %v3959_v58  ;;  %1966 = vmatpush1.bf16.msra.mxu1 %v3964_v60 }
 0x355   :  { %2225 = vmatprep.subr.bf16.mxu0 %v3727_v59  ;;  %2266 = vmatprep.subr.bf16.mxu1 %v3732_v11 }
 0x40a   :  { %v1629_v8 = vpop.f32.mrb[28].mxu0  ;;  %v1670_v21 = vpop.f32.mrb[28].mxu1 }
 0x40b   :  { %v1677_v25 = vadd.f32 %v1629_v8, %v330_v62  ;;  %v1679_v17 = vadd.f32 %v1670_v21, %v401_v3  ;;  %v1631_v28 = vpop.f32.mrb[29].mxu0  ;;  %v1672_v32 = vpop.f32.mrb[29].mxu1 }
 0x40c   :  { %v1678_v18 = vadd.f32 %v1631_v28, %v332_v5  ;;  %v1680_v19 = vadd.f32 %v1672_v32, %v403_v7  ;;  %v1633_v24 = vpop.f32.mrb[30].mxu0  ;;  %v1674_v20 = vpop.f32.mrb[30].mxu1 }
 0x40d   :  { %v1681_v26 = vmul.f32 0.5, %v1677_v25  ;;  %v1634_v29 = vpop.f32.mrb[31].mxu0  ;;  %v1675_v44 = vpop.f32.mrb[31].mxu1 }
 0x40e   :  { %v1685_v0 = vmul.f32 0.5, %v1678_v18  ;;  %v1690_v2 = vmul.f32 0.5, %v1680_v19  ;;  %v1705_v7 = vpop.permute.xlu1 %1704  ;;  %v4142_v44 = vld [vmem:[#allocation14_spill] sm:$0xff] }
 0x40f   :  { %3137 = vtanh.f32 %v1681_v26  ;;  %vm1706_vm10 = vcmp.eq.s32.totalorder %v1705_v7, 1  ;;  %v4141_v26 = vld [vmem:[#allocation13_spill] sm:$0xff] }
 0x410   :  { %3139 = vtanh.f32 %v1685_v0  ;;  %v407_v29 = vadd.f32 %v4141_v26, %v3641_v33  ;;  %v338_v0 = vadd.f32 %v4142_v44, %v3643_v34 }
 0x411   :  { %3141 = vtanh.f32 %v1679_v17 }
 0x412   :  { %3143 = vtanh.f32 %v1690_v2  ;;  %v4143_v2 = vld [vmem:[#allocation15_spill] sm:$0xff] }
 0x419   :  { %v3138_v23 = vpop.eup %3137 }
 0x41a   :  { %v3140_v36 = vpop.eup %3139  ;;  %v1683_v61 = vadd.f32 1.0, %v3138_v23  ;;  %v409_v23 = vadd.f32 %v4143_v2, %v3645_v35 }
 0x41b   :  { %v1687_v63 = vadd.f32 1.0, %v3140_v36  ;;  %v3142_v3 = vpop.eup %3141 }
 0x41c   :  { %v1684_v62 = vmul.f32 0.5, %v1683_v61  ;;  %v3144_v25 = vpop.eup %3143 }
 0x41d   :  { %v1688_v4 = vmul.f32 0.5, %v1687_v63  ;;  %v1692_v17 = vadd.f32 1.0, %v3144_v25 }
 0x41e   :  { %v1695_v5 = vmul.f32 %v3142_v3, %v1684_v62 }
 0x41f   :  { %v1694_v6 = vmul.f32 %v1688_v4, %v3808_v53  ;;  %v1693_v28 = vmul.f32 0.5, %v1692_v17 }
 0x421   :  { %v1696_v8 = vadd.f32 %v1695_v5, %v1694_v6 }
 0x423   :  { %3145 = vtanh.f32 %v1696_v8  ;;  %v3982_v21 = vsel %vm1706_vm10, %v1696_v8, %v3808_v53  ;;  %v4140_v53 = vld [vmem:[#allocation12_spill] sm:$0xff] }
 0x42d   :  { %v3146_v32 = vpop.eup %3145 }
 0x42e   :  { %v1698_v18 = vmul.f32 %v3146_v32, %v1693_v28 }
 0x430   :  { %v1707_v19 = vsel %vm1706_vm10, %v1698_v18, 0.0  ;;  %v3985_v24 = vsel %vm1706_vm10, %v1698_v18, %v3811_v22  ;;  %v336_v22 = vadd.f32 %v4140_v53, %v3639_v1 }
 0x431   :  { %2844 = vst [vmem:[%s4112_s7 + $0x18] sm:$0xff] %v1707_v19  ;;  %v1717_v20 = vpack.c.bf16 %v3985_v24, %v3985_v24 }
 0x433   :  { %1943 = vmatmul.mubr.bf16.vlgmr.msra.gmra.mrb[32].mxu0 %v1717_v20  ;;  %1984 = vmatmul.mubr.bf16.vlgmr.msra.gmra.mrb[32].mxu1 %v1717_v20 }
 0x434   :  { %2226 = vmatpush1.bf16.msra.mxu0 %v3737_v55  ;;  %2267 = vmatpush1.bf16.msra.mxu1 %v3742_v15 }
 0x435   :  { %2227 = vmatprep.subr.bf16.mxu0 %v3751_v16  ;;  %2268 = vmatprep.subr.bf16.mxu1 %v3756_v30 }
 0x436   :  { %2257 = vmatprep.mubr.bf16.mxu0 %v4132_v10  ;;  %2298 = vmatprep.mubr.bf16.mxu1 %v4132_v10 }
 0x438   :  { %2228 = vmatpush1.bf16.msra.mxu0 %v3761_v27  ;;  %2269 = vmatpush1.bf16.msra.mxu1 %v3766_v31 }
 0x439   :  { %2229 = vmatprep.subr.bf16.mxu0 %v3829_v37  ;;  %2270 = vmatprep.subr.bf16.mxu1 %v3834_v38 }
 0x43c   :  { %2230 = vmatpush1.bf16.msra.mxu0 %v3839_v39  ;;  %2271 = vmatpush1.bf16.msra.mxu1 %v3844_v40 }
 0x43d   :  { %2231 = vmatprep.subr.bf16.mxu0 %v3853_v41  ;;  %2272 = vmatprep.subr.bf16.mxu1 %v3858_v9 }
 0x440   :  { %2232 = vmatpush1.bf16.msra.mxu0 %v3863_v12  ;;  %2273 = vmatpush1.bf16.msra.mxu1 %v3868_v13 }
 0x441   :  { %2233 = vmatprep.subr.bf16.mxu0 %v3877_v14  ;;  %2274 = vmatprep.subr.bf16.mxu1 %v3882_v42 }
 0x444   :  { %2234 = vmatpush1.bf16.msra.mxu0 %v3887_v43  ;;  %2275 = vmatpush1.bf16.msra.mxu1 %v3892_v45 }
 0x445   :  { %2235 = vmatprep.subr.bf16.mxu0 %v3901_v46  ;;  %2276 = vmatprep.subr.bf16.mxu1 %v3906_v47 }
 0x448   :  { %2236 = vmatpush1.bf16.msra.mxu0 %v3911_v48  ;;  %2277 = vmatpush1.bf16.msra.mxu1 %v3916_v49 }
 0x449   :  { %2237 = vmatprep.subr.bf16.mxu0 %v3925_v50  ;;  %2278 = vmatprep.subr.bf16.mxu1 %v3930_v51 }
 0x44c   :  { %2238 = vmatpush1.bf16.msra.mxu0 %v3935_v52  ;;  %2279 = vmatpush1.bf16.msra.mxu1 %v3940_v54 }
 0x44d   :  { %2239 = vmatprep.subr.bf16.mxu0 %v3949_v56  ;;  %2280 = vmatprep.subr.bf16.mxu1 %v3954_v57 }
 0x450   :  { %2240 = vmatpush1.bf16.msra.mxu0 %v3959_v58  ;;  %2281 = vmatpush1.bf16.msra.mxu1 %v3964_v60 }
 0x451   :  { %2540 = vmatprep.subr.bf16.mxu0 %v3727_v59  ;;  %2581 = vmatprep.subr.bf16.mxu1 %v3732_v11 }
 0x506   :  { %v1944_v36 = vpop.f32.mrb[32].mxu0  ;;  %v1985_v61 = vpop.f32.mrb[32].mxu1 }
 0x507   :  { %v1992_v63 = vadd.f32 %v1944_v36, %v336_v22  ;;  %v1994_v62 = vadd.f32 %v1985_v61, %v407_v29  ;;  %v1946_v3 = vpop.f32.mrb[33].mxu0  ;;  %v1987_v59 = vpop.f32.mrb[33].mxu1 }
 0x508   :  { %v1993_v4 = vadd.f32 %v1946_v3, %v338_v0  ;;  %v1995_v11 = vadd.f32 %v1987_v59, %v409_v23  ;;  %v1948_v5 = vpop.f32.mrb[34].mxu0  ;;  %v1989_v6 = vpop.f32.mrb[34].mxu1 }
 0x509   :  { %v1996_v7 = vmul.f32 0.5, %v1992_v63  ;;  %v1949_v8 = vpop.f32.mrb[35].mxu0  ;;  %v1990_v25 = vpop.f32.mrb[35].mxu1 }
 0x50a   :  { %v2000_v17 = vmul.f32 0.5, %v1993_v4  ;;  %v2005_v28 = vmul.f32 0.5, %v1995_v11  ;;  %v2020_v0 = vpop.permute.xlu0 %2019 }
 0x50b   :  { %3147 = vtanh.f32 %v1996_v7  ;;  %vm2021_vm11 = vcmp.eq.s32.totalorder %v2020_v0, 1 }
 0x50c   :  { %3149 = vtanh.f32 %v2000_v17 }
 0x50d   :  { %3151 = vtanh.f32 %v1994_v62 }
 0x50e   :  { %3153 = vtanh.f32 %v2005_v28 }
 0x515   :  { %v3148_v32 = vpop.eup %3147 }
 0x516   :  { %v3150_v18 = vpop.eup %3149  ;;  %v1998_v19 = vadd.f32 1.0, %v3148_v32 }
 0x517   :  { %v2002_v20 = vadd.f32 1.0, %v3150_v18  ;;  %v3152_v22 = vpop.eup %3151 }
 0x518   :  { %v1999_v53 = vmul.f32 0.5, %v1998_v19  ;;  %v3154_v36 = vpop.eup %3153 }
 0x519   :  { %v2003_v26 = vmul.f32 0.5, %v2002_v20  ;;  %v2007_v61 = vadd.f32 1.0, %v3154_v36 }
 0x51a   :  { %v2010_v29 = vmul.f32 %v3152_v22, %v1999_v53 }
 0x51b   :  { %v2009_v44 = vmul.f32 %v2003_v26, %v3982_v21  ;;  %v2008_v63 = vmul.f32 0.5, %v2007_v61 }
 0x51d   :  { %v2011_v2 = vadd.f32 %v2010_v29, %v2009_v44 }
 0x51f   :  { %3155 = vtanh.f32 %v2011_v2  ;;  %v4036_v23 = vsel %vm2021_vm11, %v2011_v2, %v3982_v21  ;;  %v2335_v21 = vpop.permute.xlu1 %2334 }
 0x520   :  { %vm2336_vm12 = vcmp.eq.s32.totalorder %v2335_v21, 1 }
 0x529   :  { %v3156_v62 = vpop.eup %3155 }
 0x52a   :  { %v2013_v3 = vmul.f32 %v3156_v62, %v2008_v63 }
 0x52c   :  { %v2022_v59 = vsel %vm2021_vm11, %v2013_v3, 0.0  ;;  %v4039_v4 = vsel %vm2021_vm11, %v2013_v3, %v3985_v24 }
 0x52d   :  { %2877 = vst [vmem:[%s4112_s7 + $0x20] sm:$0xff] %v2022_v59  ;;  %v2032_v11 = vpack.c.bf16 %v4039_v4, %v4039_v4 }
 0x52f   :  { %2258 = vmatmul.mubr.bf16.vlgmr.msra.gmra.mrb[36].mxu0 %v2032_v11  ;;  %2299 = vmatmul.mubr.bf16.vlgmr.msra.gmra.mrb[36].mxu1 %v2032_v11 }
 0x530   :  { %2541 = vmatpush1.bf16.msra.mxu0 %v3737_v55  ;;  %2582 = vmatpush1.bf16.msra.mxu1 %v3742_v15  ;;  %v4145_v15 = vld [vmem:[#allocation17_spill] sm:$0xff] }
 0x531   :  { %2542 = vmatprep.subr.bf16.mxu0 %v3751_v16  ;;  %2583 = vmatprep.subr.bf16.mxu1 %v3756_v30  ;;  %v411_v16 = vadd.f32 %v4145_v15, %v3641_v33  ;;  %v4146_v30 = vld [vmem:[#allocation18_spill] sm:$0xff] }
 0x532   :  { %2572 = vmatprep.mubr.bf16.mxu0 %v4132_v10  ;;  %2613 = vmatprep.mubr.bf16.mxu1 %v4132_v10  ;;  %v4144_v10 = vld [vmem:[#allocation16_spill] sm:$0xff] }
 0x533   :  { %v340_v55 = vadd.f32 %v4144_v10, %v3639_v1 }
 0x534   :  { %2543 = vmatpush1.bf16.msra.mxu0 %v3761_v27  ;;  %2584 = vmatpush1.bf16.msra.mxu1 %v3766_v31  ;;  %v342_v27 = vadd.f32 %v4146_v30, %v3643_v34  ;;  %v4147_v31 = vld [vmem:[#allocation19_spill] sm:$0xff]  ;;  %v2650_v30 = vpop.permute.xlu0 %2649 }
 0x535   :  { %2544 = vmatprep.subr.bf16.mxu0 %v3829_v37  ;;  %2585 = vmatprep.subr.bf16.mxu1 %v3834_v38  ;;  %v413_v37 = vadd.f32 %v4147_v31, %v3645_v35  ;;  %vm2651_vm13 = vcmp.eq.s32.totalorder %v2650_v30, 1 }
 0x538   :  { %2545 = vmatpush1.bf16.msra.mxu0 %v3839_v39  ;;  %2586 = vmatpush1.bf16.msra.mxu1 %v3844_v40 }
 0x539   :  { %2546 = vmatprep.subr.bf16.mxu0 %v3853_v41  ;;  %2587 = vmatprep.subr.bf16.mxu1 %v3858_v9 }
 0x53c   :  { %2547 = vmatpush1.bf16.msra.mxu0 %v3863_v12  ;;  %2588 = vmatpush1.bf16.msra.mxu1 %v3868_v13 }
 0x53d   :  { %2548 = vmatprep.subr.bf16.mxu0 %v3877_v14  ;;  %2589 = vmatprep.subr.bf16.mxu1 %v3882_v42 }
 0x540   :  { %2549 = vmatpush1.bf16.msra.mxu0 %v3887_v43  ;;  %2590 = vmatpush1.bf16.msra.mxu1 %v3892_v45 }
 0x541   :  { %2550 = vmatprep.subr.bf16.mxu0 %v3901_v46  ;;  %2591 = vmatprep.subr.bf16.mxu1 %v3906_v47 }
 0x544   :  { %2551 = vmatpush1.bf16.msra.mxu0 %v3911_v48  ;;  %2592 = vmatpush1.bf16.msra.mxu1 %v3916_v49 }
 0x545   :  { %2552 = vmatprep.subr.bf16.mxu0 %v3925_v50  ;;  %2593 = vmatprep.subr.bf16.mxu1 %v3930_v51 }
 0x548   :  { %2553 = vmatpush1.bf16.msra.mxu0 %v3935_v52  ;;  %2594 = vmatpush1.bf16.msra.mxu1 %v3940_v54 }
 0x549   :  { %2554 = vmatprep.subr.bf16.mxu0 %v3949_v56  ;;  %2595 = vmatprep.subr.bf16.mxu1 %v3954_v57 }
 0x54c   :  { %2555 = vmatpush1.bf16.msra.mxu0 %v3959_v58  ;;  %2596 = vmatpush1.bf16.msra.mxu1 %v3964_v60 }
 0x602   :  { %v2259_v38 = vpop.f32.mrb[36].mxu0  ;;  %v2300_v39 = vpop.f32.mrb[36].mxu1 }
 0x603   :  { %v2307_v40 = vadd.f32 %v2259_v38, %v340_v55  ;;  %v2309_v41 = vadd.f32 %v2300_v39, %v411_v16  ;;  %v2261_v9 = vpop.f32.mrb[37].mxu0  ;;  %v2302_v12 = vpop.f32.mrb[37].mxu1 }
 0x604   :  { %v2308_v13 = vadd.f32 %v2261_v9, %v342_v27  ;;  %v2310_v14 = vadd.f32 %v2302_v12, %v413_v37  ;;  %v2263_v42 = vpop.f32.mrb[38].mxu0  ;;  %v2304_v43 = vpop.f32.mrb[38].mxu1 }
 0x605   :  { %v2311_v45 = vmul.f32 0.5, %v2307_v40  ;;  %v2264_v46 = vpop.f32.mrb[39].mxu0  ;;  %v2305_v47 = vpop.f32.mrb[39].mxu1 }
 0x606   :  { %v2315_v48 = vmul.f32 0.5, %v2308_v13  ;;  %v2320_v49 = vmul.f32 0.5, %v2310_v14 }
 0x607   :  { %3157 = vtanh.f32 %v2311_v45 }
 0x608   :  { %3159 = vtanh.f32 %v2315_v48 }
 0x609   :  { %3161 = vtanh.f32 %v2309_v41 }
 0x60a   :  { %3163 = vtanh.f32 %v2320_v49 }
 0x611   :  { %v3158_v50 = vpop.eup %3157 }
 0x612   :  { %v3160_v51 = vpop.eup %3159  ;;  %v2313_v52 = vadd.f32 1.0, %v3158_v50 }
 0x613   :  { %v2317_v54 = vadd.f32 1.0, %v3160_v51  ;;  %v3162_v57 = vpop.eup %3161 }
 0x614   :  { %v2314_v56 = vmul.f32 0.5, %v2313_v52  ;;  %v3164_v7 = vpop.eup %3163 }
 0x615   :  { %v2318_v58 = vmul.f32 0.5, %v2317_v54  ;;  %v2322_v8 = vadd.f32 1.0, %v3164_v7 }
 0x616   :  { %v2325_v60 = vmul.f32 %v3162_v57, %v2314_v56 }
 0x617   :  { %v2324_v24 = vmul.f32 %v2318_v58, %v4036_v23  ;;  %v2323_v25 = vmul.f32 0.5, %v2322_v8 }
 0x619   :  { %v2326_v5 = vadd.f32 %v2325_v60, %v2324_v24 }
 0x61b   :  { %3165 = vtanh.f32 %v2326_v5  ;;  %v2341_v6 = vsel %vm2336_vm12, %v2326_v5, %v4036_v23 }
 0x625   :  { %v3166_v17 = vpop.eup %3165 }
 0x626   :  { %v2328_v28 = vmul.f32 %v3166_v17, %v2323_v25 }
 0x628   :  { %v2337_v32 = vsel %vm2336_vm12, %v2328_v28, 0.0  ;;  %v2340_v18 = vsel %vm2336_vm12, %v2328_v28, %v4039_v4 }
 0x629   :  { %2910 = vst [vmem:[%s4112_s7 + $0x28] sm:$0xff] %v2337_v32  ;;  %v2347_v19 = vpack.c.bf16 %v2340_v18, %v2340_v18 }
 0x62b   :  { %2573 = vmatmul.mubr.bf16.vlgmr.msra.gmra.mrb[12].mxu0 %v2347_v19  ;;  %2614 = vmatmul.mubr.bf16.vlgmr.msra.gmra.mrb[12].mxu1 %v2347_v19 }
 0x6fe   :  { %v2574_v20 = vpop.f32.mrb[12].mxu0  ;;  %v2615_v53 = vpop.f32.mrb[12].mxu1 }
 0x6ff   :  { %v2944_v22 = vadd.f32 %v2574_v20, %v3639_v1  ;;  %v2576_v26 = vpop.f32.mrb[13].mxu0  ;;  %v2617_v29 = vpop.f32.mrb[13].mxu1  ;;  %v2946_v62 = vadd.f32 %v2615_v53, %v3641_v33 }
 0x700   :  { %v2945_v44 = vadd.f32 %v2576_v26, %v3643_v34  ;;  %v2578_v0 = vpop.f32.mrb[14].mxu0  ;;  %v2619_v2 = vpop.f32.mrb[14].mxu1  ;;  %v2947_v3 = vadd.f32 %v2617_v29, %v3645_v35 }
 0x701   :  { %v2626_v23 = vmul.f32 0.5, %v2944_v22  ;;  %v2579_v36 = vpop.f32.mrb[15].mxu0  ;;  %v2620_v61 = vpop.f32.mrb[15].mxu1 }
 0x702   :  { %v2630_v63 = vmul.f32 0.5, %v2945_v44  ;;  %v2635_v59 = vmul.f32 0.5, %v2947_v3 }
 0x703   :  { %3167 = vtanh.f32 %v2626_v23 }
 0x704   :  { %3169 = vtanh.f32 %v2630_v63 }
 0x705   :  { %3171 = vtanh.f32 %v2946_v62 }
 0x706   :  { %3173 = vtanh.f32 %v2635_v59 }
 0x70d   :  { %v3168_v4 = vpop.eup %3167 }
 0x70e   :  { %v3170_v1 = vpop.eup %3169  ;;  %v2628_v11 = vadd.f32 1.0, %v3168_v4 }
 0x70f   :  { %v2632_v10 = vadd.f32 1.0, %v3170_v1  ;;  %v3172_v55 = vpop.eup %3171 }
 0x710   :  { %v2629_v34 = vmul.f32 0.5, %v2628_v11  ;;  %v3174_v35 = vpop.eup %3173 }
 0x711   :  { %v2633_v15 = vmul.f32 0.5, %v2632_v10  ;;  %v2637_v37 = vadd.f32 1.0, %v3174_v35 }
 0x712   :  { %v2640_v16 = vmul.f32 %v3172_v55, %v2629_v34 }
 0x713   :  { %v2639_v27 = vmul.f32 %v2633_v15, %v2341_v6  ;;  %v2638_v38 = vmul.f32 0.5, %v2637_v37 }
 0x715   :  { %v2641_v31 = vadd.f32 %v2640_v16, %v2639_v27 }
 0x717   :  { %3175 = vtanh.f32 %v2641_v31  ;;  %v2656_v33 = vsel %vm2651_vm13, %v2641_v31, %v2341_v6 }
 0x718   :  { %2665 = vst [vmem:[%s4113_s9] sm:$0xff] %v2656_v33 }
 0x721   :  { %v3176_v39 = vpop.eup %3175 }
 0x722   :  { %v2643_v40 = vmul.f32 %v3176_v39, %v2638_v38 }
 0x724   :  { %v2652_v41 = vsel %vm2651_vm13, %v2643_v40, 0.0  ;;  %v2655_v9 = vsel %vm2651_vm13, %v2643_v40, %v2340_v18 }
 0x725   :  { %2943 = vst [vmem:[%s4112_s7 + $0x30] sm:$0xff] %v2652_v41  ;;  %2663 = vst [vmem:[%s4114_s8] sm:$0xff] %v2655_v9 }

</bundles_post_ra>
